<compile_context>
chip_gen: v6e
topology: v6e:2x2x1
jax: 0.10.0
libtpu: 0.0.40
codegen_flags: <defaults>
</compile_context>

<pallas_src>
import jax
import jax.numpy as jnp
from jax.experimental import pallas as pl
from jax.experimental.pallas import tpu as pltpu

H1 = 8          # per-direction hidden size of layer 1
G1 = 2 * H1     # layer-1 state width (fwd|rev lane-concatenated) = 16
H2 = 16         # layer-2 hidden size
GW = 4 * G1     # packed gate width of both small slabs (== 4*H2 == 64)


def lstm_kernel(x_ref, wb1_ref, wb2_ref, out_ref):
    B, T, F2 = x_ref.shape          # x lanes are [x(t) | x(T-1-t)]  (2*F wide)
    f32 = jnp.float32

    # ---- static-offset views into the packed parameter slab (width 64) ----
    r = 0
    w1x = wb1_ref[r:r + F2, :]; r += F2        # (2F, 4*G1)  fwd rows on top, rev rows below
    w1h = wb1_ref[r:r + G1, :]; r += G1        # (G1, 4*G1)  block-diagonal recurrent
    b1  = wb1_ref[r:r + 1, :];  r += 1         # (1, 4*G1)
    w2h = wb1_ref[r:r + H2, :]; r += H2        # (H2, 4*H2)
    wfc = wb1_ref[r:r + H2, :]; r += H2        # (H2, 64)    only lane 0 meaningful
    bfc = wb1_ref[r:r + 1, :]                  # (1, 64)

    w2x = wb2_ref[0:T * G1, :]                 # (T*G1, T*4*H2) block-diag over time
    b2  = wb2_ref[T * G1:T * G1 + 1, :]        # (1, T*4*H2)

    # ---- layer 1: input projection hoisted over all timesteps & both directions ----
    p1 = (jnp.dot(x_ref[...].reshape(B * T, F2), w1x, preferred_element_type=f32)
          + b1).reshape(B, T, 4 * G1)
    # Because x lanes already carry [x(t) | x(T-1-t)] and w1x routes them to the
    # fwd / rev gate columns, p1[:, s, :] is the complete (fwd step s, rev step s)
    # input pre-activation — no per-step where / flip / extra slice.

    h1 = jnp.zeros((B, G1), f32)
    d1 = jnp.zeros((B, G1), f32)               # carries 2*c1 (one fewer mul on the chain)
    h1_steps = [None] * T
    for s in range(T):                         # fully unrolled (T static and small)
        pre = p1[:, s, :] + jnp.dot(h1, w1h, preferred_element_type=f32)
        sg = jax.nn.sigmoid(pre)               # one full-width EUP pass per step
        i = sg[:, 0:G1]
        f = sg[:, G1:2 * G1]
        g2 = 4.0 * sg[:, 2 * G1:3 * G1] - 2.0  # == 2*tanh(pre_g)  (g-cols prescaled by 2)
        o = sg[:, 3 * G1:4 * G1]
        d1 = f * d1 + i * g2                   # d1 == 2*c1
        h1 = (o + o) * jax.nn.sigmoid(d1) - o  # == o * tanh(c1)
        h1_steps[s] = h1                       # lanes: [h_fwd(time s) | h_rev(time T-1-s)]

    # ---- layer 2: single lane-dense projection of all T layer-1 states ----
    h1_all = jnp.concatenate(h1_steps, axis=1)                        # (B, T*G1) = (B, 128)
    p2 = jnp.dot(h1_all, w2x, preferred_element_type=f32) + b2        # (B, T*4*H2)

    h2 = jnp.zeros((B, H2), f32)
    d2 = jnp.zeros((B, H2), f32)
    for t in range(T):
        pre = (p2[:, t * 4 * H2:(t + 1) * 4 * H2]
               + jnp.dot(h2, w2h, preferred_element_type=f32))
        sg = jax.nn.sigmoid(pre)
        i = sg[:, 0:H2]
        f = sg[:, H2:2 * H2]
        g2 = 4.0 * sg[:, 2 * H2:3 * H2] - 2.0
        o = sg[:, 3 * H2:4 * H2]
        d2 = f * d2 + i * g2
        h2 = (o + o) * jax.nn.sigmoid(d2) - o

    # ---- last timestep -> dropout (identity, eval) -> Linear(H2, 1) ----
    # TODO(synk): nn.Dropout is identity in eval mode; training-mode dropout not implemented.
    fc = jnp.dot(h2, wfc, preferred_element_type=f32) + bfc           # (B, 64); lane 0 = fc
    out_ref[...] = fc[:, 0:1]


def lstm_forward(x, packed):
    """x: (B, T, F) float32 batch-first (as in PyTorch). Returns (B, 1) float32."""
    wb1, wb2 = packed
    B, T, F = x.shape
    # Lane-concatenate x(t) with x(T-1-t) so the hoisted layer-1 input projection
    # serves both directions with no in-kernel flip / lane mask.
    x_cat = jnp.concatenate([x, x[:, ::-1, :]], axis=-1)              # (B, T, 2F)
    # Pad batch to a multiple of 8 so every f32 vreg sublane is used; padded rows
    # are computed-then-discarded (near-zero added latency on the serial chain).
    B_pad = max(8, ((B + 7) // 8) * 8)
    if B_pad != B:
        x_cat = jnp.pad(x_cat, ((0, B_pad - B), (0, 0), (0, 0)))
    out = pl.pallas_call(
        lstm_kernel,
        out_shape=jax.ShapeDtypeStruct((B_pad, 1), jnp.float32),
        in_specs=[pl.BlockSpec(memory_space=pltpu.MemorySpace.VMEM)] * 3,
        out_specs=pl.BlockSpec(memory_space=pltpu.MemorySpace.VMEM),
    )(x_cat, wb1, wb2)
    return out[:B]


def init_params(key, F, h1=H1, h2=H2):
    """PyTorch-layout parameters (weight_ih: (4H, in), weight_hh: (4H, H), biases (4H,))."""
    ks = jax.random.split(key, 14)
    u = lambda k, shape, s: jax.random.uniform(k, shape, jnp.float32, -s, s)
    s1 = 1.0 / (h1 ** 0.5)
    s2 = 1.0 / (h2 ** 0.5)
    w_ih_f = u(ks[0], (4 * h1, F), s1);  w_hh_f = u(ks[1], (4 * h1, h1), s1)
    b_ih_f = u(ks[2], (4 * h1,), s1);    b_hh_f = u(ks[3], (4 * h1,), s1)
    w_ih_r = u(ks[4], (4 * h1, F), s1);  w_hh_r = u(ks[5], (4 * h1, h1), s1)
    b_ih_r = u(ks[6], (4 * h1,), s1);    b_hh_r = u(ks[7], (4 * h1,), s1)
    w_ih_2 = u(ks[8], (4 * h2, 2 * h1), s2); w_hh_2 = u(ks[9], (4 * h2, h2), s2)
    b_ih_2 = u(ks[10], (4 * h2,), s2);       b_hh_2 = u(ks[11], (4 * h2,), s2)
    w_fc = u(ks[12], (1, h2), s2)
    b_fc = u(ks[13], (1,), s2)
    return (w_ih_f, w_hh_f, b_ih_f, b_hh_f,
            w_ih_r, w_hh_r, b_ih_r, b_hh_r,
            w_ih_2, w_hh_2, b_ih_2, b_hh_2,
            w_fc, b_fc)


def pack_params(p, T, h1=H1, h2=H2):
    """Host-side re-layout of PyTorch params into TWO contiguous slabs:
       slab 1 (width 64): [w1x (2F) | w1h (G1) | b1 (1) | w2h (H2) | wfc_pad (H2) | bfc_pad (1)]
         - weights pre-transposed so the kernel does x @ W; ih/hh biases pre-summed
         - layer-1 input rows are [x | x_time_reversed]; per-gate columns [fwd|rev];
           recurrent weights block-diagonal per direction
         - g-gate columns pre-scaled by 2 for tanh(x) = 2*sigmoid(2x) - 1
       slab 2: block-diagonal layer-2 input projection (T*G1, T*4*H2) + bias row."""
    (w_ih_f, w_hh_f, b_ih_f, b_hh_f,
     w_ih_r, w_hh_r, b_ih_r, b_hh_r,
     w_ih_2, w_hh_2, b_ih_2, b_hh_2,
     w_fc, b_fc) = p
    F = w_ih_f.shape[1]
    g1 = 2 * h1
    assert 4 * g1 == 4 * h2, "packing assumes 2*H1 == H2 (true for this module)"
    f32 = jnp.float32

    def blocks(w, H):   # (4H, in) -> 4 blocks of (in, H), PyTorch gate order [i, f, g, o]
        return [w[g * H:(g + 1) * H, :].T for g in range(4)]

    gi_f, gi_r = blocks(w_ih_f, h1), blocks(w_ih_r, h1)
    gh_f, gh_r = blocks(w_hh_f, h1), blocks(w_hh_r, h1)
    bf, br = b_ih_f + b_hh_f, b_ih_r + b_hh_r

    zF = jnp.zeros((F, h1), f32)
    zH = jnp.zeros((h1, h1), f32)
    # input projection: rows [x ; x_reversed], columns [i_f i_r | f_f f_r | g_f g_r | o_f o_r]
    w1x = jnp.concatenate(
        [jnp.concatenate([jnp.concatenate([gi_f[g], zF], axis=1) for g in range(4)], axis=1),
         jnp.concatenate([jnp.concatenate([zF, gi_r[g]], axis=1) for g in range(4)], axis=1)],
        axis=0)                                                        # (2F, 4*g1)
    # recurrent: block-diagonal, rows = [h_fwd (h1); h_rev (h1)]
    w1h = jnp.concatenate(
        [jnp.concatenate([jnp.concatenate([gh_f[g], zH], axis=1) for g in range(4)], axis=1),
         jnp.concatenate([jnp.concatenate([zH, gh_r[g]], axis=1) for g in range(4)], axis=1)],
        axis=0)                                                        # (g1, 4*g1)
    b1 = jnp.concatenate(
        [jnp.concatenate([bf[g * h1:(g + 1) * h1], br[g * h1:(g + 1) * h1]])
         for g in range(4)])[None, :]                                  # (1, 4*g1)

    # layer 2 (gate order [i, f, g, o]; input feature order [fwd | rev] matches PyTorch)
    w2x = w_ih_2.T                       # (2*h1, 4*h2)
    w2h = w_hh_2.T                       # (h2, 4*h2)
    b2 = (b_ih_2 + b_hh_2)[None, :]      # (1, 4*h2)

    def scale_g(w, G):                   # g-gate block occupies columns [2G, 3G)
        return w.at[..., 2 * G:3 * G].multiply(2.0)

    w1x, w1h, b1 = scale_g(w1x, g1), scale_g(w1h, g1), scale_g(b1, g1)
    w2x, w2h, b2 = scale_g(w2x, h2), scale_g(w2h, h2), scale_g(b2, h2)

    # slab 1 (everything 64 lanes wide)
    W = 4 * g1
    wfc_pad = jnp.zeros((h2, W), f32).at[:, 0:1].set(w_fc.T)
    bfc_pad = jnp.zeros((1, W), f32).at[0, 0].set(b_fc[0])
    wb1 = jnp.concatenate([w1x, w1h, b1, w2h, wfc_pad, bfc_pad], axis=0)   # (2F+50, 64)

    # slab 2: layer-1 state at step s is [h_fwd(s) | h_rev(T-1-s)]; layer-2 input at
    # time t is [h_fwd(t) | h_rev(t)] -> fwd rows on the diagonal, rev rows on the
    # time-reversed diagonal.
    w2x_big = jnp.zeros((T * g1, T * 4 * h2), f32)
    for t in range(T):
        c = slice(t * 4 * h2, (t + 1) * 4 * h2)
        w2x_big = w2x_big.at[t * g1:t * g1 + h1, c].set(w2x[0:h1, :])
        s = T - 1 - t
        w2x_big = w2x_big.at[s * g1 + h1:(s + 1) * g1, c].set(w2x[h1:2 * h1, :])
    b2_big = jnp.tile(b2, (1, T))
    wb2 = jnp.concatenate([w2x_big, b2_big], axis=0)                       # (T*g1+1, T*4*h2)
    return wb1, wb2


def lstm_ref(x, p, h1=H1, h2=H2):
    """Pure-JAX reference with PyTorch LSTM semantics (eval mode)."""
    (w_ih_f, w_hh_f, b_ih_f, b_hh_f,
     w_ih_r, w_hh_r, b_ih_r, b_hh_r,
     w_ih_2, w_hh_2, b_ih_2, b_hh_2,
     w_fc, b_fc) = p
    B, T, F = x.shape
    xt = jnp.transpose(x, (1, 0, 2))     # (T, B, F)

    def make_step(w_ih, w_hh, b_ih, b_hh, H):
        wi, wh, b = w_ih.T, w_hh.T, (b_ih + b_hh)[None, :]

        def step(carry, x_t):
            h, c = carry
            pre = x_t @ wi + h @ wh + b
            i = jax.nn.sigmoid(pre[:, :H])
            f = jax.nn.sigmoid(pre[:, H:2 * H])
            g = jnp.tanh(pre[:, 2 * H:3 * H])
            o = jax.nn.sigmoid(pre[:, 3 * H:])
            c = f * c + i * g
            h = o * jnp.tanh(c)
            return (h, c), h
        return step

    z1 = jnp.zeros((B, h1), jnp.float32)
    _, hf = jax.lax.scan(make_step(w_ih_f, w_hh_f, b_ih_f, b_hh_f, h1), (z1, z1), xt)
    _, hr = jax.lax.scan(make_step(w_ih_r, w_hh_r, b_ih_r, b_hh_r, h1), (z1, z1), xt[::-1])
    out1 = jnp.concatenate([hf, hr[::-1]], axis=-1)     # (T, B, 2*h1)
    z2 = jnp.zeros((B, h2), jnp.float32)
    (h2_last, _), _ = jax.lax.scan(make_step(w_ih_2, w_hh_2, b_ih_2, b_hh_2, h2),
                                   (z2, z2), out1)
    return h2_last @ w_fc.T + b_fc[None, :]


if __name__ == "__main__":
    B, T, F = 2, 8, 4   # batch=2, seq=8, n_features=4
    key = jax.random.PRNGKey(0)
    kx, kp = jax.random.split(key)
    x = jax.random.normal(kx, (B, T, F), dtype=jnp.float32)
    params = init_params(kp, F)
    packed = pack_params(params, T)

    out = jax.block_until_ready(jax.jit(lstm_forward)(x, packed))
    ref = jax.block_until_ready(lstm_ref(x, params))

    assert out.shape == (B, 1)
    assert jnp.allclose(out, ref, atol=1e-4, rtol=1e-4), (out, ref)
    print("KERNEL_OK")
</pallas_src>

<mosaic_0001>
module attributes {stable_mosaic.version = 11 : i64} {
  func.func @lstm_kernel(%arg0: memref<8x8x8xf32, #tpu.memory_space<vmem>>, %arg1: memref<58x64xf32, #tpu.memory_space<vmem>>, %arg2: memref<129x512xf32, #tpu.memory_space<vmem>>, %arg3: memref<8x1xf32, #tpu.memory_space<vmem>>) attributes {dimension_semantics = [], scalar_prefetch = 0 : i64, scratch_operands = 0 : i64, tpu.core_type = #tpu.core_type<tc>} {
    %c0 = arith.constant 0 : index
    %c0_0 = arith.constant 0 : index
    %0 = vector.load %arg1[%c0, %c0_0] : memref<58x64xf32, #tpu.memory_space<vmem>>, vector<8x64xf32>
    %c8 = arith.constant 8 : index
    %c0_1 = arith.constant 0 : index
    %1 = vector.load %arg1[%c8, %c0_1] : memref<58x64xf32, #tpu.memory_space<vmem>>, vector<16x64xf32>
    %c24 = arith.constant 24 : index
    %c0_2 = arith.constant 0 : index
    %2 = vector.load %arg1[%c24, %c0_2] : memref<58x64xf32, #tpu.memory_space<vmem>>, vector<1x64xf32>
    %c25 = arith.constant 25 : index
    %c0_3 = arith.constant 0 : index
    %3 = vector.load %arg1[%c25, %c0_3] : memref<58x64xf32, #tpu.memory_space<vmem>>, vector<16x64xf32>
    %c41 = arith.constant 41 : index
    %c0_4 = arith.constant 0 : index
    %4 = vector.load %arg1[%c41, %c0_4] : memref<58x64xf32, #tpu.memory_space<vmem>>, vector<16x64xf32>
    %c57 = arith.constant 57 : index
    %c0_5 = arith.constant 0 : index
    %5 = vector.load %arg1[%c57, %c0_5] : memref<58x64xf32, #tpu.memory_space<vmem>>, vector<1x64xf32>
    %c0_6 = arith.constant 0 : index
    %c0_7 = arith.constant 0 : index
    %6 = vector.load %arg2[%c0_6, %c0_7] : memref<129x512xf32, #tpu.memory_space<vmem>>, vector<128x512xf32>
    %c128 = arith.constant 128 : index
    %c0_8 = arith.constant 0 : index
    %7 = vector.load %arg2[%c128, %c0_8] : memref<129x512xf32, #tpu.memory_space<vmem>>, vector<1x512xf32>
    %c0_9 = arith.constant 0 : index
    %c0_10 = arith.constant 0 : index
    %c0_11 = arith.constant 0 : index
    %8 = vector.load %arg0[%c0_9, %c0_10, %c0_11] : memref<8x8x8xf32, #tpu.memory_space<vmem>>, vector<8x8x8xf32>
    %9 = vector.shape_cast %8 : vector<8x8x8xf32> to vector<64x8xf32>
    %cst = arith.constant dense<0.000000e+00> : vector<64x64xf32>
    %10 = tpu.matmul %9, %0, %cst {dimension_numbers = #tpu.dot_dimension_numbers<[1], [0], [0], [1], [0, 0, 1, 1], [], []>} : vector<64x8xf32>, vector<8x64xf32>, vector<64x64xf32> -> vector<64x64xf32>
    %11 = vector.broadcast %2 : vector<1x64xf32> to vector<64x64xf32>
    %12 = arith.addf %10, %11 : vector<64x64xf32>
    %13 = vector.shape_cast %12 : vector<64x64xf32> to vector<8x8x64xf32>
    %cst_12 = arith.constant 0.000000e+00 : f32
    %14 = vector.broadcast %cst_12 : f32 to vector<8x16xf32>
    %cst_13 = arith.constant 0.000000e+00 : f32
    %15 = vector.broadcast %cst_13 : f32 to vector<8x16xf32>
    %16 = vector.extract_strided_slice %13 {offsets = [0, 0, 0], sizes = [8, 1, 64], strides = [1, 1, 1]} : vector<8x8x64xf32> to vector<8x1x64xf32>
    %17 = vector.shape_cast %16 : vector<8x1x64xf32> to vector<8x64xf32>
    %cst_14 = arith.constant dense<0.000000e+00> : vector<8x64xf32>
    %18 = tpu.matmul %14, %1, %cst_14 {dimension_numbers = #tpu.dot_dimension_numbers<[1], [0], [0], [1], [0, 0, 1, 1], [], []>} : vector<8x16xf32>, vector<16x64xf32>, vector<8x64xf32> -> vector<8x64xf32>
    %19 = arith.addf %17, %18 : vector<8x64xf32>
    %20 = arith.negf %19 : vector<8x64xf32>
    %21 = math.exp %20 : vector<8x64xf32>
    %cst_15 = arith.constant 1.000000e+00 : f32
    %22 = vector.broadcast %cst_15 : f32 to vector<8x64xf32>
    %23 = arith.addf %22, %21 : vector<8x64xf32>
    %24 = arith.divf %22, %23 : vector<8x64xf32>
    %25 = vector.extract_strided_slice %24 {offsets = [0, 0], sizes = [8, 16], strides = [1, 1]} : vector<8x64xf32> to vector<8x16xf32>
    %26 = vector.extract_strided_slice %24 {offsets = [0, 16], sizes = [8, 16], strides = [1, 1]} : vector<8x64xf32> to vector<8x16xf32>
    %27 = vector.extract_strided_slice %24 {offsets = [0, 32], sizes = [8, 16], strides = [1, 1]} : vector<8x64xf32> to vector<8x16xf32>
    %cst_16 = arith.constant 4.000000e+00 : f32
    %28 = vector.broadcast %cst_16 : f32 to vector<8x16xf32>
    %29 = arith.mulf %28, %27 : vector<8x16xf32>
    %cst_17 = arith.constant 2.000000e+00 : f32
    %30 = vector.broadcast %cst_17 : f32 to vector<8x16xf32>
    %31 = arith.subf %29, %30 : vector<8x16xf32>
    %32 = vector.extract_strided_slice %24 {offsets = [0, 48], sizes = [8, 16], strides = [1, 1]} : vector<8x64xf32> to vector<8x16xf32>
    %33 = arith.mulf %26, %15 : vector<8x16xf32>
    %34 = arith.mulf %25, %31 : vector<8x16xf32>
    %35 = arith.addf %33, %34 : vector<8x16xf32>
    %36 = arith.addf %32, %32 : vector<8x16xf32>
    %37 = arith.negf %35 : vector<8x16xf32>
    %38 = math.exp %37 : vector<8x16xf32>
    %cst_18 = arith.constant 1.000000e+00 : f32
    %39 = vector.broadcast %cst_18 : f32 to vector<8x16xf32>
    %40 = arith.addf %39, %38 : vector<8x16xf32>
    %41 = arith.divf %39, %40 : vector<8x16xf32>
    %42 = arith.mulf %36, %41 : vector<8x16xf32>
    %43 = arith.subf %42, %32 : vector<8x16xf32>
    %44 = vector.extract_strided_slice %13 {offsets = [0, 1, 0], sizes = [8, 1, 64], strides = [1, 1, 1]} : vector<8x8x64xf32> to vector<8x1x64xf32>
    %45 = vector.shape_cast %44 : vector<8x1x64xf32> to vector<8x64xf32>
    %cst_19 = arith.constant dense<0.000000e+00> : vector<8x64xf32>
    %46 = tpu.matmul %43, %1, %cst_19 {dimension_numbers = #tpu.dot_dimension_numbers<[1], [0], [0], [1], [0, 0, 1, 1], [], []>} : vector<8x16xf32>, vector<16x64xf32>, vector<8x64xf32> -> vector<8x64xf32>
    %47 = arith.addf %45, %46 : vector<8x64xf32>
    %48 = arith.negf %47 : vector<8x64xf32>
    %49 = math.exp %48 : vector<8x64xf32>
    %cst_20 = arith.constant 1.000000e+00 : f32
    %50 = vector.broadcast %cst_20 : f32 to vector<8x64xf32>
    %51 = arith.addf %50, %49 : vector<8x64xf32>
    %52 = arith.divf %50, %51 : vector<8x64xf32>
    %53 = vector.extract_strided_slice %52 {offsets = [0, 0], sizes = [8, 16], strides = [1, 1]} : vector<8x64xf32> to vector<8x16xf32>
    %54 = vector.extract_strided_slice %52 {offsets = [0, 16], sizes = [8, 16], strides = [1, 1]} : vector<8x64xf32> to vector<8x16xf32>
    %55 = vector.extract_strided_slice %52 {offsets = [0, 32], sizes = [8, 16], strides = [1, 1]} : vector<8x64xf32> to vector<8x16xf32>
    %cst_21 = arith.constant 4.000000e+00 : f32
    %56 = vector.broadcast %cst_21 : f32 to vector<8x16xf32>
    %57 = arith.mulf %56, %55 : vector<8x16xf32>
    %cst_22 = arith.constant 2.000000e+00 : f32
    %58 = vector.broadcast %cst_22 : f32 to vector<8x16xf32>
    %59 = arith.subf %57, %58 : vector<8x16xf32>
    %60 = vector.extract_strided_slice %52 {offsets = [0, 48], sizes = [8, 16], strides = [1, 1]} : vector<8x64xf32> to vector<8x16xf32>
    %61 = arith.mulf %54, %35 : vector<8x16xf32>
    %62 = arith.mulf %53, %59 : vector<8x16xf32>
    %63 = arith.addf %61, %62 : vector<8x16xf32>
    %64 = arith.addf %60, %60 : vector<8x16xf32>
    %65 = arith.negf %63 : vector<8x16xf32>
    %66 = math.exp %65 : vector<8x16xf32>
    %cst_23 = arith.constant 1.000000e+00 : f32
    %67 = vector.broadcast %cst_23 : f32 to vector<8x16xf32>
    %68 = arith.addf %67, %66 : vector<8x16xf32>
    %69 = arith.divf %67, %68 : vector<8x16xf32>
    %70 = arith.mulf %64, %69 : vector<8x16xf32>
    %71 = arith.subf %70, %60 : vector<8x16xf32>
    %72 = vector.extract_strided_slice %13 {offsets = [0, 2, 0], sizes = [8, 1, 64], strides = [1, 1, 1]} : vector<8x8x64xf32> to vector<8x1x64xf32>
    %73 = vector.shape_cast %72 : vector<8x1x64xf32> to vector<8x64xf32>
    %cst_24 = arith.constant dense<0.000000e+00> : vector<8x64xf32>
    %74 = tpu.matmul %71, %1, %cst_24 {dimension_numbers = #tpu.dot_dimension_numbers<[1], [0], [0], [1], [0, 0, 1, 1], [], []>} : vector<8x16xf32>, vector<16x64xf32>, vector<8x64xf32> -> vector<8x64xf32>
    %75 = arith.addf %73, %74 : vector<8x64xf32>
    %76 = arith.negf %75 : vector<8x64xf32>
    %77 = math.exp %76 : vector<8x64xf32>
    %cst_25 = arith.constant 1.000000e+00 : f32
    %78 = vector.broadcast %cst_25 : f32 to vector<8x64xf32>
    %79 = arith.addf %78, %77 : vector<8x64xf32>
    %80 = arith.divf %78, %79 : vector<8x64xf32>
    %81 = vector.extract_strided_slice %80 {offsets = [0, 0], sizes = [8, 16], strides = [1, 1]} : vector<8x64xf32> to vector<8x16xf32>
    %82 = vector.extract_strided_slice %80 {offsets = [0, 16], sizes = [8, 16], strides = [1, 1]} : vector<8x64xf32> to vector<8x16xf32>
    %83 = vector.extract_strided_slice %80 {offsets = [0, 32], sizes = [8, 16], strides = [1, 1]} : vector<8x64xf32> to vector<8x16xf32>
    %cst_26 = arith.constant 4.000000e+00 : f32
    %84 = vector.broadcast %cst_26 : f32 to vector<8x16xf32>
    %85 = arith.mulf %84, %83 : vector<8x16xf32>
    %cst_27 = arith.constant 2.000000e+00 : f32
    %86 = vector.broadcast %cst_27 : f32 to vector<8x16xf32>
    %87 = arith.subf %85, %86 : vector<8x16xf32>
    %88 = vector.extract_strided_slice %80 {offsets = [0, 48], sizes = [8, 16], strides = [1, 1]} : vector<8x64xf32> to vector<8x16xf32>
    %89 = arith.mulf %82, %63 : vector<8x16xf32>
    %90 = arith.mulf %81, %87 : vector<8x16xf32>
    %91 = arith.addf %89, %90 : vector<8x16xf32>
    %92 = arith.addf %88, %88 : vector<8x16xf32>
    %93 = arith.negf %91 : vector<8x16xf32>
    %94 = math.exp %93 : vector<8x16xf32>
    %cst_28 = arith.constant 1.000000e+00 : f32
    %95 = vector.broadcast %cst_28 : f32 to vector<8x16xf32>
    %96 = arith.addf %95, %94 : vector<8x16xf32>
    %97 = arith.divf %95, %96 : vector<8x16xf32>
    %98 = arith.mulf %92, %97 : vector<8x16xf32>
    %99 = arith.subf %98, %88 : vector<8x16xf32>
    %100 = vector.extract_strided_slice %13 {offsets = [0, 3, 0], sizes = [8, 1, 64], strides = [1, 1, 1]} : vector<8x8x64xf32> to vector<8x1x64xf32>
    %101 = vector.shape_cast %100 : vector<8x1x64xf32> to vector<8x64xf32>
    %cst_29 = arith.constant dense<0.000000e+00> : vector<8x64xf32>
    %102 = tpu.matmul %99, %1, %cst_29 {dimension_numbers = #tpu.dot_dimension_numbers<[1], [0], [0], [1], [0, 0, 1, 1], [], []>} : vector<8x16xf32>, vector<16x64xf32>, vector<8x64xf32> -> vector<8x64xf32>
    %103 = arith.addf %101, %102 : vector<8x64xf32>
    %104 = arith.negf %103 : vector<8x64xf32>
    %105 = math.exp %104 : vector<8x64xf32>
    %cst_30 = arith.constant 1.000000e+00 : f32
    %106 = vector.broadcast %cst_30 : f32 to vector<8x64xf32>
    %107 = arith.addf %106, %105 : vector<8x64xf32>
    %108 = arith.divf %106, %107 : vector<8x64xf32>
    %109 = vector.extract_strided_slice %108 {offsets = [0, 0], sizes = [8, 16], strides = [1, 1]} : vector<8x64xf32> to vector<8x16xf32>
    %110 = vector.extract_strided_slice %108 {offsets = [0, 16], sizes = [8, 16], strides = [1, 1]} : vector<8x64xf32> to vector<8x16xf32>
    %111 = vector.extract_strided_slice %108 {offsets = [0, 32], sizes = [8, 16], strides = [1, 1]} : vector<8x64xf32> to vector<8x16xf32>
    %cst_31 = arith.constant 4.000000e+00 : f32
    %112 = vector.broadcast %cst_31 : f32 to vector<8x16xf32>
    %113 = arith.mulf %112, %111 : vector<8x16xf32>
    %cst_32 = arith.constant 2.000000e+00 : f32
    %114 = vector.broadcast %cst_32 : f32 to vector<8x16xf32>
    %115 = arith.subf %113, %114 : vector<8x16xf32>
    %116 = vector.extract_strided_slice %108 {offsets = [0, 48], sizes = [8, 16], strides = [1, 1]} : vector<8x64xf32> to vector<8x16xf32>
    %117 = arith.mulf %110, %91 : vector<8x16xf32>
    %118 = arith.mulf %109, %115 : vector<8x16xf32>
    %119 = arith.addf %117, %118 : vector<8x16xf32>
    %120 = arith.addf %116, %116 : vector<8x16xf32>
    %121 = arith.negf %119 : vector<8x16xf32>
    %122 = math.exp %121 : vector<8x16xf32>
    %cst_33 = arith.constant 1.000000e+00 : f32
    %123 = vector.broadcast %cst_33 : f32 to vector<8x16xf32>
    %124 = arith.addf %123, %122 : vector<8x16xf32>
    %125 = arith.divf %123, %124 : vector<8x16xf32>
    %126 = arith.mulf %120, %125 : vector<8x16xf32>
    %127 = arith.subf %126, %116 : vector<8x16xf32>
    %128 = vector.extract_strided_slice %13 {offsets = [0, 4, 0], sizes = [8, 1, 64], strides = [1, 1, 1]} : vector<8x8x64xf32> to vector<8x1x64xf32>
    %129 = vector.shape_cast %128 : vector<8x1x64xf32> to vector<8x64xf32>
    %cst_34 = arith.constant dense<0.000000e+00> : vector<8x64xf32>
    %130 = tpu.matmul %127, %1, %cst_34 {dimension_numbers = #tpu.dot_dimension_numbers<[1], [0], [0], [1], [0, 0, 1, 1], [], []>} : vector<8x16xf32>, vector<16x64xf32>, vector<8x64xf32> -> vector<8x64xf32>
    %131 = arith.addf %129, %130 : vector<8x64xf32>
    %132 = arith.negf %131 : vector<8x64xf32>
    %133 = math.exp %132 : vector<8x64xf32>
    %cst_35 = arith.constant 1.000000e+00 : f32
    %134 = vector.broadcast %cst_35 : f32 to vector<8x64xf32>
    %135 = arith.addf %134, %133 : vector<8x64xf32>
    %136 = arith.divf %134, %135 : vector<8x64xf32>
    %137 = vector.extract_strided_slice %136 {offsets = [0, 0], sizes = [8, 16], strides = [1, 1]} : vector<8x64xf32> to vector<8x16xf32>
    %138 = vector.extract_strided_slice %136 {offsets = [0, 16], sizes = [8, 16], strides = [1, 1]} : vector<8x64xf32> to vector<8x16xf32>
    %139 = vector.extract_strided_slice %136 {offsets = [0, 32], sizes = [8, 16], strides = [1, 1]} : vector<8x64xf32> to vector<8x16xf32>
    %cst_36 = arith.constant 4.000000e+00 : f32
    %140 = vector.broadcast %cst_36 : f32 to vector<8x16xf32>
    %141 = arith.mulf %140, %139 : vector<8x16xf32>
    %cst_37 = arith.constant 2.000000e+00 : f32
    %142 = vector.broadcast %cst_37 : f32 to vector<8x16xf32>
    %143 = arith.subf %141, %142 : vector<8x16xf32>
    %144 = vector.extract_strided_slice %136 {offsets = [0, 48], sizes = [8, 16], strides = [1, 1]} : vector<8x64xf32> to vector<8x16xf32>
    %145 = arith.mulf %138, %119 : vector<8x16xf32>
    %146 = arith.mulf %137, %143 : vector<8x16xf32>
    %147 = arith.addf %145, %146 : vector<8x16xf32>
    %148 = arith.addf %144, %144 : vector<8x16xf32>
    %149 = arith.negf %147 : vector<8x16xf32>
    %150 = math.exp %149 : vector<8x16xf32>
    %cst_38 = arith.constant 1.000000e+00 : f32
    %151 = vector.broadcast %cst_38 : f32 to vector<8x16xf32>
    %152 = arith.addf %151, %150 : vector<8x16xf32>
    %153 = arith.divf %151, %152 : vector<8x16xf32>
    %154 = arith.mulf %148, %153 : vector<8x16xf32>
    %155 = arith.subf %154, %144 : vector<8x16xf32>
    %156 = vector.extract_strided_slice %13 {offsets = [0, 5, 0], sizes = [8, 1, 64], strides = [1, 1, 1]} : vector<8x8x64xf32> to vector<8x1x64xf32>
    %157 = vector.shape_cast %156 : vector<8x1x64xf32> to vector<8x64xf32>
    %cst_39 = arith.constant dense<0.000000e+00> : vector<8x64xf32>
    %158 = tpu.matmul %155, %1, %cst_39 {dimension_numbers = #tpu.dot_dimension_numbers<[1], [0], [0], [1], [0, 0, 1, 1], [], []>} : vector<8x16xf32>, vector<16x64xf32>, vector<8x64xf32> -> vector<8x64xf32>
    %159 = arith.addf %157, %158 : vector<8x64xf32>
    %160 = arith.negf %159 : vector<8x64xf32>
    %161 = math.exp %160 : vector<8x64xf32>
    %cst_40 = arith.constant 1.000000e+00 : f32
    %162 = vector.broadcast %cst_40 : f32 to vector<8x64xf32>
    %163 = arith.addf %162, %161 : vector<8x64xf32>
    %164 = arith.divf %162, %163 : vector<8x64xf32>
    %165 = vector.extract_strided_slice %164 {offsets = [0, 0], sizes = [8, 16], strides = [1, 1]} : vector<8x64xf32> to vector<8x16xf32>
    %166 = vector.extract_strided_slice %164 {offsets = [0, 16], sizes = [8, 16], strides = [1, 1]} : vector<8x64xf32> to vector<8x16xf32>
    %167 = vector.extract_strided_slice %164 {offsets = [0, 32], sizes = [8, 16], strides = [1, 1]} : vector<8x64xf32> to vector<8x16xf32>
    %cst_41 = arith.constant 4.000000e+00 : f32
    %168 = vector.broadcast %cst_41 : f32 to vector<8x16xf32>
    %169 = arith.mulf %168, %167 : vector<8x16xf32>
    %cst_42 = arith.constant 2.000000e+00 : f32
    %170 = vector.broadcast %cst_42 : f32 to vector<8x16xf32>
    %171 = arith.subf %169, %170 : vector<8x16xf32>
    %172 = vector.extract_strided_slice %164 {offsets = [0, 48], sizes = [8, 16], strides = [1, 1]} : vector<8x64xf32> to vector<8x16xf32>
    %173 = arith.mulf %166, %147 : vector<8x16xf32>
    %174 = arith.mulf %165, %171 : vector<8x16xf32>
    %175 = arith.addf %173, %174 : vector<8x16xf32>
    %176 = arith.addf %172, %172 : vector<8x16xf32>
    %177 = arith.negf %175 : vector<8x16xf32>
    %178 = math.exp %177 : vector<8x16xf32>
    %cst_43 = arith.constant 1.000000e+00 : f32
    %179 = vector.broadcast %cst_43 : f32 to vector<8x16xf32>
    %180 = arith.addf %179, %178 : vector<8x16xf32>
    %181 = arith.divf %179, %180 : vector<8x16xf32>
    %182 = arith.mulf %176, %181 : vector<8x16xf32>
    %183 = arith.subf %182, %172 : vector<8x16xf32>
    %184 = vector.extract_strided_slice %13 {offsets = [0, 6, 0], sizes = [8, 1, 64], strides = [1, 1, 1]} : vector<8x8x64xf32> to vector<8x1x64xf32>
    %185 = vector.shape_cast %184 : vector<8x1x64xf32> to vector<8x64xf32>
    %cst_44 = arith.constant dense<0.000000e+00> : vector<8x64xf32>
    %186 = tpu.matmul %183, %1, %cst_44 {dimension_numbers = #tpu.dot_dimension_numbers<[1], [0], [0], [1], [0, 0, 1, 1], [], []>} : vector<8x16xf32>, vector<16x64xf32>, vector<8x64xf32> -> vector<8x64xf32>
    %187 = arith.addf %185, %186 : vector<8x64xf32>
    %188 = arith.negf %187 : vector<8x64xf32>
    %189 = math.exp %188 : vector<8x64xf32>
    %cst_45 = arith.constant 1.000000e+00 : f32
    %190 = vector.broadcast %cst_45 : f32 to vector<8x64xf32>
    %191 = arith.addf %190, %189 : vector<8x64xf32>
    %192 = arith.divf %190, %191 : vector<8x64xf32>
    %193 = vector.extract_strided_slice %192 {offsets = [0, 0], sizes = [8, 16], strides = [1, 1]} : vector<8x64xf32> to vector<8x16xf32>
    %194 = vector.extract_strided_slice %192 {offsets = [0, 16], sizes = [8, 16], strides = [1, 1]} : vector<8x64xf32> to vector<8x16xf32>
    %195 = vector.extract_strided_slice %192 {offsets = [0, 32], sizes = [8, 16], strides = [1, 1]} : vector<8x64xf32> to vector<8x16xf32>
    %cst_46 = arith.constant 4.000000e+00 : f32
    %196 = vector.broadcast %cst_46 : f32 to vector<8x16xf32>
    %197 = arith.mulf %196, %195 : vector<8x16xf32>
    %cst_47 = arith.constant 2.000000e+00 : f32
    %198 = vector.broadcast %cst_47 : f32 to vector<8x16xf32>
    %199 = arith.subf %197, %198 : vector<8x16xf32>
    %200 = vector.extract_strided_slice %192 {offsets = [0, 48], sizes = [8, 16], strides = [1, 1]} : vector<8x64xf32> to vector<8x16xf32>
    %201 = arith.mulf %194, %175 : vector<8x16xf32>
    %202 = arith.mulf %193, %199 : vector<8x16xf32>
    %203 = arith.addf %201, %202 : vector<8x16xf32>
    %204 = arith.addf %200, %200 : vector<8x16xf32>
    %205 = arith.negf %203 : vector<8x16xf32>
    %206 = math.exp %205 : vector<8x16xf32>
    %cst_48 = arith.constant 1.000000e+00 : f32
    %207 = vector.broadcast %cst_48 : f32 to vector<8x16xf32>
    %208 = arith.addf %207, %206 : vector<8x16xf32>
    %209 = arith.divf %207, %208 : vector<8x16xf32>
    %210 = arith.mulf %204, %209 : vector<8x16xf32>
    %211 = arith.subf %210, %200 : vector<8x16xf32>
    %212 = vector.extract_strided_slice %13 {offsets = [0, 7, 0], sizes = [8, 1, 64], strides = [1, 1, 1]} : vector<8x8x64xf32> to vector<8x1x64xf32>
    %213 = vector.shape_cast %212 : vector<8x1x64xf32> to vector<8x64xf32>
    %cst_49 = arith.constant dense<0.000000e+00> : vector<8x64xf32>
    %214 = tpu.matmul %211, %1, %cst_49 {dimension_numbers = #tpu.dot_dimension_numbers<[1], [0], [0], [1], [0, 0, 1, 1], [], []>} : vector<8x16xf32>, vector<16x64xf32>, vector<8x64xf32> -> vector<8x64xf32>
    %215 = arith.addf %213, %214 : vector<8x64xf32>
    %216 = arith.negf %215 : vector<8x64xf32>
    %217 = math.exp %216 : vector<8x64xf32>
    %cst_50 = arith.constant 1.000000e+00 : f32
    %218 = vector.broadcast %cst_50 : f32 to vector<8x64xf32>
    %219 = arith.addf %218, %217 : vector<8x64xf32>
    %220 = arith.divf %218, %219 : vector<8x64xf32>
    %221 = vector.extract_strided_slice %220 {offsets = [0, 0], sizes = [8, 16], strides = [1, 1]} : vector<8x64xf32> to vector<8x16xf32>
    %222 = vector.extract_strided_slice %220 {offsets = [0, 16], sizes = [8, 16], strides = [1, 1]} : vector<8x64xf32> to vector<8x16xf32>
    %223 = vector.extract_strided_slice %220 {offsets = [0, 32], sizes = [8, 16], strides = [1, 1]} : vector<8x64xf32> to vector<8x16xf32>
    %cst_51 = arith.constant 4.000000e+00 : f32
    %224 = vector.broadcast %cst_51 : f32 to vector<8x16xf32>
    %225 = arith.mulf %224, %223 : vector<8x16xf32>
    %cst_52 = arith.constant 2.000000e+00 : f32
    %226 = vector.broadcast %cst_52 : f32 to vector<8x16xf32>
    %227 = arith.subf %225, %226 : vector<8x16xf32>
    %228 = vector.extract_strided_slice %220 {offsets = [0, 48], sizes = [8, 16], strides = [1, 1]} : vector<8x64xf32> to vector<8x16xf32>
    %229 = arith.mulf %222, %203 : vector<8x16xf32>
    %230 = arith.mulf %221, %227 : vector<8x16xf32>
    %231 = arith.addf %229, %230 : vector<8x16xf32>
    %232 = arith.addf %228, %228 : vector<8x16xf32>
    %233 = arith.negf %231 : vector<8x16xf32>
    %234 = math.exp %233 : vector<8x16xf32>
    %cst_53 = arith.constant 1.000000e+00 : f32
    %235 = vector.broadcast %cst_53 : f32 to vector<8x16xf32>
    %236 = arith.addf %235, %234 : vector<8x16xf32>
    %237 = arith.divf %235, %236 : vector<8x16xf32>
    %238 = arith.mulf %232, %237 : vector<8x16xf32>
    %239 = arith.subf %238, %228 : vector<8x16xf32>
    %240 = tpu.concatenate %43, %71, %99, %127, %155, %183, %211, %239 in 1 : vector<8x16xf32>, vector<8x16xf32>, vector<8x16xf32>, vector<8x16xf32>, vector<8x16xf32>, vector<8x16xf32>, vector<8x16xf32>, vector<8x16xf32> -> vector<8x128xf32>
    %cst_54 = arith.constant dense<0.000000e+00> : vector<8x512xf32>
    %241 = tpu.matmul %240, %6, %cst_54 {dimension_numbers = #tpu.dot_dimension_numbers<[1], [0], [0], [1], [0, 0, 1, 1], [], []>} : vector<8x128xf32>, vector<128x512xf32>, vector<8x512xf32> -> vector<8x512xf32>
    %242 = vector.broadcast %7 : vector<1x512xf32> to vector<8x512xf32>
    %243 = arith.addf %241, %242 : vector<8x512xf32>
    %cst_55 = arith.constant 0.000000e+00 : f32
    %244 = vector.broadcast %cst_55 : f32 to vector<8x16xf32>
    %cst_56 = arith.constant 0.000000e+00 : f32
    %245 = vector.broadcast %cst_56 : f32 to vector<8x16xf32>
    %246 = vector.extract_strided_slice %243 {offsets = [0, 0], sizes = [8, 64], strides = [1, 1]} : vector<8x512xf32> to vector<8x64xf32>
    %cst_57 = arith.constant dense<0.000000e+00> : vector<8x64xf32>
    %247 = tpu.matmul %244, %3, %cst_57 {dimension_numbers = #tpu.dot_dimension_numbers<[1], [0], [0], [1], [0, 0, 1, 1], [], []>} : vector<8x16xf32>, vector<16x64xf32>, vector<8x64xf32> -> vector<8x64xf32>
    %248 = arith.addf %246, %247 : vector<8x64xf32>
    %249 = arith.negf %248 : vector<8x64xf32>
    %250 = math.exp %249 : vector<8x64xf32>
    %cst_58 = arith.constant 1.000000e+00 : f32
    %251 = vector.broadcast %cst_58 : f32 to vector<8x64xf32>
    %252 = arith.addf %251, %250 : vector<8x64xf32>
    %253 = arith.divf %251, %252 : vector<8x64xf32>
    %254 = vector.extract_strided_slice %253 {offsets = [0, 0], sizes = [8, 16], strides = [1, 1]} : vector<8x64xf32> to vector<8x16xf32>
    %255 = vector.extract_strided_slice %253 {offsets = [0, 16], sizes = [8, 16], strides = [1, 1]} : vector<8x64xf32> to vector<8x16xf32>
    %256 = vector.extract_strided_slice %253 {offsets = [0, 32], sizes = [8, 16], strides = [1, 1]} : vector<8x64xf32> to vector<8x16xf32>
    %cst_59 = arith.constant 4.000000e+00 : f32
    %257 = vector.broadcast %cst_59 : f32 to vector<8x16xf32>
    %258 = arith.mulf %257, %256 : vector<8x16xf32>
    %cst_60 = arith.constant 2.000000e+00 : f32
    %259 = vector.broadcast %cst_60 : f32 to vector<8x16xf32>
    %260 = arith.subf %258, %259 : vector<8x16xf32>
    %261 = vector.extract_strided_slice %253 {offsets = [0, 48], sizes = [8, 16], strides = [1, 1]} : vector<8x64xf32> to vector<8x16xf32>
    %262 = arith.mulf %255, %245 : vector<8x16xf32>
    %263 = arith.mulf %254, %260 : vector<8x16xf32>
    %264 = arith.addf %262, %263 : vector<8x16xf32>
    %265 = arith.addf %261, %261 : vector<8x16xf32>
    %266 = arith.negf %264 : vector<8x16xf32>
    %267 = math.exp %266 : vector<8x16xf32>
    %cst_61 = arith.constant 1.000000e+00 : f32
    %268 = vector.broadcast %cst_61 : f32 to vector<8x16xf32>
    %269 = arith.addf %268, %267 : vector<8x16xf32>
    %270 = arith.divf %268, %269 : vector<8x16xf32>
    %271 = arith.mulf %265, %270 : vector<8x16xf32>
    %272 = arith.subf %271, %261 : vector<8x16xf32>
    %273 = vector.extract_strided_slice %243 {offsets = [0, 64], sizes = [8, 64], strides = [1, 1]} : vector<8x512xf32> to vector<8x64xf32>
    %cst_62 = arith.constant dense<0.000000e+00> : vector<8x64xf32>
    %274 = tpu.matmul %272, %3, %cst_62 {dimension_numbers = #tpu.dot_dimension_numbers<[1], [0], [0], [1], [0, 0, 1, 1], [], []>} : vector<8x16xf32>, vector<16x64xf32>, vector<8x64xf32> -> vector<8x64xf32>
    %275 = arith.addf %273, %274 : vector<8x64xf32>
    %276 = arith.negf %275 : vector<8x64xf32>
    %277 = math.exp %276 : vector<8x64xf32>
    %cst_63 = arith.constant 1.000000e+00 : f32
    %278 = vector.broadcast %cst_63 : f32 to vector<8x64xf32>
    %279 = arith.addf %278, %277 : vector<8x64xf32>
    %280 = arith.divf %278, %279 : vector<8x64xf32>
    %281 = vector.extract_strided_slice %280 {offsets = [0, 0], sizes = [8, 16], strides = [1, 1]} : vector<8x64xf32> to vector<8x16xf32>
    %282 = vector.extract_strided_slice %280 {offsets = [0, 16], sizes = [8, 16], strides = [1, 1]} : vector<8x64xf32> to vector<8x16xf32>
    %283 = vector.extract_strided_slice %280 {offsets = [0, 32], sizes = [8, 16], strides = [1, 1]} : vector<8x64xf32> to vector<8x16xf32>
    %cst_64 = arith.constant 4.000000e+00 : f32
    %284 = vector.broadcast %cst_64 : f32 to vector<8x16xf32>
    %285 = arith.mulf %284, %283 : vector<8x16xf32>
    %cst_65 = arith.constant 2.000000e+00 : f32
    %286 = vector.broadcast %cst_65 : f32 to vector<8x16xf32>
    %287 = arith.subf %285, %286 : vector<8x16xf32>
    %288 = vector.extract_strided_slice %280 {offsets = [0, 48], sizes = [8, 16], strides = [1, 1]} : vector<8x64xf32> to vector<8x16xf32>
    %289 = arith.mulf %282, %264 : vector<8x16xf32>
    %290 = arith.mulf %281, %287 : vector<8x16xf32>
    %291 = arith.addf %289, %290 : vector<8x16xf32>
    %292 = arith.addf %288, %288 : vector<8x16xf32>
    %293 = arith.negf %291 : vector<8x16xf32>
    %294 = math.exp %293 : vector<8x16xf32>
    %cst_66 = arith.constant 1.000000e+00 : f32
    %295 = vector.broadcast %cst_66 : f32 to vector<8x16xf32>
    %296 = arith.addf %295, %294 : vector<8x16xf32>
    %297 = arith.divf %295, %296 : vector<8x16xf32>
    %298 = arith.mulf %292, %297 : vector<8x16xf32>
    %299 = arith.subf %298, %288 : vector<8x16xf32>
    %300 = vector.extract_strided_slice %243 {offsets = [0, 128], sizes = [8, 64], strides = [1, 1]} : vector<8x512xf32> to vector<8x64xf32>
    %cst_67 = arith.constant dense<0.000000e+00> : vector<8x64xf32>
    %301 = tpu.matmul %299, %3, %cst_67 {dimension_numbers = #tpu.dot_dimension_numbers<[1], [0], [0], [1], [0, 0, 1, 1], [], []>} : vector<8x16xf32>, vector<16x64xf32>, vector<8x64xf32> -> vector<8x64xf32>
    %302 = arith.addf %300, %301 : vector<8x64xf32>
    %303 = arith.negf %302 : vector<8x64xf32>
    %304 = math.exp %303 : vector<8x64xf32>
    %cst_68 = arith.constant 1.000000e+00 : f32
    %305 = vector.broadcast %cst_68 : f32 to vector<8x64xf32>
    %306 = arith.addf %305, %304 : vector<8x64xf32>
    %307 = arith.divf %305, %306 : vector<8x64xf32>
    %308 = vector.extract_strided_slice %307 {offsets = [0, 0], sizes = [8, 16], strides = [1, 1]} : vector<8x64xf32> to vector<8x16xf32>
    %309 = vector.extract_strided_slice %307 {offsets = [0, 16], sizes = [8, 16], strides = [1, 1]} : vector<8x64xf32> to vector<8x16xf32>
    %310 = vector.extract_strided_slice %307 {offsets = [0, 32], sizes = [8, 16], strides = [1, 1]} : vector<8x64xf32> to vector<8x16xf32>
    %cst_69 = arith.constant 4.000000e+00 : f32
    %311 = vector.broadcast %cst_69 : f32 to vector<8x16xf32>
    %312 = arith.mulf %311, %310 : vector<8x16xf32>
    %cst_70 = arith.constant 2.000000e+00 : f32
    %313 = vector.broadcast %cst_70 : f32 to vector<8x16xf32>
    %314 = arith.subf %312, %313 : vector<8x16xf32>
    %315 = vector.extract_strided_slice %307 {offsets = [0, 48], sizes = [8, 16], strides = [1, 1]} : vector<8x64xf32> to vector<8x16xf32>
    %316 = arith.mulf %309, %291 : vector<8x16xf32>
    %317 = arith.mulf %308, %314 : vector<8x16xf32>
    %318 = arith.addf %316, %317 : vector<8x16xf32>
    %319 = arith.addf %315, %315 : vector<8x16xf32>
    %320 = arith.negf %318 : vector<8x16xf32>
    %321 = math.exp %320 : vector<8x16xf32>
    %cst_71 = arith.constant 1.000000e+00 : f32
    %322 = vector.broadcast %cst_71 : f32 to vector<8x16xf32>
    %323 = arith.addf %322, %321 : vector<8x16xf32>
    %324 = arith.divf %322, %323 : vector<8x16xf32>
    %325 = arith.mulf %319, %324 : vector<8x16xf32>
    %326 = arith.subf %325, %315 : vector<8x16xf32>
    %327 = vector.extract_strided_slice %243 {offsets = [0, 192], sizes = [8, 64], strides = [1, 1]} : vector<8x512xf32> to vector<8x64xf32>
    %cst_72 = arith.constant dense<0.000000e+00> : vector<8x64xf32>
    %328 = tpu.matmul %326, %3, %cst_72 {dimension_numbers = #tpu.dot_dimension_numbers<[1], [0], [0], [1], [0, 0, 1, 1], [], []>} : vector<8x16xf32>, vector<16x64xf32>, vector<8x64xf32> -> vector<8x64xf32>
    %329 = arith.addf %327, %328 : vector<8x64xf32>
    %330 = arith.negf %329 : vector<8x64xf32>
    %331 = math.exp %330 : vector<8x64xf32>
    %cst_73 = arith.constant 1.000000e+00 : f32
    %332 = vector.broadcast %cst_73 : f32 to vector<8x64xf32>
    %333 = arith.addf %332, %331 : vector<8x64xf32>
    %334 = arith.divf %332, %333 : vector<8x64xf32>
    %335 = vector.extract_strided_slice %334 {offsets = [0, 0], sizes = [8, 16], strides = [1, 1]} : vector<8x64xf32> to vector<8x16xf32>
    %336 = vector.extract_strided_slice %334 {offsets = [0, 16], sizes = [8, 16], strides = [1, 1]} : vector<8x64xf32> to vector<8x16xf32>
    %337 = vector.extract_strided_slice %334 {offsets = [0, 32], sizes = [8, 16], strides = [1, 1]} : vector<8x64xf32> to vector<8x16xf32>
    %cst_74 = arith.constant 4.000000e+00 : f32
    %338 = vector.broadcast %cst_74 : f32 to vector<8x16xf32>
    %339 = arith.mulf %338, %337 : vector<8x16xf32>
    %cst_75 = arith.constant 2.000000e+00 : f32
    %340 = vector.broadcast %cst_75 : f32 to vector<8x16xf32>
    %341 = arith.subf %339, %340 : vector<8x16xf32>
    %342 = vector.extract_strided_slice %334 {offsets = [0, 48], sizes = [8, 16], strides = [1, 1]} : vector<8x64xf32> to vector<8x16xf32>
    %343 = arith.mulf %336, %318 : vector<8x16xf32>
    %344 = arith.mulf %335, %341 : vector<8x16xf32>
    %345 = arith.addf %343, %344 : vector<8x16xf32>
    %346 = arith.addf %342, %342 : vector<8x16xf32>
    %347 = arith.negf %345 : vector<8x16xf32>
    %348 = math.exp %347 : vector<8x16xf32>
    %cst_76 = arith.constant 1.000000e+00 : f32
    %349 = vector.broadcast %cst_76 : f32 to vector<8x16xf32>
    %350 = arith.addf %349, %348 : vector<8x16xf32>
    %351 = arith.divf %349, %350 : vector<8x16xf32>
    %352 = arith.mulf %346, %351 : vector<8x16xf32>
    %353 = arith.subf %352, %342 : vector<8x16xf32>
    %354 = vector.extract_strided_slice %243 {offsets = [0, 256], sizes = [8, 64], strides = [1, 1]} : vector<8x512xf32> to vector<8x64xf32>
    %cst_77 = arith.constant dense<0.000000e+00> : vector<8x64xf32>
    %355 = tpu.matmul %353, %3, %cst_77 {dimension_numbers = #tpu.dot_dimension_numbers<[1], [0], [0], [1], [0, 0, 1, 1], [], []>} : vector<8x16xf32>, vector<16x64xf32>, vector<8x64xf32> -> vector<8x64xf32>
    %356 = arith.addf %354, %355 : vector<8x64xf32>
    %357 = arith.negf %356 : vector<8x64xf32>
    %358 = math.exp %357 : vector<8x64xf32>
    %cst_78 = arith.constant 1.000000e+00 : f32
    %359 = vector.broadcast %cst_78 : f32 to vector<8x64xf32>
    %360 = arith.addf %359, %358 : vector<8x64xf32>
    %361 = arith.divf %359, %360 : vector<8x64xf32>
    %362 = vector.extract_strided_slice %361 {offsets = [0, 0], sizes = [8, 16], strides = [1, 1]} : vector<8x64xf32> to vector<8x16xf32>
    %363 = vector.extract_strided_slice %361 {offsets = [0, 16], sizes = [8, 16], strides = [1, 1]} : vector<8x64xf32> to vector<8x16xf32>
    %364 = vector.extract_strided_slice %361 {offsets = [0, 32], sizes = [8, 16], strides = [1, 1]} : vector<8x64xf32> to vector<8x16xf32>
    %cst_79 = arith.constant 4.000000e+00 : f32
    %365 = vector.broadcast %cst_79 : f32 to vector<8x16xf32>
    %366 = arith.mulf %365, %364 : vector<8x16xf32>
    %cst_80 = arith.constant 2.000000e+00 : f32
    %367 = vector.broadcast %cst_80 : f32 to vector<8x16xf32>
    %368 = arith.subf %366, %367 : vector<8x16xf32>
    %369 = vector.extract_strided_slice %361 {offsets = [0, 48], sizes = [8, 16], strides = [1, 1]} : vector<8x64xf32> to vector<8x16xf32>
    %370 = arith.mulf %363, %345 : vector<8x16xf32>
    %371 = arith.mulf %362, %368 : vector<8x16xf32>
    %372 = arith.addf %370, %371 : vector<8x16xf32>
    %373 = arith.addf %369, %369 : vector<8x16xf32>
    %374 = arith.negf %372 : vector<8x16xf32>
    %375 = math.exp %374 : vector<8x16xf32>
    %cst_81 = arith.constant 1.000000e+00 : f32
    %376 = vector.broadcast %cst_81 : f32 to vector<8x16xf32>
    %377 = arith.addf %376, %375 : vector<8x16xf32>
    %378 = arith.divf %376, %377 : vector<8x16xf32>
    %379 = arith.mulf %373, %378 : vector<8x16xf32>
    %380 = arith.subf %379, %369 : vector<8x16xf32>
    %381 = vector.extract_strided_slice %243 {offsets = [0, 320], sizes = [8, 64], strides = [1, 1]} : vector<8x512xf32> to vector<8x64xf32>
    %cst_82 = arith.constant dense<0.000000e+00> : vector<8x64xf32>
    %382 = tpu.matmul %380, %3, %cst_82 {dimension_numbers = #tpu.dot_dimension_numbers<[1], [0], [0], [1], [0, 0, 1, 1], [], []>} : vector<8x16xf32>, vector<16x64xf32>, vector<8x64xf32> -> vector<8x64xf32>
    %383 = arith.addf %381, %382 : vector<8x64xf32>
    %384 = arith.negf %383 : vector<8x64xf32>
    %385 = math.exp %384 : vector<8x64xf32>
    %cst_83 = arith.constant 1.000000e+00 : f32
    %386 = vector.broadcast %cst_83 : f32 to vector<8x64xf32>
    %387 = arith.addf %386, %385 : vector<8x64xf32>
    %388 = arith.divf %386, %387 : vector<8x64xf32>
    %389 = vector.extract_strided_slice %388 {offsets = [0, 0], sizes = [8, 16], strides = [1, 1]} : vector<8x64xf32> to vector<8x16xf32>
    %390 = vector.extract_strided_slice %388 {offsets = [0, 16], sizes = [8, 16], strides = [1, 1]} : vector<8x64xf32> to vector<8x16xf32>
    %391 = vector.extract_strided_slice %388 {offsets = [0, 32], sizes = [8, 16], strides = [1, 1]} : vector<8x64xf32> to vector<8x16xf32>
    %cst_84 = arith.constant 4.000000e+00 : f32
    %392 = vector.broadcast %cst_84 : f32 to vector<8x16xf32>
    %393 = arith.mulf %392, %391 : vector<8x16xf32>
    %cst_85 = arith.constant 2.000000e+00 : f32
    %394 = vector.broadcast %cst_85 : f32 to vector<8x16xf32>
    %395 = arith.subf %393, %394 : vector<8x16xf32>
    %396 = vector.extract_strided_slice %388 {offsets = [0, 48], sizes = [8, 16], strides = [1, 1]} : vector<8x64xf32> to vector<8x16xf32>
    %397 = arith.mulf %390, %372 : vector<8x16xf32>
    %398 = arith.mulf %389, %395 : vector<8x16xf32>
    %399 = arith.addf %397, %398 : vector<8x16xf32>
    %400 = arith.addf %396, %396 : vector<8x16xf32>
    %401 = arith.negf %399 : vector<8x16xf32>
    %402 = math.exp %401 : vector<8x16xf32>
    %cst_86 = arith.constant 1.000000e+00 : f32
    %403 = vector.broadcast %cst_86 : f32 to vector<8x16xf32>
    %404 = arith.addf %403, %402 : vector<8x16xf32>
    %405 = arith.divf %403, %404 : vector<8x16xf32>
    %406 = arith.mulf %400, %405 : vector<8x16xf32>
    %407 = arith.subf %406, %396 : vector<8x16xf32>
    %408 = vector.extract_strided_slice %243 {offsets = [0, 384], sizes = [8, 64], strides = [1, 1]} : vector<8x512xf32> to vector<8x64xf32>
    %cst_87 = arith.constant dense<0.000000e+00> : vector<8x64xf32>
    %409 = tpu.matmul %407, %3, %cst_87 {dimension_numbers = #tpu.dot_dimension_numbers<[1], [0], [0], [1], [0, 0, 1, 1], [], []>} : vector<8x16xf32>, vector<16x64xf32>, vector<8x64xf32> -> vector<8x64xf32>
    %410 = arith.addf %408, %409 : vector<8x64xf32>
    %411 = arith.negf %410 : vector<8x64xf32>
    %412 = math.exp %411 : vector<8x64xf32>
    %cst_88 = arith.constant 1.000000e+00 : f32
    %413 = vector.broadcast %cst_88 : f32 to vector<8x64xf32>
    %414 = arith.addf %413, %412 : vector<8x64xf32>
    %415 = arith.divf %413, %414 : vector<8x64xf32>
    %416 = vector.extract_strided_slice %415 {offsets = [0, 0], sizes = [8, 16], strides = [1, 1]} : vector<8x64xf32> to vector<8x16xf32>
    %417 = vector.extract_strided_slice %415 {offsets = [0, 16], sizes = [8, 16], strides = [1, 1]} : vector<8x64xf32> to vector<8x16xf32>
    %418 = vector.extract_strided_slice %415 {offsets = [0, 32], sizes = [8, 16], strides = [1, 1]} : vector<8x64xf32> to vector<8x16xf32>
    %cst_89 = arith.constant 4.000000e+00 : f32
    %419 = vector.broadcast %cst_89 : f32 to vector<8x16xf32>
    %420 = arith.mulf %419, %418 : vector<8x16xf32>
    %cst_90 = arith.constant 2.000000e+00 : f32
    %421 = vector.broadcast %cst_90 : f32 to vector<8x16xf32>
    %422 = arith.subf %420, %421 : vector<8x16xf32>
    %423 = vector.extract_strided_slice %415 {offsets = [0, 48], sizes = [8, 16], strides = [1, 1]} : vector<8x64xf32> to vector<8x16xf32>
    %424 = arith.mulf %417, %399 : vector<8x16xf32>
    %425 = arith.mulf %416, %422 : vector<8x16xf32>
    %426 = arith.addf %424, %425 : vector<8x16xf32>
    %427 = arith.addf %423, %423 : vector<8x16xf32>
    %428 = arith.negf %426 : vector<8x16xf32>
    %429 = math.exp %428 : vector<8x16xf32>
    %cst_91 = arith.constant 1.000000e+00 : f32
    %430 = vector.broadcast %cst_91 : f32 to vector<8x16xf32>
    %431 = arith.addf %430, %429 : vector<8x16xf32>
    %432 = arith.divf %430, %431 : vector<8x16xf32>
    %433 = arith.mulf %427, %432 : vector<8x16xf32>
    %434 = arith.subf %433, %423 : vector<8x16xf32>
    %435 = vector.extract_strided_slice %243 {offsets = [0, 448], sizes = [8, 64], strides = [1, 1]} : vector<8x512xf32> to vector<8x64xf32>
    %cst_92 = arith.constant dense<0.000000e+00> : vector<8x64xf32>
    %436 = tpu.matmul %434, %3, %cst_92 {dimension_numbers = #tpu.dot_dimension_numbers<[1], [0], [0], [1], [0, 0, 1, 1], [], []>} : vector<8x16xf32>, vector<16x64xf32>, vector<8x64xf32> -> vector<8x64xf32>
    %437 = arith.addf %435, %436 : vector<8x64xf32>
    %438 = arith.negf %437 : vector<8x64xf32>
    %439 = math.exp %438 : vector<8x64xf32>
    %cst_93 = arith.constant 1.000000e+00 : f32
    %440 = vector.broadcast %cst_93 : f32 to vector<8x64xf32>
    %441 = arith.addf %440, %439 : vector<8x64xf32>
    %442 = arith.divf %440, %441 : vector<8x64xf32>
    %443 = vector.extract_strided_slice %442 {offsets = [0, 0], sizes = [8, 16], strides = [1, 1]} : vector<8x64xf32> to vector<8x16xf32>
    %444 = vector.extract_strided_slice %442 {offsets = [0, 16], sizes = [8, 16], strides = [1, 1]} : vector<8x64xf32> to vector<8x16xf32>
    %445 = vector.extract_strided_slice %442 {offsets = [0, 32], sizes = [8, 16], strides = [1, 1]} : vector<8x64xf32> to vector<8x16xf32>
    %cst_94 = arith.constant 4.000000e+00 : f32
    %446 = vector.broadcast %cst_94 : f32 to vector<8x16xf32>
    %447 = arith.mulf %446, %445 : vector<8x16xf32>
    %cst_95 = arith.constant 2.000000e+00 : f32
    %448 = vector.broadcast %cst_95 : f32 to vector<8x16xf32>
    %449 = arith.subf %447, %448 : vector<8x16xf32>
    %450 = vector.extract_strided_slice %442 {offsets = [0, 48], sizes = [8, 16], strides = [1, 1]} : vector<8x64xf32> to vector<8x16xf32>
    %451 = arith.mulf %444, %426 : vector<8x16xf32>
    %452 = arith.mulf %443, %449 : vector<8x16xf32>
    %453 = arith.addf %451, %452 : vector<8x16xf32>
    %454 = arith.addf %450, %450 : vector<8x16xf32>
    %455 = arith.negf %453 : vector<8x16xf32>
    %456 = math.exp %455 : vector<8x16xf32>
    %cst_96 = arith.constant 1.000000e+00 : f32
    %457 = vector.broadcast %cst_96 : f32 to vector<8x16xf32>
    %458 = arith.addf %457, %456 : vector<8x16xf32>
    %459 = arith.divf %457, %458 : vector<8x16xf32>
    %460 = arith.mulf %454, %459 : vector<8x16xf32>
    %461 = arith.subf %460, %450 : vector<8x16xf32>
    %cst_97 = arith.constant dense<0.000000e+00> : vector<8x64xf32>
    %462 = tpu.matmul %461, %4, %cst_97 {dimension_numbers = #tpu.dot_dimension_numbers<[1], [0], [0], [1], [0, 0, 1, 1], [], []>} : vector<8x16xf32>, vector<16x64xf32>, vector<8x64xf32> -> vector<8x64xf32>
    %463 = vector.broadcast %5 : vector<1x64xf32> to vector<8x64xf32>
    %464 = arith.addf %462, %463 : vector<8x64xf32>
    %465 = vector.extract_strided_slice %464 {offsets = [0, 0], sizes = [8, 1], strides = [1, 1]} : vector<8x64xf32> to vector<8x1xf32>
    %c0_98 = arith.constant 0 : index
    %c0_99 = arith.constant 0 : index
    %466 = vector.load %arg3[%c0_98, %c0_99] : memref<8x1xf32, #tpu.memory_space<vmem>>, vector<8x1xf32>
    tpu.vector_store %arg3[%c0_98, %c0_99], %465 {strides = array<i32>} : memref<8x1xf32, #tpu.memory_space<vmem>>, vector<8x1xf32>,
    return
  }
}

</mosaic_0001>

<bundles_post_ra>
// kernel: lstm_forward.1
= control target key start
LH: loop header
LB: loop body
LE: loop exit
PB: predicated region body
PF: predicated region fallthrough
CT: control target
= control target key end

     0   :  { %8 = vsyncpa [#allocation3], 0  ;;  %s5660_s12 = smov [#allocation2]   ;;  %s7066_s0 = inlined_call_operand.vmem [shape: f32[8,8,8], index: 0, kind: input, shape index: {}]   ;;  %s7067_s1 = inlined_call_operand.vmem [shape: f32[58,64], index: 1, kind: input, shape index: {}]   ;;  %s7068_s2 = inlined_call_operand.hbm [shape: f32[129,512], index: 2, kind: input, shape index: {}]   ;;  %s7069_s3 = inlined_call_operand.vmem [shape: f32[8,1], index: 3, kind: output, shape index: {}]  }
   0x1   :  { %s18_s13 = sshll.u32 %s5660_s12, 4  ;;  %s19_s13 = int_to_ptr.vmem [resolvable:$true] %s18_s13 }
   0x2   :  { %s5646_s14 = scalar_lea.vmem %s19_s13, 8704  ;;  %p5651_p1 = scmp.lt.s32.totalorder %s19_s13, %s19_s13 }
   0x3   :  { %p5647_p0 = scmp.ne.s32.totalorder %s19_s13, %s5646_s14  ;;  %p5652_p2 = scmp.lt.s32.totalorder %s5646_s14, %s5646_s14 }
   0x5   :  { %p5653_p3 = por %p5652_p2, %p5651_p1 }
   0x7   :  { %p5654_p4 = pnand %p5653_p3, %p5647_p0 }
   0x9   :  { %5657 = shalt.err (!%p5654_p4)
}
   0xa   :  { %s5661_s15 = smov 512   ;;  %s5662_s16 = smov 32  }
   0xb   :  { %24 = dma.hbm_to_vmem [thread:$0]  %s7068_s2, 8704, %s19_s13, [#allocation3], %s5661_s15, %s5661_s15, %s5662_s16  }
   0xc   :  { %5658 = dma.done.wait [#allocation3], 8704  }
   0xd   :  { %5659 = vsyncadd [#allocation3], 4294958592  ;;  %v5663_v0 = vmov 0.0   ;;  %vm5664_vm0 = vmmov 0   ;;  %vm115_vm1 = vcmask 64512   ;;  %v28_v1 = vld [vmem:[%s7067_s1] sm:$0xff] }
   0xe   :  { %4928 = vmatprep.subr.mxu1 %v5663_v0  ;;  %4932 = vmatprep.mubr.msk.f32.mxu1 %vm5664_vm0, %v5663_v0  ;;  %v5704_v2 = vld [vmem:[%s7067_s1 + $0x10] sm:$0xff]  ;;  %v103_v3 = vld [vmem:[%s7066_s0] sm:$0xff]  ;;  %v104_v4 = vld [vmem:[%s7066_s0 + $0x8] sm:$0xff]  ;;  %s5666_s15 = smov 16   ;;  %vm608_vm2 = vcmask 1041409   ;;  %vm611_vm3 = vcmask 1042434  }
   0xf   :  { %4914 = vmatprep.subr.mxu0 %v28_v1  ;;  %4929 = vmatpush3.msra.mxu1 %v5704_v2  ;;  %v5716_v5 = vld [vmem:[%s7067_s1 + $0x8] sm:$0xff]  ;;  %v105_v6 = vld [vmem:[%s7066_s0 + $0x10] sm:$0xff]  ;;  %v106_v7 = vld [vmem:[%s7066_s0 + $0x18] sm:$0xff]  ;;  %vm614_vm4 = vcmask 1043459   ;;  %vm617_vm5 = vcmask 1044484   ;;  %vm620_vm6 = vcmask 1045509  }
  0x10   :  { %4915 = vmatpush3.msra.mxu0 %v28_v1  ;;  %4916 = vmatprep.mubr.msk.f32.mxu0 %vm115_vm1, %v103_v3  ;;  %v107_v8 = vld [vmem:[%s7066_s0 + $0x20] sm:$0xff]  ;;  %v108_v9 = vld [vmem:[%s7066_s0 + $0x28] sm:$0xff]  ;;  %v109_v10 = vld [vmem:[%s7066_s0 + $0x30] sm:$0xff]  ;;  %vm623_vm7 = vcmask 1046534   ;;  %vm626_vm8 = vcmask 1047559   ;;  %s5667_s17 = smov 80  }
  0x11   :  { %4930 = vmatprep.subr.mxu1 %v5663_v0  ;;  %4917 = vmatmul.mubr.msk.f32.vlgmr.msra.gmra.mxu0 %vm115_vm1, %v104_v4  ;;  %v110_v11 = vld [vmem:[%s7066_s0 + $0x38] sm:$0xff]  ;;  %s5665_s0 = smov 96   ;;  %vm245_vm9 = vcmask 130048   ;;  %s5668_s25 = smov 112   ;;  %vm3449_vm10 = vcmask 261120   ;;  %vm3451_vm11 = vcmask 392192  }
  0x12   :  { %4931 = vmatpush3.msra.mxu1 %v5716_v5  ;;  %4919 = vmatprep.mubr.msk.f32.mxu0 %vm115_vm1, %v105_v6  ;;  %v4613_v12 = vld [vmem:[%s7067_s1 + $0x18] ss:$0 sm:$0xff]  ;;  %s5669_s26 = smov 48   ;;  %s5670_s27 = smov 64   ;;  %vm3453_vm12 = vcmask 523264   ;;  %vm3455_vm13 = vcmask 654336  }
  0x13   :  { %4933 = vmatmul.mubr.f32.vlgmr.msra.gmra.mxu1 %v5663_v0  ;;  %4935 = vmatprep.subr.mxu1 %v5663_v0  ;;  %vm3457_vm14 = vcmask 785408   ;;  %vm3459_vm15 = vcmask 916480  }
  0x14   :  { %4936 = vmatpush3.msra.mxu1 %v5704_v2  ;;  %4939 = vmatprep.mubr.msk.f32.mxu1 %vm5664_vm0, %v5663_v0 }
  0x15   :  { %4920 = vmatmul.mubr.msk.f32.gmra.mxu0 %vm115_vm1, %v106_v7  ;;  %4937 = vmatprep.subr.mxu1 %v5663_v0 }
  0x16   :  { %4922 = vmatprep.mubr.msk.f32.mxu0 %vm115_vm1, %v107_v8  ;;  %4938 = vmatpush3.msra.mxu1 %v5716_v5 }
  0x17   :  { %4942 = vmatprep.subr.mxu1 %v5663_v0  ;;  %4956 = vmatprep.subr.mxu0 %v5663_v0 }
  0x18   :  { %4957 = vmatpush3.msra.mxu0 %v5704_v2 }
  0x19   :  { %4923 = vmatmul.mubr.msk.f32.gmra.mxu0 %vm115_vm1, %v108_v9  ;;  %4958 = vmatprep.subr.mxu0 %v5663_v0 }
  0x1a   :  { %4925 = vmatprep.mubr.msk.f32.mxu0 %vm115_vm1, %v109_v10  ;;  %4959 = vmatpush3.msra.mxu0 %v5716_v5 }
  0x1b   :  { %4970 = vmatprep.subr.mxu0 %v5663_v0 }
  0x1d   :  { %4926 = vmatmul.mubr.msk.f32.gmra.mxu0 %vm115_vm1, %v110_v11 }
  0x1e   :  { %4960 = vmatprep.mubr.msk.f32.mxu0 %vm5664_vm0, %v5663_v0 }
  0xd1   :  { %v4918_v13 = vpop.f32.mrf.mxu0 }
  0xd2   :  { %v5764_v14 = vadd.f32 %v4918_v13, %v4613_v12 }
  0xd3   :  { %v315_v15 = vpop.f32.mrf.mxu1  ;;  %v206_v16 = vpop.f32.mrf.mxu0 }
  0xd4   :  { %v320_v17 = vrot.slane %v315_v15, 1  ;;  %v322_v18 = vrot.slane %v315_v15, 3  ;;  %v5766_v19 = vadd.f32 %v4613_v12, %v206_v16  ;;  %v321_v26 = vrot.slane %v315_v15, 2 }
  0xd5   :  { %v4921_v20 = vpop.f32.mrf.mxu0  ;;  %v4934_v21 = vpop.f32.mrf.mxu1  ;;  %v324_v30 = vrot.slane %v315_v15, 5  ;;  %v323_v36 = vrot.slane %v315_v15, 4  ;;  %v326_v41 = vrot.slane %v315_v15, 7  ;;  %v325_v46 = vrot.slane %v315_v15, 6 }
  0xd6   :  { %v336_v22 = vadd.f32 %v320_v17, %v5764_v14  ;;  %v5769_v23 = vadd.f32 %v4921_v20, %v4613_v12  ;;  %v335_v24 = vadd.f32 %v315_v15, %v5766_v19 }
  0xd7   :  { %v216_v25 = vpop.f32.mrf.mxu0 }
  0xd8   :  { %v4623_v27 = vmul.f32 -1.442695, %v336_v22  ;;  %v338_v28 = vadd.f32 %v322_v18, %v5769_v23  ;;  %v5773_v29 = vadd.f32 %v4613_v12, %v216_v25  ;;  %v4622_v31 = vmul.f32 -1.442695, %v335_v24 }
  0xd9   :  { %v4924_v32 = vpop.f32.mrf.mxu0 }
  0xda   :  { %5058 = vpow2.f32 %v4623_v27  ;;  %v4625_v33 = vmul.f32 -1.442695, %v338_v28  ;;  %v337_v34 = vadd.f32 %v321_v26, %v5773_v29  ;;  %v5776_v35 = vadd.f32 %v4924_v32, %v4613_v12 }
  0xdb   :  { %5060 = vpow2.f32 %v4622_v31  ;;  %v226_v37 = vpop.f32.mrf.mxu0 }
  0xdc   :  { %5062 = vpow2.f32 %v4625_v33  ;;  %v4624_v38 = vmul.f32 -1.442695, %v337_v34  ;;  %v340_v39 = vadd.f32 %v324_v30, %v5776_v35  ;;  %v5779_v40 = vadd.f32 %v4613_v12, %v226_v37 }
  0xdd   :  { %v4927_v42 = vpop.f32.mrf.mxu0 }
  0xde   :  { %5064 = vpow2.f32 %v4624_v38  ;;  %v4627_v43 = vmul.f32 -1.442695, %v340_v39  ;;  %v339_v44 = vadd.f32 %v323_v36, %v5779_v40  ;;  %v5782_v45 = vadd.f32 %v4927_v42, %v4613_v12 }
  0xdf   :  { %v236_v47 = vpop.f32.mrf.mxu0 }
  0xe0   :  { %5066 = vpow2.f32 %v4627_v43  ;;  %v4626_v48 = vmul.f32 -1.442695, %v339_v44  ;;  %v342_v49 = vadd.f32 %v326_v41, %v5782_v45  ;;  %v5785_v50 = vadd.f32 %v4613_v12, %v236_v47 }
  0xe2   :  { %5068 = vpow2.f32 %v4626_v48  ;;  %v4629_v51 = vmul.f32 -1.442695, %v342_v49  ;;  %v341_v52 = vadd.f32 %v325_v46, %v5785_v50 }
  0xe4   :  { %5070 = vpow2.f32 %v4629_v51  ;;  %v4628_v53 = vmul.f32 -1.442695, %v341_v52 }
  0xe6   :  { %5072 = vpow2.f32 %v4628_v53 }
  0xe7   :  { %v5059_v54 = vpop.eup %5058 }
  0xe8   :  { %v5061_v55 = vpop.eup %5060  ;;  %v368_v56 = vadd.f32 1.0, %v5059_v54 }
  0xe9   :  { %v5063_v57 = vpop.eup %5062  ;;  %v367_v58 = vadd.f32 1.0, %v5061_v55 }
  0xea   :  { %5074 = vrcp.f32 %v368_v56  ;;  %v370_v59 = vadd.f32 1.0, %v5063_v57 }
  0xeb   :  { %v5065_v60 = vpop.eup %5064  ;;  %5076 = vrcp.f32 %v367_v58 }
  0xec   :  { %5078 = vrcp.f32 %v370_v59  ;;  %v369_v61 = vadd.f32 1.0, %v5065_v60 }
  0xed   :  { %v5067_v62 = vpop.eup %5066 }
  0xee   :  { %5080 = vrcp.f32 %v369_v61  ;;  %v372_v63 = vadd.f32 1.0, %v5067_v62 }
  0xef   :  { %v5069_v1 = vpop.eup %5068 }
  0xf0   :  { %5082 = vrcp.f32 %v372_v63  ;;  %v371_v3 = vadd.f32 1.0, %v5069_v1 }
  0xf1   :  { %v5071_v4 = vpop.eup %5070 }
  0xf2   :  { %5084 = vrcp.f32 %v371_v3  ;;  %v374_v6 = vadd.f32 1.0, %v5071_v4 }
  0xf3   :  { %v5073_v7 = vpop.eup %5072 }
  0xf4   :  { %5086 = vrcp.f32 %v374_v6  ;;  %v373_v8 = vadd.f32 1.0, %v5073_v7 }
  0xf6   :  { %5088 = vrcp.f32 %v373_v8 }
  0xf7   :  { %v5788_v9 = vpop.eup %5074 }
  0xf8   :  { %v5790_v10 = vpop.eup %5076  ;;  %v392_v11 = vmul.f32 4.0, %v5788_v9  ;;  %v408_v57 = vmul.f32 0.0, %v5788_v9 }
  0xf9   :  { %v5793_v12 = vpop.eup %5078  ;;  %v391_v13 = vmul.f32 4.0, %v5790_v10  ;;  %v407_v61 = vmul.f32 0.0, %v5790_v10 }
  0xfa   :  { %v4631_v15 = vadd.f32 -2.0, %v392_v11  ;;  %v394_v18 = vmul.f32 4.0, %v5793_v12  ;;  %v410_v63 = vmul.f32 0.0, %v5793_v12 }
  0xfb   :  { %v5796_v16 = vpop.eup %5080  ;;  %v4630_v17 = vadd.f32 -2.0, %v391_v13 }
  0xfc   :  { %425 = vrot.lane.b32.xlu0 %v4631_v15, %s5665_s0  ;;  %v393_v20 = vmul.f32 4.0, %v5796_v16  ;;  %v4633_v25 = vadd.f32 -2.0, %v394_v18  ;;  %v409_v13 = vmul.f32 0.0, %v5796_v16 }
  0xfd   :  { %v5801_v21 = vpop.eup %5082  ;;  %423 = vrot.lane.b32.xlu1 %v4630_v17, %s5665_s0 }
  0xfe   :  { %v4632_v22 = vadd.f32 -2.0, %v393_v20  ;;  %v396_v26 = vmul.f32 4.0, %v5801_v21 }
  0xff   :  { %v5804_v24 = vpop.eup %5084 }
 0x100   :  { %427 = vrot.lane.b32.xlu0 %v4632_v22, %s5665_s0  ;;  %v395_v27 = vmul.f32 4.0, %v5804_v24  ;;  %v4635_v32 = vadd.f32 -2.0, %v396_v26  ;;  %v411_v7 = vmul.f32 0.0, %v5804_v24 }
 0x101   :  { %v5809_v28 = vpop.eup %5086  ;;  %429 = vrot.lane.b32.xlu1 %v4633_v25, %s5665_s0 }
 0x102   :  { %v4634_v30 = vadd.f32 -2.0, %v395_v27  ;;  %v398_v33 = vmul.f32 4.0, %v5809_v28  ;;  %v412_v27 = vmul.f32 0.0, %v5801_v21 }
 0x103   :  { %v5812_v31 = vpop.eup %5088 }
 0x104   :  { %431 = vrot.lane.b32.xlu0 %v4634_v30, %s5665_s0  ;;  %v397_v34 = vmul.f32 4.0, %v5812_v31  ;;  %v4637_v37 = vadd.f32 -2.0, %v398_v33  ;;  %v413_v22 = vmul.f32 0.0, %v5812_v31 }
 0x105   :  { %433 = vrot.lane.b32.xlu1 %v4635_v32, %s5665_s0 }
 0x106   :  { %v4636_v36 = vadd.f32 -2.0, %v397_v34 }
 0x108   :  { %435 = vrot.lane.b32.xlu0 %v4636_v36, %s5665_s0 }
 0x109   :  { %437 = vrot.lane.b32.xlu1 %v4637_v37, %s5665_s0  ;;  %v414_v37 = vmul.f32 0.0, %v5809_v28 }
 0x16e   :  { %v426_v38 = vpop.permute.xlu0 %425 }
 0x16f   :  { %v448_v39 = vmul.f32 %v5788_v9, %v426_v38  ;;  %v424_v41 = vpop.permute.xlu1 %423 }
 0x170   :  { %v447_v43 = vmul.f32 %v5790_v10, %v424_v41 }
 0x171   :  { %465 = vrot.lane.b32.xlu0 %v448_v39, %s5666_s15 }
 0x172   :  { %v428_v42 = vpop.permute.xlu0 %427 }
 0x173   :  { %v430_v44 = vpop.permute.xlu1 %429  ;;  %v449_v51 = vmul.f32 %v5796_v16, %v428_v42 }
 0x174   :  { %v450_v46 = vmul.f32 %v5793_v12, %v430_v44 }
 0x175   :  { %463 = vrot.lane.b32.xlu0 %v447_v43, %s5666_s15 }
 0x176   :  { %469 = vrot.lane.b32.xlu1 %v450_v46, %s5666_s15  ;;  %v432_v47 = vpop.permute.xlu0 %431 }
 0x177   :  { %v451_v48 = vmul.f32 %v5804_v24, %v432_v47  ;;  %v434_v49 = vpop.permute.xlu1 %433 }
 0x178   :  { %v452_v54 = vmul.f32 %v5801_v21, %v434_v49 }
 0x179   :  { %471 = vrot.lane.b32.xlu0 %v451_v48, %s5666_s15 }
 0x17a   :  { %467 = vrot.lane.b32.xlu1 %v449_v51, %s5666_s15  ;;  %v436_v52 = vpop.permute.xlu0 %435 }
 0x17b   :  { %v453_v53 = vmul.f32 %v5812_v31, %v436_v52  ;;  %v438_v55 = vpop.permute.xlu1 %437 }
 0x17c   :  { %v454_v56 = vmul.f32 %v5809_v28, %v438_v55 }
 0x17d   :  { %475 = vrot.lane.b32.xlu0 %v453_v53, %s5666_s15 }
 0x17e   :  { %473 = vrot.lane.b32.xlu1 %v452_v54, %s5666_s15 }
 0x182   :  { %477 = vrot.lane.b32.xlu1 %v454_v56, %s5666_s15 }
 0x1e3   :  { %v466_v58 = vpop.permute.xlu0 %465 }
 0x1e4   :  { %v5837_v59 = vadd.f32 %v466_v58, %v408_v57 }
 0x1e6   :  { %v4639_v60 = vmul.f32 -1.442695, %v5837_v59 }
 0x1e7   :  { %v464_v62 = vpop.permute.xlu0 %463 }
 0x1e8   :  { %5090 = vpow2.f32 %v4639_v60  ;;  %v5842_v1 = vadd.f32 %v464_v62, %v407_v61  ;;  %v470_v3 = vpop.permute.xlu1 %469 }
 0x1e9   :  { %v5844_v4 = vadd.f32 %v470_v3, %v410_v63 }
 0x1ea   :  { %v4638_v6 = vmul.f32 -1.442695, %v5842_v1 }
 0x1eb   :  { %v4641_v8 = vmul.f32 -1.442695, %v5844_v4  ;;  %v472_v11 = vpop.permute.xlu0 %471 }
 0x1ec   :  { %5092 = vpow2.f32 %v4638_v6  ;;  %v5850_v15 = vadd.f32 %v472_v11, %v411_v7  ;;  %v468_v17 = vpop.permute.xlu1 %467 }
 0x1ed   :  { %5094 = vpow2.f32 %v4641_v8  ;;  %v5852_v18 = vadd.f32 %v468_v17, %v409_v13  ;;  %v496_v17 = vadd.f32 %v5788_v9, %v5788_v9 }
 0x1ee   :  { %v4642_v20 = vmul.f32 -1.442695, %v5850_v15 }
 0x1ef   :  { %v4640_v25 = vmul.f32 -1.442695, %v5852_v18  ;;  %v476_v26 = vpop.permute.xlu0 %475 }
 0x1f0   :  { %5096 = vpow2.f32 %v4642_v20  ;;  %v5858_v30 = vadd.f32 %v476_v26, %v413_v22  ;;  %v474_v32 = vpop.permute.xlu1 %473  ;;  %v498_v26 = vadd.f32 %v5793_v12, %v5793_v12 }
 0x1f1   :  { %5098 = vpow2.f32 %v4640_v25  ;;  %v5860_v33 = vadd.f32 %v474_v32, %v412_v27  ;;  %v495_v25 = vadd.f32 %v5790_v10, %v5790_v10 }
 0x1f2   :  { %v4644_v34 = vmul.f32 -1.442695, %v5858_v30 }
 0x1f3   :  { %v4643_v36 = vmul.f32 -1.442695, %v5860_v33 }
 0x1f4   :  { %5100 = vpow2.f32 %v4644_v34  ;;  %v478_v38 = vpop.permute.xlu1 %477 }
 0x1f5   :  { %v5091_v39 = vpop.eup %5090  ;;  %5102 = vpow2.f32 %v4643_v36  ;;  %v5865_v41 = vadd.f32 %v478_v38, %v414_v37  ;;  %v499_v36 = vadd.f32 %v5804_v24, %v5804_v24  ;;  %v497_v38 = vadd.f32 %v5796_v16, %v5796_v16 }
 0x1f6   :  { %v528_v42 = vadd.f32 1.0, %v5091_v39 }
 0x1f7   :  { %v4645_v43 = vmul.f32 -1.442695, %v5865_v41 }
 0x1f8   :  { %5104 = vrcp.f32 %v528_v42 }
 0x1f9   :  { %v5093_v44 = vpop.eup %5092  ;;  %5106 = vpow2.f32 %v4645_v43 }
 0x1fa   :  { %v5095_v46 = vpop.eup %5094  ;;  %v527_v47 = vadd.f32 1.0, %v5093_v44 }
 0x1fb   :  { %v530_v48 = vadd.f32 1.0, %v5095_v46 }
 0x1fc   :  { %5108 = vrcp.f32 %v527_v47 }
 0x1fd   :  { %v5097_v49 = vpop.eup %5096  ;;  %5110 = vrcp.f32 %v530_v48  ;;  %v501_v48 = vadd.f32 %v5812_v31, %v5812_v31 }
 0x1fe   :  { %v5099_v51 = vpop.eup %5098  ;;  %v531_v52 = vadd.f32 1.0, %v5097_v49 }
 0x1ff   :  { %v529_v53 = vadd.f32 1.0, %v5099_v51 }
 0x200   :  { %5112 = vrcp.f32 %v531_v52 }
 0x201   :  { %v5101_v54 = vpop.eup %5100  ;;  %5114 = vrcp.f32 %v529_v53  ;;  %v500_v53 = vadd.f32 %v5801_v21, %v5801_v21 }
 0x202   :  { %v5103_v55 = vpop.eup %5102  ;;  %v533_v56 = vadd.f32 1.0, %v5101_v54 }
 0x203   :  { %v532_v57 = vadd.f32 1.0, %v5103_v55 }
 0x204   :  { %5116 = vrcp.f32 %v533_v56 }
 0x205   :  { %v5105_v58 = vpop.eup %5104  ;;  %5118 = vrcp.f32 %v532_v57 }
 0x206   :  { %v5107_v60 = vpop.eup %5106  ;;  %561 = vrot.lane.b32.xlu0 %v5105_v58, %s5662_s16 }
 0x207   :  { %v534_v61 = vadd.f32 1.0, %v5107_v60 }
 0x209   :  { %v5109_v62 = vpop.eup %5108  ;;  %5120 = vrcp.f32 %v534_v61  ;;  %v502_v61 = vadd.f32 %v5809_v28, %v5809_v28 }
 0x20a   :  { %v5111_v63 = vpop.eup %5110  ;;  %559 = vrot.lane.b32.xlu0 %v5109_v62, %s5662_s16 }
 0x20b   :  { %565 = vrot.lane.b32.xlu1 %v5111_v63, %s5662_s16 }
 0x20d   :  { %v5113_v3 = vpop.eup %5112 }
 0x20e   :  { %v5115_v6 = vpop.eup %5114  ;;  %567 = vrot.lane.b32.xlu0 %v5113_v3, %s5662_s16 }
 0x20f   :  { %563 = vrot.lane.b32.xlu1 %v5115_v6, %s5662_s16 }
 0x211   :  { %v5117_v7 = vpop.eup %5116 }
 0x212   :  { %v5119_v8 = vpop.eup %5118  ;;  %571 = vrot.lane.b32.xlu0 %v5117_v7, %s5662_s16 }
 0x213   :  { %569 = vrot.lane.b32.xlu1 %v5119_v8, %s5662_s16 }
 0x216   :  { %v5121_v11 = vpop.eup %5120 }
 0x217   :  { %573 = vrot.lane.b32.xlu1 %v5121_v11, %s5662_s16 }
 0x278   :  { %v562_v13 = vpop.permute.xlu0 %561 }
 0x279   :  { %v584_v22 = vmul.f32 %v562_v13, %v496_v17 }
 0x27b   :  { %v592_v39 = vsub.f32 %v584_v22, %v5788_v9 }
 0x27c   :  { %v560_v20 = vpop.permute.xlu0 %559 }
 0x27d   :  { %v566_v27 = vpop.permute.xlu1 %565  ;;  %v583_v32 = vmul.f32 %v560_v20, %v495_v25  ;;  %v607_v9 = vrot.slane %v592_v39, 7 }
 0x27e   :  { %v586_v34 = vmul.f32 %v566_v27, %v498_v26 }
 0x27f   :  { %v591_v46 = vsub.f32 %v583_v32, %v5790_v10 }
 0x280   :  { %v568_v37 = vpop.permute.xlu0 %567  ;;  %v594_v47 = vsub.f32 %v586_v34, %v5793_v12 }
 0x281   :  { %v587_v42 = vmul.f32 %v568_v37, %v499_v36  ;;  %v564_v43 = vpop.permute.xlu1 %563  ;;  %v609_v12 = vsel %vm608_vm2, %v607_v9, %v591_v46 }
 0x282   :  { %v585_v44 = vmul.f32 %v564_v43, %v497_v38  ;;  %v613_v57 = vrot.slane %v594_v47, 5 }
 0x283   :  { %v595_v49 = vsub.f32 %v587_v42, %v5804_v24 }
 0x284   :  { %v593_v51 = vsub.f32 %v585_v44, %v5796_v16  ;;  %v572_v52 = vpop.permute.xlu0 %571 }
 0x285   :  { %v589_v54 = vmul.f32 %v572_v52, %v501_v48  ;;  %v570_v55 = vpop.permute.xlu1 %569  ;;  %v616_v24 = vrot.slane %v595_v49, 4 }
 0x286   :  { %v610_v56 = vrot.slane %v593_v51, 6  ;;  %v588_v10 = vmul.f32 %v570_v55, %v500_v53 }
 0x287   :  { %v597_v58 = vsub.f32 %v589_v54, %v5812_v31 }
 0x288   :  { %v612_v16 = vsel %vm611_vm3, %v610_v56, %v609_v12  ;;  %v596_v60 = vsub.f32 %v588_v10, %v5801_v21 }
 0x289   :  { %v574_v62 = vpop.permute.xlu1 %573  ;;  %v615_v63 = vsel %vm614_vm4, %v613_v57, %v612_v16  ;;  %v622_v8 = vrot.slane %v597_v58, 2 }
 0x28a   :  { %v619_v3 = vrot.slane %v596_v60, 3  ;;  %v590_v6 = vmul.f32 %v574_v62, %v502_v61  ;;  %v618_v7 = vsel %vm617_vm5, %v616_v24, %v615_v63 }
 0x28c   :  { %v598_v31 = vsub.f32 %v590_v6, %v5809_v28  ;;  %v621_v11 = vsel %vm620_vm6, %v619_v3, %v618_v7 }
 0x28d   :  { %v624_v21 = vsel %vm623_vm7, %v622_v8, %v621_v11 }
 0x28e   :  { %v625_v13 = vrot.slane %v598_v31, 1 }
 0x290   :  { %v627_v17 = vsel %vm626_vm8, %v625_v13, %v624_v21 }
 0x291   :  { %628 = vrot.lane.b32.xlu0 %v627_v17, %s5667_s17 }
 0x303   :  { %v5908_v20 = vpop.permute.xlu0 %628 }
 0x304   :  { %4940 = vmatmul.mubr.msk.f32.vlgmr.msra.gmra.mxu1 %vm245_vm9, %v5908_v20 }
 0x305   :  { %4943 = vmatpush3.msra.mxu1 %v5704_v2  ;;  %4946 = vmatprep.mubr.msk.f32.mxu1 %vm5664_vm0, %v5663_v0 }
 0x306   :  { %4944 = vmatprep.subr.mxu1 %v5663_v0 }
 0x307   :  { %4945 = vmatpush3.msra.mxu1 %v5716_v5 }
 0x308   :  { %4949 = vmatprep.subr.mxu1 %v5663_v0 }
 0x3c4   :  { %v698_v28 = vpop.f32.mrf.mxu1 }
 0x3c5   :  { %v703_v22 = vrot.slane %v698_v28, 7  ;;  %v704_v25 = vrot.slane %v698_v28, 1  ;;  %v705_v26 = vrot.slane %v698_v28, 2  ;;  %v706_v27 = vrot.slane %v698_v28, 3 }
 0x3c6   :  { %v707_v32 = vrot.slane %v698_v28, 4  ;;  %v708_v34 = vrot.slane %v698_v28, 5  ;;  %v709_v36 = vrot.slane %v698_v28, 6  ;;  %v719_v37 = vadd.f32 %v698_v28, %v5764_v14  ;;  %v4941_v2 = vpop.f32.mrf.mxu1 }
 0x3c7   :  { %v718_v38 = vadd.f32 %v703_v22, %v5766_v19  ;;  %v720_v39 = vadd.f32 %v704_v25, %v5773_v29  ;;  %v721_v42 = vadd.f32 %v705_v26, %v5769_v23  ;;  %v722_v5 = vadd.f32 %v706_v27, %v5779_v40 }
 0x3c8   :  { %v723_v43 = vadd.f32 %v707_v32, %v5776_v35  ;;  %v724_v44 = vadd.f32 %v708_v34, %v5785_v50  ;;  %v4648_v46 = vmul.f32 -1.442695, %v719_v37  ;;  %v725_v47 = vadd.f32 %v709_v36, %v5782_v45 }
 0x3c9   :  { %v4647_v48 = vmul.f32 -1.442695, %v718_v38  ;;  %v4649_v49 = vmul.f32 -1.442695, %v720_v39  ;;  %v4650_v51 = vmul.f32 -1.442695, %v721_v42 }
 0x3ca   :  { %5122 = vpow2.f32 %v4648_v46  ;;  %v4651_v52 = vmul.f32 -1.442695, %v722_v5  ;;  %v4652_v53 = vmul.f32 -1.442695, %v723_v43  ;;  %v4653_v9 = vmul.f32 -1.442695, %v724_v44 }
 0x3cb   :  { %5124 = vpow2.f32 %v4647_v48  ;;  %v4654_v54 = vmul.f32 -1.442695, %v725_v47 }
 0x3cc   :  { %5126 = vpow2.f32 %v4649_v49 }
 0x3cd   :  { %5128 = vpow2.f32 %v4650_v51 }
 0x3ce   :  { %5130 = vpow2.f32 %v4651_v52 }
 0x3cf   :  { %5132 = vpow2.f32 %v4652_v53 }
 0x3d0   :  { %5134 = vpow2.f32 %v4653_v9 }
 0x3d1   :  { %5136 = vpow2.f32 %v4654_v54 }
 0x3d7   :  { %v5123_v55 = vpop.eup %5122 }
 0x3d8   :  { %v5125_v56 = vpop.eup %5124  ;;  %v751_v10 = vadd.f32 1.0, %v5123_v55 }
 0x3d9   :  { %v5127_v12 = vpop.eup %5126  ;;  %v750_v57 = vadd.f32 1.0, %v5125_v56 }
 0x3da   :  { %v5129_v58 = vpop.eup %5128  ;;  %v752_v24 = vadd.f32 1.0, %v5127_v12  ;;  %5138 = vrcp.f32 %v751_v10 }
 0x3db   :  { %v5131_v16 = vpop.eup %5130  ;;  %v753_v60 = vadd.f32 1.0, %v5129_v58  ;;  %5140 = vrcp.f32 %v750_v57 }
 0x3dc   :  { %v5133_v61 = vpop.eup %5132  ;;  %v754_v62 = vadd.f32 1.0, %v5131_v16  ;;  %5142 = vrcp.f32 %v752_v24 }
 0x3dd   :  { %v5135_v63 = vpop.eup %5134  ;;  %v755_v3 = vadd.f32 1.0, %v5133_v61  ;;  %5144 = vrcp.f32 %v753_v60 }
 0x3de   :  { %v5137_v6 = vpop.eup %5136  ;;  %v756_v7 = vadd.f32 1.0, %v5135_v63  ;;  %5146 = vrcp.f32 %v754_v62  ;;  %v799_v62 = vrot.slane %v5837_v59, 7  ;;  %v800_v63 = vrot.slane %v5852_v18, 7 }
 0x3df   :  { %v757_v8 = vadd.f32 1.0, %v5137_v6  ;;  %5148 = vrcp.f32 %v755_v3  ;;  %v802_v18 = vrot.slane %v5850_v15, 7  ;;  %v804_v15 = vrot.slane %v5858_v30, 7 }
 0x3e0   :  { %5150 = vrcp.f32 %v756_v7  ;;  %v798_v7 = vrot.slane %v5842_v1, 7 }
 0x3e1   :  { %5152 = vrcp.f32 %v757_v8 }
 0x3e7   :  { %v5926_v31 = vpop.eup %5138 }
 0x3e8   :  { %v5928_v11 = vpop.eup %5140  ;;  %v775_v13 = vmul.f32 4.0, %v5926_v31  ;;  %v815_v3 = vmul.f32 %v5926_v31, %v799_v62 }
 0x3e9   :  { %v5931_v21 = vpop.eup %5142  ;;  %v774_v25 = vmul.f32 4.0, %v5928_v11  ;;  %v814_v59 = vmul.f32 %v5928_v11, %v798_v7 }
 0x3ea   :  { %v5933_v17 = vpop.eup %5144  ;;  %v4656_v28 = vadd.f32 -2.0, %v775_v13  ;;  %v776_v22 = vmul.f32 4.0, %v5931_v21  ;;  %v816_v13 = vmul.f32 %v5931_v21, %v800_v63 }
 0x3eb   :  { %v5937_v26 = vpop.eup %5146  ;;  %v777_v32 = vmul.f32 4.0, %v5933_v17  ;;  %v4655_v36 = vadd.f32 -2.0, %v774_v25 }
 0x3ec   :  { %832 = vrot.lane.b32.xlu1 %v4656_v28, %s5665_s0  ;;  %v4657_v27 = vadd.f32 -2.0, %v776_v22  ;;  %v5941_v34 = vpop.eup %5148  ;;  %v778_v37 = vmul.f32 4.0, %v5937_v26  ;;  %v801_v22 = vrot.slane %v5844_v4, 7 }
 0x3ed   :  { %v5945_v2 = vpop.eup %5150  ;;  %v4658_v38 = vadd.f32 -2.0, %v777_v32  ;;  %v779_v39 = vmul.f32 4.0, %v5941_v34 }
 0x3ee   :  { %834 = vrot.lane.b32.xlu0 %v4657_v27, %s5665_s0  ;;  %v5949_v42 = vpop.eup %5152  ;;  %v4659_v5 = vadd.f32 -2.0, %v778_v37  ;;  %v780_v43 = vmul.f32 4.0, %v5945_v2  ;;  %v817_v37 = vmul.f32 %v5933_v17, %v801_v22 }
 0x3ef   :  { %v4660_v44 = vadd.f32 -2.0, %v779_v39  ;;  %v781_v46 = vmul.f32 4.0, %v5949_v42 }
 0x3f0   :  { %830 = vrot.lane.b32.xlu1 %v4655_v36, %s5665_s0  ;;  %v4661_v47 = vadd.f32 -2.0, %v780_v43  ;;  %v818_v43 = vmul.f32 %v5937_v26, %v802_v18 }
 0x3f1   :  { %v4662_v48 = vadd.f32 -2.0, %v781_v46 }
 0x3f2   :  { %836 = vrot.lane.b32.xlu0 %v4658_v38, %s5665_s0  ;;  %v803_v38 = vrot.slane %v5860_v33, 7  ;;  %v805_v33 = vrot.slane %v5865_v41, 7 }
 0x3f4   :  { %838 = vrot.lane.b32.xlu1 %v4659_v5, %s5665_s0 }
 0x3f6   :  { %840 = vrot.lane.b32.xlu0 %v4660_v44, %s5665_s0 }
 0x3f8   :  { %842 = vrot.lane.b32.xlu1 %v4661_v47, %s5665_s0 }
 0x3fa   :  { %844 = vrot.lane.b32.xlu0 %v4662_v48, %s5665_s0  ;;  %v819_v48 = vmul.f32 %v5941_v34, %v803_v38 }
 0x45e   :  { %v833_v49 = vpop.permute.xlu1 %832 }
 0x45f   :  { %v855_v51 = vmul.f32 %v5926_v31, %v833_v49 }
 0x460   :  { %v835_v52 = vpop.permute.xlu0 %834 }
 0x461   :  { %v856_v53 = vmul.f32 %v5931_v21, %v835_v52  ;;  %872 = vrot.lane.b32.xlu1 %v855_v51, %s5666_s15 }
 0x462   :  { %v831_v9 = vpop.permute.xlu1 %830 }
 0x463   :  { %v854_v54 = vmul.f32 %v5928_v11, %v831_v9  ;;  %874 = vrot.lane.b32.xlu0 %v856_v53, %s5666_s15  ;;  %v820_v53 = vmul.f32 %v5945_v2, %v804_v15 }
 0x464   :  { %v837_v55 = vpop.permute.xlu0 %836 }
 0x465   :  { %v857_v56 = vmul.f32 %v5933_v17, %v837_v55  ;;  %870 = vrot.lane.b32.xlu1 %v854_v54, %s5666_s15  ;;  %v821_v55 = vmul.f32 %v5949_v42, %v805_v33 }
 0x466   :  { %v839_v10 = vpop.permute.xlu1 %838 }
 0x467   :  { %v858_v12 = vmul.f32 %v5937_v26, %v839_v10  ;;  %876 = vrot.lane.b32.xlu0 %v857_v56, %s5666_s15 }
 0x468   :  { %v841_v57 = vpop.permute.xlu0 %840 }
 0x469   :  { %v859_v58 = vmul.f32 %v5941_v34, %v841_v57  ;;  %878 = vrot.lane.b32.xlu1 %v858_v12, %s5666_s15 }
 0x46a   :  { %v843_v24 = vpop.permute.xlu1 %842 }
 0x46b   :  { %v860_v16 = vmul.f32 %v5945_v2, %v843_v24  ;;  %880 = vrot.lane.b32.xlu0 %v859_v58, %s5666_s15 }
 0x46c   :  { %v845_v60 = vpop.permute.xlu0 %844 }
 0x46d   :  { %v861_v61 = vmul.f32 %v5949_v42, %v845_v60  ;;  %882 = vrot.lane.b32.xlu1 %v860_v16, %s5666_s15 }
 0x46f   :  { %884 = vrot.lane.b32.xlu0 %v861_v61, %s5666_s15 }
 0x4d3   :  { %v873_v6 = vpop.permute.xlu1 %872 }
 0x4d4   :  { %v5978_v8 = vadd.f32 %v873_v6, %v815_v3 }
 0x4d5   :  { %v875_v28 = vpop.permute.xlu0 %874 }
 0x4d6   :  { %v4664_v25 = vmul.f32 -1.442695, %v5978_v8  ;;  %v5983_v27 = vadd.f32 %v875_v28, %v816_v13 }
 0x4d7   :  { %v871_v32 = vpop.permute.xlu1 %870 }
 0x4d8   :  { %5154 = vpow2.f32 %v4664_v25  ;;  %v4665_v36 = vmul.f32 -1.442695, %v5983_v27  ;;  %v5988_v1 = vadd.f32 %v871_v32, %v814_v59 }
 0x4d9   :  { %v877_v39 = vpop.permute.xlu0 %876 }
 0x4da   :  { %5156 = vpow2.f32 %v4665_v36  ;;  %v4663_v4 = vmul.f32 -1.442695, %v5988_v1  ;;  %v5993_v5 = vadd.f32 %v877_v39, %v817_v37 }
 0x4db   :  { %v879_v44 = vpop.permute.xlu1 %878 }
 0x4dc   :  { %5158 = vpow2.f32 %v4663_v4  ;;  %v4666_v46 = vmul.f32 -1.442695, %v5993_v5  ;;  %v5998_v47 = vadd.f32 %v879_v44, %v818_v43  ;;  %v904_v44 = vadd.f32 %v5931_v21, %v5931_v21 }
 0x4dd   :  { %v881_v49 = vpop.permute.xlu0 %880 }
 0x4de   :  { %5160 = vpow2.f32 %v4666_v46  ;;  %v4667_v51 = vmul.f32 -1.442695, %v5998_v47  ;;  %v6003_v52 = vadd.f32 %v881_v49, %v819_v48  ;;  %v903_v48 = vadd.f32 %v5926_v31, %v5926_v31 }
 0x4df   :  { %v883_v9 = vpop.permute.xlu1 %882  ;;  %v902_v49 = vadd.f32 %v5928_v11, %v5928_v11 }
 0x4e0   :  { %5162 = vpow2.f32 %v4667_v51  ;;  %v4668_v30 = vmul.f32 -1.442695, %v6003_v52  ;;  %v6007_v54 = vadd.f32 %v883_v9, %v820_v53 }
 0x4e1   :  { %v885_v56 = vpop.permute.xlu0 %884 }
 0x4e2   :  { %5164 = vpow2.f32 %v4668_v30  ;;  %v4669_v41 = vmul.f32 -1.442695, %v6007_v54  ;;  %v6011_v10 = vadd.f32 %v885_v56, %v821_v55  ;;  %v905_v30 = vadd.f32 %v5933_v17, %v5933_v17 }
 0x4e4   :  { %5166 = vpow2.f32 %v4669_v41  ;;  %v4670_v12 = vmul.f32 -1.442695, %v6011_v10 }
 0x4e5   :  { %v5155_v57 = vpop.eup %5154 }
 0x4e6   :  { %v935_v58 = vadd.f32 1.0, %v5155_v57  ;;  %5168 = vpow2.f32 %v4670_v12  ;;  %v906_v57 = vadd.f32 %v5937_v26, %v5937_v26 }
 0x4e7   :  { %v5157_v24 = vpop.eup %5156 }
 0x4e8   :  { %5170 = vrcp.f32 %v935_v58  ;;  %v936_v16 = vadd.f32 1.0, %v5157_v24  ;;  %v907_v24 = vadd.f32 %v5941_v34, %v5941_v34 }
 0x4e9   :  { %v5159_v60 = vpop.eup %5158 }
 0x4ea   :  { %5172 = vrcp.f32 %v936_v16  ;;  %v934_v61 = vadd.f32 1.0, %v5159_v60 }
 0x4eb   :  { %v5161_v62 = vpop.eup %5160 }
 0x4ec   :  { %5174 = vrcp.f32 %v934_v61  ;;  %v937_v63 = vadd.f32 1.0, %v5161_v62 }
 0x4ed   :  { %v5163_v3 = vpop.eup %5162 }
 0x4ee   :  { %5176 = vrcp.f32 %v937_v63  ;;  %v938_v6 = vadd.f32 1.0, %v5163_v3 }
 0x4ef   :  { %v5165_v7 = vpop.eup %5164 }
 0x4f0   :  { %5178 = vrcp.f32 %v938_v6  ;;  %v939_v13 = vadd.f32 1.0, %v5165_v7 }
 0x4f1   :  { %v5167_v28 = vpop.eup %5166 }
 0x4f2   :  { %5180 = vrcp.f32 %v939_v13  ;;  %v940_v22 = vadd.f32 1.0, %v5167_v28 }
 0x4f3   :  { %v5169_v25 = vpop.eup %5168 }
 0x4f4   :  { %5182 = vrcp.f32 %v940_v22  ;;  %v941_v59 = vadd.f32 1.0, %v5169_v25 }
 0x4f5   :  { %v5171_v18 = vpop.eup %5170 }
 0x4f6   :  { %5184 = vrcp.f32 %v941_v59  ;;  %968 = vrot.lane.b32.xlu1 %v5171_v18, %s5662_s16 }
 0x4f7   :  { %v5173_v32 = vpop.eup %5172 }
 0x4f8   :  { %970 = vrot.lane.b32.xlu0 %v5173_v32, %s5662_s16 }
 0x4f9   :  { %v5175_v36 = vpop.eup %5174 }
 0x4fa   :  { %966 = vrot.lane.b32.xlu1 %v5175_v36, %s5662_s16 }
 0x4fb   :  { %v5177_v37 = vpop.eup %5176 }
 0x4fc   :  { %972 = vrot.lane.b32.xlu0 %v5177_v37, %s5662_s16 }
 0x4fd   :  { %v5179_v38 = vpop.eup %5178 }
 0x4fe   :  { %974 = vrot.lane.b32.xlu1 %v5179_v38, %s5662_s16 }
 0x4ff   :  { %v5181_v39 = vpop.eup %5180 }
 0x500   :  { %976 = vrot.lane.b32.xlu0 %v5181_v39, %s5662_s16 }
 0x501   :  { %v5183_v4 = vpop.eup %5182 }
 0x502   :  { %978 = vrot.lane.b32.xlu1 %v5183_v4, %s5662_s16 }
 0x503   :  { %v5185_v43 = vpop.eup %5184 }
 0x504   :  { %980 = vrot.lane.b32.xlu0 %v5185_v43, %s5662_s16 }
 0x568   :  { %v969_v15 = vpop.permute.xlu1 %968 }
 0x569   :  { %v991_v53 = vmul.f32 %v969_v15, %v903_v48 }
 0x56a   :  { %v971_v46 = vpop.permute.xlu0 %970 }
 0x56b   :  { %v992_v33 = vmul.f32 %v971_v46, %v904_v44  ;;  %v999_v16 = vsub.f32 %v991_v53, %v5926_v31  ;;  %v909_v31 = vadd.f32 %v5949_v42, %v5949_v42 }
 0x56c   :  { %v967_v51 = vpop.permute.xlu1 %966 }
 0x56d   :  { %v990_v9 = vmul.f32 %v967_v51, %v902_v49  ;;  %v1000_v55 = vsub.f32 %v992_v33, %v5931_v21  ;;  %v908_v21 = vadd.f32 %v5945_v2, %v5945_v2 }
 0x56e   :  { %v973_v56 = vpop.permute.xlu0 %972 }
 0x56f   :  { %v998_v41 = vsub.f32 %v990_v9, %v5928_v11  ;;  %v993_v12 = vmul.f32 %v973_v56, %v905_v30  ;;  %v1016_v63 = vrot.slane %v1000_v55, 7 }
 0x570   :  { %v975_v58 = vpop.permute.xlu1 %974 }
 0x571   :  { %v1014_v60 = vrot.slane %v998_v41, 1  ;;  %v1001_v61 = vsub.f32 %v993_v12, %v5933_v17  ;;  %v994_v62 = vmul.f32 %v975_v58, %v906_v57 }
 0x572   :  { %v977_v3 = vpop.permute.xlu0 %976 }
 0x573   :  { %v1015_v11 = vsel %vm608_vm2, %v999_v16, %v1014_v60  ;;  %v1018_v6 = vrot.slane %v1001_v61, 6  ;;  %v1002_v7 = vsub.f32 %v994_v62, %v5937_v26  ;;  %v995_v13 = vmul.f32 %v977_v3, %v907_v24 }
 0x574   :  { %v1017_v28 = vsel %vm611_vm3, %v1016_v63, %v1015_v11  ;;  %v979_v22 = vpop.permute.xlu1 %978 }
 0x575   :  { %v1019_v17 = vsel %vm614_vm4, %v1018_v6, %v1017_v28  ;;  %v1020_v25 = vrot.slane %v1002_v7, 5  ;;  %v1003_v59 = vsub.f32 %v995_v13, %v5941_v34  ;;  %v996_v18 = vmul.f32 %v979_v22, %v908_v21 }
 0x576   :  { %v981_v32 = vpop.permute.xlu0 %980 }
 0x577   :  { %v1022_v36 = vrot.slane %v1003_v59, 4  ;;  %v1004_v37 = vsub.f32 %v996_v18, %v5945_v2  ;;  %v997_v38 = vmul.f32 %v981_v32, %v909_v31  ;;  %v1021_v26 = vsel %vm617_vm5, %v1020_v25, %v1019_v17  ;;  %v6061_v2 = vld [vmem:[%s7067_s1 + $0x10] sm:$0xff] }
 0x579   :  { %v1024_v39 = vrot.slane %v1004_v37, 3  ;;  %v1005_v4 = vsub.f32 %v997_v38, %v5949_v42  ;;  %v1023_v43 = vsel %vm620_vm6, %v1022_v36, %v1021_v26  ;;  %v6070_v42 = vld [vmem:[%s7067_s1 + $0x8] sm:$0xff] }
 0x57b   :  { %v1026_v15 = vrot.slane %v1005_v4, 2  ;;  %v1025_v44 = vsel %vm623_vm7, %v1024_v39, %v1023_v43 }
 0x57d   :  { %v6053_v46 = vsel %vm626_vm8, %v1026_v15, %v1025_v44 }
 0x57e   :  { %1028 = vrot.lane.b32.xlu1 %v6053_v46, %s5667_s17 }
 0x5f0   :  { %v1029_v34 = vpop.permute.xlu1 %1028 }
 0x5f1   :  { %4947 = vmatmul.mubr.msk.f32.vlgmr.msra.gmra.mxu1 %vm245_vm9, %v1029_v34 }
 0x5f2   :  { %4950 = vmatpush3.msra.mxu1 %v6061_v2  ;;  %4953 = vmatprep.mubr.msk.f32.mxu1 %vm5664_vm0, %v5663_v0 }
 0x5f3   :  { %4951 = vmatprep.subr.mxu1 %v5663_v0 }
 0x5f4   :  { %4952 = vmatpush3.msra.mxu1 %v6070_v42 }
 0x5f5   :  { %4963 = vmatprep.subr.mxu1 %v5663_v0 }
 0x6b1   :  { %v1098_v48 = vpop.f32.mrf.mxu1 }
 0x6b2   :  { %v1103_v33 = vrot.slane %v1098_v48, 6  ;;  %v1104_v49 = vrot.slane %v1098_v48, 7  ;;  %v1105_v51 = vrot.slane %v1098_v48, 1  ;;  %v1106_v53 = vrot.slane %v1098_v48, 2 }
 0x6b3   :  { %v1107_v9 = vrot.slane %v1098_v48, 3  ;;  %v1108_v30 = vrot.slane %v1098_v48, 4  ;;  %v1109_v55 = vrot.slane %v1098_v48, 5  ;;  %v1120_v56 = vadd.f32 %v1098_v48, %v5773_v29  ;;  %v4948_v41 = vpop.f32.mrf.mxu1 }
 0x6b4   :  { %v1118_v12 = vadd.f32 %v1103_v33, %v5766_v19  ;;  %v1119_v57 = vadd.f32 %v1104_v49, %v5764_v14  ;;  %v1121_v58 = vadd.f32 %v1105_v51, %v5769_v23  ;;  %v1122_v24 = vadd.f32 %v1106_v53, %v5779_v40 }
 0x6b5   :  { %v1123_v16 = vadd.f32 %v1107_v9, %v5776_v35  ;;  %v1124_v60 = vadd.f32 %v1108_v30, %v5785_v50  ;;  %v4674_v61 = vmul.f32 -1.442695, %v1120_v56  ;;  %v1125_v62 = vadd.f32 %v1109_v55, %v5782_v45 }
 0x6b6   :  { %v4672_v63 = vmul.f32 -1.442695, %v1118_v12  ;;  %v4673_v3 = vmul.f32 -1.442695, %v1119_v57  ;;  %v4675_v21 = vmul.f32 -1.442695, %v1121_v58 }
 0x6b7   :  { %5186 = vpow2.f32 %v4674_v61  ;;  %v4676_v11 = vmul.f32 -1.442695, %v1122_v24  ;;  %v4677_v6 = vmul.f32 -1.442695, %v1123_v16  ;;  %v4678_v7 = vmul.f32 -1.442695, %v1124_v60 }
 0x6b8   :  { %5188 = vpow2.f32 %v4672_v63  ;;  %v4679_v13 = vmul.f32 -1.442695, %v1125_v62 }
 0x6b9   :  { %5190 = vpow2.f32 %v4673_v3 }
 0x6ba   :  { %5192 = vpow2.f32 %v4675_v21 }
 0x6bb   :  { %5194 = vpow2.f32 %v4676_v11 }
 0x6bc   :  { %5196 = vpow2.f32 %v4677_v6 }
 0x6bd   :  { %5198 = vpow2.f32 %v4678_v7 }
 0x6be   :  { %5200 = vpow2.f32 %v4679_v13 }
 0x6c4   :  { %v5187_v28 = vpop.eup %5186 }
 0x6c5   :  { %v5189_v22 = vpop.eup %5188  ;;  %v1152_v31 = vadd.f32 1.0, %v5187_v28 }
 0x6c6   :  { %v5191_v17 = vpop.eup %5190  ;;  %v1150_v25 = vadd.f32 1.0, %v5189_v22 }
 0x6c7   :  { %v5193_v59 = vpop.eup %5192  ;;  %v1151_v18 = vadd.f32 1.0, %v5191_v17  ;;  %5202 = vrcp.f32 %v1152_v31 }
 0x6c8   :  { %v5195_v32 = vpop.eup %5194  ;;  %v1153_v36 = vadd.f32 1.0, %v5193_v59  ;;  %5204 = vrcp.f32 %v1150_v25 }
 0x6c9   :  { %v5197_v37 = vpop.eup %5196  ;;  %v1154_v38 = vadd.f32 1.0, %v5195_v32  ;;  %5206 = vrcp.f32 %v1151_v18 }
 0x6ca   :  { %v5199_v26 = vpop.eup %5198  ;;  %v1155_v39 = vadd.f32 1.0, %v5197_v37  ;;  %5208 = vrcp.f32 %v1153_v36 }
 0x6cb   :  { %v5201_v4 = vpop.eup %5200  ;;  %5210 = vrcp.f32 %v1154_v38  ;;  %v1156_v43 = vadd.f32 1.0, %v5199_v26 }
 0x6cc   :  { %v1157_v15 = vadd.f32 1.0, %v5201_v4  ;;  %5212 = vrcp.f32 %v1155_v39  ;;  %v1200_v4 = vrot.slane %v5983_v27, 7 }
 0x6ce   :  { %5214 = vrcp.f32 %v1157_v15 }
 0x6cf   :  { %5216 = vrcp.f32 %v1156_v43  ;;  %v1198_v43 = vrot.slane %v5988_v1, 7 }
 0x6d4   :  { %v6082_v44 = vpop.eup %5202 }
 0x6d5   :  { %v6084_v34 = vpop.eup %5204  ;;  %v1176_v48 = vmul.f32 4.0, %v6082_v44  ;;  %v1216_v15 = vmul.f32 %v6082_v44, %v1200_v4 }
 0x6d6   :  { %v6087_v33 = vpop.eup %5206  ;;  %v1174_v49 = vmul.f32 4.0, %v6084_v34 }
 0x6d7   :  { %v6090_v51 = vpop.eup %5208  ;;  %v4682_v53 = vadd.f32 -2.0, %v1176_v48  ;;  %v1175_v9 = vmul.f32 4.0, %v6087_v33 }
 0x6d8   :  { %v6093_v30 = vpop.eup %5210  ;;  %v4680_v55 = vadd.f32 -2.0, %v1174_v49  ;;  %v1177_v56 = vmul.f32 4.0, %v6090_v51  ;;  %v1214_v49 = vmul.f32 %v6084_v34, %v1198_v43 }
 0x6d9   :  { %v6096_v41 = vpop.eup %5212  ;;  %1234 = vrot.lane.b32.xlu1 %v4682_v53, %s5665_s0  ;;  %v4681_v12 = vadd.f32 -2.0, %v1175_v9  ;;  %v1178_v16 = vmul.f32 4.0, %v6093_v30  ;;  %v1199_v53 = vrot.slane %v5978_v8, 7 }
 0x6da   :  { %1230 = vrot.lane.b32.xlu0 %v4680_v55, %s5665_s0  ;;  %v1179_v57 = vmul.f32 4.0, %v6096_v41  ;;  %v4683_v24 = vadd.f32 -2.0, %v1177_v56  ;;  %v1201_v56 = vrot.slane %v5993_v5, 7 }
 0x6db   :  { %v6101_v58 = vpop.eup %5214  ;;  %v4684_v63 = vadd.f32 -2.0, %v1178_v16  ;;  %v1215_v27 = vmul.f32 %v6087_v33, %v1199_v53 }
 0x6dc   :  { %v6104_v60 = vpop.eup %5216  ;;  %v4685_v61 = vadd.f32 -2.0, %v1179_v57  ;;  %v1181_v62 = vmul.f32 4.0, %v6101_v58  ;;  %v1217_v16 = vmul.f32 %v6090_v51, %v1201_v56 }
 0x6dd   :  { %1232 = vrot.lane.b32.xlu1 %v4681_v12, %s5665_s0  ;;  %v1180_v3 = vmul.f32 4.0, %v6104_v60 }
 0x6de   :  { %1236 = vrot.lane.b32.xlu0 %v4683_v24, %s5665_s0  ;;  %v4687_v21 = vadd.f32 -2.0, %v1181_v62 }
 0x6df   :  { %v4686_v11 = vadd.f32 -2.0, %v1180_v3 }
 0x6e1   :  { %1240 = vrot.lane.b32.xlu1 %v4685_v61, %s5665_s0  ;;  %v1203_v61 = vrot.slane %v6003_v52, 7  ;;  %v1205_v52 = vrot.slane %v6011_v10, 7 }
 0x6e2   :  { %1238 = vrot.lane.b32.xlu0 %v4684_v63, %s5665_s0  ;;  %v1202_v63 = vrot.slane %v5998_v47, 7  ;;  %v1204_v47 = vrot.slane %v6007_v54, 7 }
 0x6e5   :  { %1244 = vrot.lane.b32.xlu1 %v4687_v21, %s5665_s0  ;;  %v1219_v21 = vmul.f32 %v6096_v41, %v1203_v61 }
 0x6e6   :  { %1242 = vrot.lane.b32.xlu0 %v4686_v11, %s5665_s0 }
 0x74b   :  { %v1235_v6 = vpop.permute.xlu1 %1234 }
 0x74c   :  { %v1256_v7 = vmul.f32 %v6082_v44, %v1235_v6  ;;  %v1231_v13 = vpop.permute.xlu0 %1230 }
 0x74d   :  { %v1254_v28 = vmul.f32 %v6084_v34, %v1231_v13 }
 0x74e   :  { %1274 = vrot.lane.b32.xlu1 %v1256_v7, %s5666_s15  ;;  %v1218_v7 = vmul.f32 %v6093_v30, %v1202_v63 }
 0x74f   :  { %v1233_v22 = vpop.permute.xlu1 %1232  ;;  %1270 = vrot.lane.b32.xlu0 %v1254_v28, %s5666_s15 }
 0x750   :  { %v1255_v31 = vmul.f32 %v6087_v33, %v1233_v22  ;;  %v1237_v17 = vpop.permute.xlu0 %1236 }
 0x751   :  { %v1257_v25 = vmul.f32 %v6090_v51, %v1237_v17  ;;  %v1221_v17 = vmul.f32 %v6101_v58, %v1205_v52 }
 0x752   :  { %1272 = vrot.lane.b32.xlu1 %v1255_v31, %s5666_s15 }
 0x753   :  { %v1241_v59 = vpop.permute.xlu1 %1240  ;;  %1276 = vrot.lane.b32.xlu0 %v1257_v25, %s5666_s15 }
 0x754   :  { %v1259_v18 = vmul.f32 %v6096_v41, %v1241_v59  ;;  %v1239_v32 = vpop.permute.xlu0 %1238 }
 0x755   :  { %v1258_v36 = vmul.f32 %v6093_v30, %v1239_v32 }
 0x756   :  { %1280 = vrot.lane.b32.xlu1 %v1259_v18, %s5666_s15  ;;  %v1220_v18 = vmul.f32 %v6104_v60, %v1204_v47 }
 0x757   :  { %v1245_v37 = vpop.permute.xlu1 %1244  ;;  %1278 = vrot.lane.b32.xlu0 %v1258_v36, %s5666_s15 }
 0x758   :  { %v1261_v38 = vmul.f32 %v6101_v58, %v1245_v37  ;;  %v1243_v26 = vpop.permute.xlu0 %1242 }
 0x759   :  { %v1260_v39 = vmul.f32 %v6104_v60, %v1243_v26 }
 0x75a   :  { %1284 = vrot.lane.b32.xlu1 %v1261_v38, %s5666_s15 }
 0x75b   :  { %1282 = vrot.lane.b32.xlu0 %v1260_v39, %s5666_s15 }
 0x7c0   :  { %v1275_v48 = vpop.permute.xlu1 %1274 }
 0x7c1   :  { %v6135_v9 = vadd.f32 %v1275_v48, %v1216_v15  ;;  %v1271_v55 = vpop.permute.xlu0 %1270 }
 0x7c2   :  { %v6138_v12 = vadd.f32 %v1271_v55, %v1214_v49 }
 0x7c3   :  { %v4690_v57 = vmul.f32 -1.442695, %v6135_v9 }
 0x7c4   :  { %v4688_v1 = vmul.f32 -1.442695, %v6138_v12  ;;  %v1273_v24 = vpop.permute.xlu1 %1272 }
 0x7c5   :  { %5218 = vpow2.f32 %v4690_v57  ;;  %v6145_v8 = vadd.f32 %v1273_v24, %v1215_v27  ;;  %v1277_v62 = vpop.permute.xlu0 %1276 }
 0x7c6   :  { %5220 = vpow2.f32 %v4688_v1  ;;  %v6148_v5 = vadd.f32 %v1277_v62, %v1217_v16 }
 0x7c7   :  { %v4689_v3 = vmul.f32 -1.442695, %v6145_v8 }
 0x7c8   :  { %v4691_v11 = vmul.f32 -1.442695, %v6148_v5  ;;  %v1281_v6 = vpop.permute.xlu1 %1280 }
 0x7c9   :  { %5222 = vpow2.f32 %v4689_v3  ;;  %v6155_v13 = vadd.f32 %v1281_v6, %v1219_v21  ;;  %v1279_v28 = vpop.permute.xlu0 %1278 }
 0x7ca   :  { %5224 = vpow2.f32 %v4691_v11  ;;  %v6158_v22 = vadd.f32 %v1279_v28, %v1218_v7  ;;  %v1302_v28 = vadd.f32 %v6084_v34, %v6084_v34 }
 0x7cb   :  { %v4693_v31 = vmul.f32 -1.442695, %v6155_v13 }
 0x7cc   :  { %v4692_v25 = vmul.f32 -1.442695, %v6158_v22  ;;  %v1285_v59 = vpop.permute.xlu1 %1284 }
 0x7cd   :  { %5226 = vpow2.f32 %v4693_v31  ;;  %v6164_v10 = vadd.f32 %v1285_v59, %v1221_v17  ;;  %v1283_v32 = vpop.permute.xlu0 %1282  ;;  %v1303_v17 = vadd.f32 %v6087_v33, %v6087_v33 }
 0x7ce   :  { %5228 = vpow2.f32 %v4692_v25  ;;  %v6166_v36 = vadd.f32 %v1283_v32, %v1220_v18  ;;  %v1304_v25 = vadd.f32 %v6082_v44, %v6082_v44  ;;  %v1305_v18 = vadd.f32 %v6090_v51, %v6090_v51 }
 0x7cf   :  { %v4695_v54 = vmul.f32 -1.442695, %v6164_v10 }
 0x7d0   :  { %v4694_v37 = vmul.f32 -1.442695, %v6166_v36 }
 0x7d1   :  { %5230 = vpow2.f32 %v4695_v54 }
 0x7d2   :  { %v5219_v38 = vpop.eup %5218  ;;  %5232 = vpow2.f32 %v4694_v37 }
 0x7d3   :  { %v5221_v26 = vpop.eup %5220  ;;  %v1336_v39 = vadd.f32 1.0, %v5219_v38 }
 0x7d4   :  { %v1334_v4 = vadd.f32 1.0, %v5221_v26 }
 0x7d5   :  { %5234 = vrcp.f32 %v1336_v39 }
 0x7d6   :  { %v5223_v43 = vpop.eup %5222  ;;  %5236 = vrcp.f32 %v1334_v4  ;;  %v1307_v4 = vadd.f32 %v6096_v41, %v6096_v41 }
 0x7d7   :  { %v5225_v15 = vpop.eup %5224  ;;  %v1335_v48 = vadd.f32 1.0, %v5223_v43 }
 0x7d8   :  { %v1337_v49 = vadd.f32 1.0, %v5225_v15 }
 0x7d9   :  { %5238 = vrcp.f32 %v1335_v48  ;;  %v1306_v48 = vadd.f32 %v6093_v30, %v6093_v30 }
 0x7da   :  { %v5227_v53 = vpop.eup %5226  ;;  %5240 = vrcp.f32 %v1337_v49 }
 0x7db   :  { %v5229_v55 = vpop.eup %5228  ;;  %v1339_v56 = vadd.f32 1.0, %v5227_v53 }
 0x7dc   :  { %v1338_v57 = vadd.f32 1.0, %v5229_v55 }
 0x7dd   :  { %5242 = vrcp.f32 %v1339_v56 }
 0x7de   :  { %v5231_v27 = vpop.eup %5230  ;;  %5244 = vrcp.f32 %v1338_v57 }
 0x7df   :  { %v5233_v1 = vpop.eup %5232  ;;  %v1341_v24 = vadd.f32 1.0, %v5231_v27 }
 0x7e0   :  { %v1340_v16 = vadd.f32 1.0, %v5233_v1 }
 0x7e1   :  { %5246 = vrcp.f32 %v1341_v24 }
 0x7e2   :  { %v5235_v61 = vpop.eup %5234  ;;  %5248 = vrcp.f32 %v1340_v16 }
 0x7e3   :  { %v5237_v62 = vpop.eup %5236  ;;  %1370 = vrot.lane.b32.xlu1 %v5235_v61, %s5662_s16  ;;  %v1308_v61 = vadd.f32 %v6104_v60, %v6104_v60 }
 0x7e4   :  { %1366 = vrot.lane.b32.xlu0 %v5237_v62, %s5662_s16 }
 0x7e6   :  { %v5239_v63 = vpop.eup %5238 }
 0x7e7   :  { %v5241_v3 = vpop.eup %5240  ;;  %1368 = vrot.lane.b32.xlu1 %v5239_v63, %s5662_s16 }
 0x7e8   :  { %1372 = vrot.lane.b32.xlu0 %v5241_v3, %s5662_s16 }
 0x7ea   :  { %v5243_v21 = vpop.eup %5242 }
 0x7eb   :  { %v5245_v11 = vpop.eup %5244  ;;  %1376 = vrot.lane.b32.xlu1 %v5243_v21, %s5662_s16 }
 0x7ec   :  { %1374 = vrot.lane.b32.xlu0 %v5245_v11, %s5662_s16 }
 0x7ee   :  { %v5247_v6 = vpop.eup %5246 }
 0x7ef   :  { %v5249_v7 = vpop.eup %5248  ;;  %1380 = vrot.lane.b32.xlu1 %v5247_v6, %s5662_s16 }
 0x7f0   :  { %1378 = vrot.lane.b32.xlu0 %v5249_v7, %s5662_s16 }
 0x855   :  { %v1371_v52 = vpop.permute.xlu1 %1370 }
 0x856   :  { %v1367_v47 = vpop.permute.xlu0 %1366  ;;  %v1392_v38 = vmul.f32 %v1371_v52, %v1304_v25 }
 0x857   :  { %v1390_v31 = vmul.f32 %v1367_v47, %v1302_v28 }
 0x859   :  { %v1369_v59 = vpop.permute.xlu1 %1368  ;;  %v1398_v32 = vsub.f32 %v1390_v31, %v6084_v34  ;;  %v1400_v34 = vsub.f32 %v1392_v38, %v6082_v44 }
 0x85a   :  { %v1391_v54 = vmul.f32 %v1369_v59, %v1303_v17  ;;  %v1373_v37 = vpop.permute.xlu0 %1372 }
 0x85b   :  { %v1393_v26 = vmul.f32 %v1373_v37, %v1305_v18  ;;  %v1414_v49 = vrot.slane %v1398_v32, 2 }
 0x85c   :  { %v1399_v39 = vsub.f32 %v1391_v54, %v6087_v33  ;;  %v1309_v33 = vadd.f32 %v6101_v58, %v6101_v58 }
 0x85d   :  { %v1401_v43 = vsub.f32 %v1393_v26, %v6090_v51  ;;  %v1377_v15 = vpop.permute.xlu1 %1376 }
 0x85e   :  { %v1415_v53 = vrot.slane %v1399_v39, 1  ;;  %v1395_v55 = vmul.f32 %v1377_v15, %v1307_v4  ;;  %v1375_v56 = vpop.permute.xlu0 %1374 }
 0x85f   :  { %v1394_v57 = vmul.f32 %v1375_v56, %v1306_v48  ;;  %v1418_v1 = vrot.slane %v1401_v43, 7 }
 0x860   :  { %v1416_v27 = vsel %vm608_vm2, %v1415_v53, %v1414_v49  ;;  %v1403_v62 = vsub.f32 %v1395_v55, %v6096_v41 }
 0x861   :  { %v1417_v24 = vsel %vm611_vm3, %v1400_v34, %v1416_v27  ;;  %v1402_v51 = vsub.f32 %v1394_v57, %v6093_v30  ;;  %v1381_v16 = vpop.permute.xlu1 %1380 }
 0x862   :  { %v1397_v63 = vmul.f32 %v1381_v16, %v1309_v33  ;;  %v1379_v3 = vpop.permute.xlu0 %1378  ;;  %v1419_v11 = vsel %vm614_vm4, %v1418_v1, %v1417_v24  ;;  %v1422_v28 = vrot.slane %v1403_v62, 5 }
 0x863   :  { %v1420_v44 = vrot.slane %v1402_v51, 6  ;;  %v1396_v21 = vmul.f32 %v1379_v3, %v1308_v61 }
 0x864   :  { %v1405_v6 = vsub.f32 %v1397_v63, %v6101_v58 }
 0x865   :  { %v1404_v7 = vsub.f32 %v1396_v21, %v6104_v60  ;;  %v1421_v52 = vsel %vm617_vm5, %v1420_v44, %v1419_v11 }
 0x866   :  { %v1426_v47 = vrot.slane %v1405_v6, 3  ;;  %v1423_v31 = vsel %vm620_vm6, %v1422_v28, %v1421_v52 }
 0x867   :  { %v1424_v30 = vrot.slane %v1404_v7, 4 }
 0x869   :  { %v1425_v17 = vsel %vm623_vm7, %v1424_v30, %v1423_v31 }
 0x86a   :  { %v6209_v41 = vsel %vm626_vm8, %v1426_v47, %v1425_v17 }
 0x86b   :  { %1428 = vrot.lane.b32.xlu0 %v6209_v41, %s5667_s17 }
 0x8dd   :  { %v1429_v25 = vpop.permute.xlu0 %1428 }
 0x8de   :  { %4954 = vmatmul.mubr.msk.f32.vlgmr.msra.gmra.mxu1 %vm245_vm9, %v1429_v25 }
 0x8df   :  { %4964 = vmatpush3.msra.mxu1 %v6061_v2  ;;  %4967 = vmatprep.mubr.msk.f32.mxu1 %vm5664_vm0, %v5663_v0 }
 0x8e0   :  { %4965 = vmatprep.subr.mxu1 %v5663_v0 }
 0x8e1   :  { %4966 = vmatpush3.msra.mxu1 %v6070_v42 }
 0x8e2   :  { %4977 = vmatprep.subr.mxu1 %v5663_v0 }
 0x99e   :  { %v1498_v58 = vpop.f32.mrf.mxu1 }
 0x99f   :  { %v1503_v60 = vrot.slane %v1498_v58, 5  ;;  %v1504_v59 = vrot.slane %v1498_v58, 6  ;;  %v1505_v18 = vrot.slane %v1498_v58, 7  ;;  %v1506_v32 = vrot.slane %v1498_v58, 1 }
 0x9a0   :  { %v1507_v54 = vrot.slane %v1498_v58, 2  ;;  %v1508_v37 = vrot.slane %v1498_v58, 3  ;;  %v1509_v38 = vrot.slane %v1498_v58, 4  ;;  %v1521_v26 = vadd.f32 %v1498_v58, %v5769_v23  ;;  %v4955_v39 = vpop.f32.mrf.mxu1 }
 0x9a1   :  { %v1518_v4 = vadd.f32 %v1503_v60, %v5766_v19  ;;  %v1519_v43 = vadd.f32 %v1504_v59, %v5764_v14  ;;  %v1520_v15 = vadd.f32 %v1505_v18, %v5773_v29  ;;  %v1522_v48 = vadd.f32 %v1506_v32, %v5779_v40 }
 0x9a2   :  { %v1523_v49 = vadd.f32 %v1507_v54, %v5776_v35  ;;  %v1524_v53 = vadd.f32 %v1508_v37, %v5785_v50  ;;  %v4700_v55 = vmul.f32 -1.442695, %v1521_v26  ;;  %v1525_v56 = vadd.f32 %v1509_v38, %v5782_v45 }
 0x9a3   :  { %v4697_v34 = vmul.f32 -1.442695, %v1518_v4  ;;  %v4698_v57 = vmul.f32 -1.442695, %v1519_v43  ;;  %v4699_v27 = vmul.f32 -1.442695, %v1520_v15 }
 0x9a4   :  { %5250 = vpow2.f32 %v4700_v55  ;;  %v4701_v1 = vmul.f32 -1.442695, %v1522_v48  ;;  %v4702_v33 = vmul.f32 -1.442695, %v1523_v49  ;;  %v4703_v24 = vmul.f32 -1.442695, %v1524_v53 }
 0x9a5   :  { %5252 = vpow2.f32 %v4697_v34  ;;  %v4704_v51 = vmul.f32 -1.442695, %v1525_v56 }
 0x9a6   :  { %5254 = vpow2.f32 %v4698_v57 }
 0x9a7   :  { %5256 = vpow2.f32 %v4699_v27 }
 0x9a8   :  { %5258 = vpow2.f32 %v4701_v1 }
 0x9a9   :  { %5260 = vpow2.f32 %v4702_v33 }
 0x9aa   :  { %5262 = vpow2.f32 %v4703_v24 }
 0x9ab   :  { %5264 = vpow2.f32 %v4704_v51 }
 0x9b1   :  { %v5251_v16 = vpop.eup %5250 }
 0x9b2   :  { %v5253_v61 = vpop.eup %5252  ;;  %v1553_v62 = vadd.f32 1.0, %v5251_v16 }
 0x9b3   :  { %v5255_v63 = vpop.eup %5254  ;;  %v1550_v3 = vadd.f32 1.0, %v5253_v61 }
 0x9b4   :  { %v5257_v44 = vpop.eup %5256  ;;  %v1551_v21 = vadd.f32 1.0, %v5255_v63  ;;  %5266 = vrcp.f32 %v1553_v62 }
 0x9b5   :  { %v5259_v11 = vpop.eup %5258  ;;  %v1552_v6 = vadd.f32 1.0, %v5257_v44  ;;  %5268 = vrcp.f32 %v1550_v3 }
 0x9b6   :  { %v5261_v7 = vpop.eup %5260  ;;  %v1554_v52 = vadd.f32 1.0, %v5259_v11  ;;  %5270 = vrcp.f32 %v1551_v21 }
 0x9b7   :  { %v5263_v28 = vpop.eup %5262  ;;  %v1555_v30 = vadd.f32 1.0, %v5261_v7  ;;  %5272 = vrcp.f32 %v1552_v6 }
 0x9b8   :  { %v5265_v47 = vpop.eup %5264  ;;  %v1556_v31 = vadd.f32 1.0, %v5263_v28  ;;  %5274 = vrcp.f32 %v1554_v52 }
 0x9b9   :  { %v1557_v17 = vadd.f32 1.0, %v5265_v47  ;;  %5276 = vrcp.f32 %v1555_v30 }
 0x9ba   :  { %5278 = vrcp.f32 %v1556_v31  ;;  %v1601_v31 = vrot.slane %v6148_v5, 7 }
 0x9bb   :  { %5280 = vrcp.f32 %v1557_v17  ;;  %v1599_v17 = vrot.slane %v6145_v8, 7  ;;  %v1600_v8 = vrot.slane %v6135_v9, 7  ;;  %v1604_v9 = vrot.slane %v6166_v36, 7 }
 0x9c1   :  { %v6228_v25 = vpop.eup %5266 }
 0x9c2   :  { %v6230_v58 = vpop.eup %5268  ;;  %v1577_v60 = vmul.f32 4.0, %v6228_v25 }
 0x9c3   :  { %v6233_v59 = vpop.eup %5270  ;;  %v1574_v37 = vmul.f32 4.0, %v6230_v58 }
 0x9c4   :  { %v6235_v18 = vpop.eup %5272  ;;  %v4708_v32 = vadd.f32 -2.0, %v1577_v60  ;;  %v1575_v54 = vmul.f32 4.0, %v6233_v59  ;;  %v1617_v60 = vmul.f32 %v6228_v25, %v1601_v31 }
 0x9c5   :  { %v6239_v38 = vpop.eup %5274  ;;  %v4705_v43 = vadd.f32 -2.0, %v1574_v37  ;;  %v1576_v15 = vmul.f32 4.0, %v6235_v18 }
 0x9c6   :  { %1636 = vrot.lane.b32.xlu1 %v4708_v32, %s5665_s0  ;;  %v4706_v26 = vadd.f32 -2.0, %v1575_v54  ;;  %v1578_v39 = vmul.f32 4.0, %v6239_v38  ;;  %v6243_v4 = vpop.eup %5276  ;;  %v1598_v54 = vrot.slane %v6138_v12, 7 }
 0x9c7   :  { %v6247_v48 = vpop.eup %5278  ;;  %v1579_v53 = vmul.f32 4.0, %v6243_v4  ;;  %v4707_v56 = vadd.f32 -2.0, %v1576_v15 }
 0x9c8   :  { %1632 = vrot.lane.b32.xlu0 %v4706_v26, %s5665_s0  ;;  %v4709_v49 = vadd.f32 -2.0, %v1578_v39  ;;  %v6251_v55 = vpop.eup %5280  ;;  %v1580_v34 = vmul.f32 4.0, %v6247_v48  ;;  %v1615_v26 = vmul.f32 %v6233_v59, %v1599_v17  ;;  %v1614_v5 = vmul.f32 %v6230_v58, %v1598_v54 }
 0x9c9   :  { %v4710_v57 = vadd.f32 -2.0, %v1579_v53  ;;  %v1581_v27 = vmul.f32 4.0, %v6251_v55 }
 0x9ca   :  { %1630 = vrot.lane.b32.xlu1 %v4705_v43, %s5665_s0  ;;  %v4711_v1 = vadd.f32 -2.0, %v1580_v34  ;;  %v1602_v43 = vrot.slane %v6158_v22, 7 }
 0x9cb   :  { %v4712_v33 = vadd.f32 -2.0, %v1581_v27 }
 0x9cc   :  { %1638 = vrot.lane.b32.xlu0 %v4709_v49, %s5665_s0  ;;  %v1618_v34 = vmul.f32 %v6239_v38, %v1602_v43 }
 0x9ce   :  { %1634 = vrot.lane.b32.xlu1 %v4707_v56, %s5665_s0 }
 0x9d0   :  { %1640 = vrot.lane.b32.xlu0 %v4710_v57, %s5665_s0  ;;  %v1603_v57 = vrot.slane %v6155_v13, 7  ;;  %v1605_v13 = vrot.slane %v6164_v10, 7 }
 0x9d2   :  { %1642 = vrot.lane.b32.xlu1 %v4711_v1, %s5665_s0 }
 0x9d4   :  { %1644 = vrot.lane.b32.xlu0 %v4712_v33, %s5665_s0  ;;  %v1616_v33 = vmul.f32 %v6235_v18, %v1600_v8 }
 0xa38   :  { %v1637_v24 = vpop.permute.xlu1 %1636 }
 0xa39   :  { %v1657_v51 = vmul.f32 %v6228_v25, %v1637_v24 }
 0xa3a   :  { %v1633_v16 = vpop.permute.xlu0 %1632 }
 0xa3b   :  { %v1655_v61 = vmul.f32 %v6233_v59, %v1633_v16  ;;  %1676 = vrot.lane.b32.xlu1 %v1657_v51, %s5666_s15 }
 0xa3c   :  { %v1631_v62 = vpop.permute.xlu1 %1630 }
 0xa3d   :  { %v1654_v63 = vmul.f32 %v6230_v58, %v1631_v62  ;;  %1672 = vrot.lane.b32.xlu0 %v1655_v61, %s5666_s15  ;;  %v1619_v61 = vmul.f32 %v6243_v4, %v1603_v57 }
 0xa3e   :  { %v1639_v3 = vpop.permute.xlu0 %1638 }
 0xa3f   :  { %v1658_v44 = vmul.f32 %v6239_v38, %v1639_v3  ;;  %1670 = vrot.lane.b32.xlu1 %v1654_v63, %s5666_s15 }
 0xa40   :  { %v1635_v21 = vpop.permute.xlu1 %1634 }
 0xa41   :  { %v1656_v11 = vmul.f32 %v6235_v18, %v1635_v21  ;;  %1678 = vrot.lane.b32.xlu0 %v1658_v44, %s5666_s15  ;;  %v1620_v44 = vmul.f32 %v6247_v48, %v1604_v9 }
 0xa42   :  { %v1641_v6 = vpop.permute.xlu0 %1640 }
 0xa43   :  { %v1659_v7 = vmul.f32 %v6243_v4, %v1641_v6  ;;  %1674 = vrot.lane.b32.xlu1 %v1656_v11, %s5666_s15  ;;  %v1621_v6 = vmul.f32 %v6251_v55, %v1605_v13 }
 0xa44   :  { %v1643_v52 = vpop.permute.xlu1 %1642 }
 0xa45   :  { %v1660_v28 = vmul.f32 %v6247_v48, %v1643_v52  ;;  %1680 = vrot.lane.b32.xlu0 %v1659_v7, %s5666_s15 }
 0xa46   :  { %v1645_v30 = vpop.permute.xlu0 %1644 }
 0xa47   :  { %v1661_v47 = vmul.f32 %v6251_v55, %v1645_v30  ;;  %1682 = vrot.lane.b32.xlu1 %v1660_v28, %s5666_s15 }
 0xa49   :  { %1684 = vrot.lane.b32.xlu0 %v1661_v47, %s5666_s15 }
 0xaad   :  { %v1677_v32 = vpop.permute.xlu1 %1676 }
 0xaae   :  { %v6280_v37 = vadd.f32 %v1677_v32, %v1617_v60 }
 0xaaf   :  { %v1673_v39 = vpop.permute.xlu0 %1672 }
 0xab0   :  { %v4716_v15 = vmul.f32 -1.442695, %v6280_v37  ;;  %v6285_v49 = vadd.f32 %v1673_v39, %v1615_v26 }
 0xab1   :  { %v1671_v53 = vpop.permute.xlu1 %1670 }
 0xab2   :  { %5282 = vpow2.f32 %v4716_v15  ;;  %v4714_v56 = vmul.f32 -1.442695, %v6285_v49  ;;  %v6290_v12 = vadd.f32 %v1671_v53, %v1614_v5 }
 0xab3   :  { %v1679_v27 = vpop.permute.xlu0 %1678 }
 0xab4   :  { %5284 = vpow2.f32 %v4714_v56  ;;  %v4713_v22 = vmul.f32 -1.442695, %v6290_v12  ;;  %v6295_v1 = vadd.f32 %v1679_v27, %v1618_v34 }
 0xab5   :  { %v1675_v24 = vpop.permute.xlu1 %1674 }
 0xab6   :  { %5286 = vpow2.f32 %v4713_v22  ;;  %v4717_v51 = vmul.f32 -1.442695, %v6295_v1  ;;  %v6300_v16 = vadd.f32 %v1675_v24, %v1616_v33 }
 0xab7   :  { %v1681_v62 = vpop.permute.xlu0 %1680 }
 0xab8   :  { %5288 = vpow2.f32 %v4717_v51  ;;  %v4715_v63 = vmul.f32 -1.442695, %v6300_v16  ;;  %v6305_v3 = vadd.f32 %v1681_v62, %v1619_v61  ;;  %v1703_v62 = vadd.f32 %v6233_v59, %v6233_v59 }
 0xab9   :  { %v1683_v21 = vpop.permute.xlu1 %1682 }
 0xaba   :  { %5290 = vpow2.f32 %v4715_v63  ;;  %v4718_v36 = vmul.f32 -1.442695, %v6305_v3  ;;  %v6309_v11 = vadd.f32 %v1683_v21, %v1620_v44  ;;  %v1702_v44 = vadd.f32 %v6230_v58, %v6230_v58 }
 0xabb   :  { %v1685_v7 = vpop.permute.xlu0 %1684 }
 0xabc   :  { %5292 = vpow2.f32 %v4718_v36  ;;  %v4719_v10 = vmul.f32 -1.442695, %v6309_v11  ;;  %v6313_v52 = vadd.f32 %v1685_v7, %v1621_v6  ;;  %v1706_v7 = vadd.f32 %v6239_v38, %v6239_v38 }
 0xabe   :  { %5294 = vpow2.f32 %v4719_v10  ;;  %v4720_v28 = vmul.f32 -1.442695, %v6313_v52 }
 0xabf   :  { %v5283_v30 = vpop.eup %5282 }
 0xac0   :  { %v1737_v47 = vadd.f32 1.0, %v5283_v30  ;;  %5296 = vpow2.f32 %v4720_v28 }
 0xac1   :  { %v5285_v31 = vpop.eup %5284 }
 0xac2   :  { %5298 = vrcp.f32 %v1737_v47  ;;  %v1735_v17 = vadd.f32 1.0, %v5285_v31  ;;  %v1704_v47 = vadd.f32 %v6235_v18, %v6235_v18  ;;  %v1705_v31 = vadd.f32 %v6228_v25, %v6228_v25 }
 0xac3   :  { %v5287_v60 = vpop.eup %5286 }
 0xac4   :  { %5300 = vrcp.f32 %v1735_v17  ;;  %v1734_v32 = vadd.f32 1.0, %v5287_v60 }
 0xac5   :  { %v5289_v54 = vpop.eup %5288 }
 0xac6   :  { %5302 = vrcp.f32 %v1734_v32  ;;  %v1738_v26 = vadd.f32 1.0, %v5289_v54  ;;  %v1707_v54 = vadd.f32 %v6243_v4, %v6243_v4 }
 0xac7   :  { %v5291_v39 = vpop.eup %5290 }
 0xac8   :  { %5304 = vrcp.f32 %v1738_v26  ;;  %v1736_v43 = vadd.f32 1.0, %v5291_v39 }
 0xac9   :  { %v5293_v15 = vpop.eup %5292 }
 0xaca   :  { %5306 = vrcp.f32 %v1736_v43  ;;  %v1739_v5 = vadd.f32 1.0, %v5293_v15 }
 0xacb   :  { %v5295_v8 = vpop.eup %5294 }
 0xacc   :  { %5308 = vrcp.f32 %v1739_v5  ;;  %v1740_v53 = vadd.f32 1.0, %v5295_v8  ;;  %v1708_v8 = vadd.f32 %v6247_v48, %v6247_v48 }
 0xacd   :  { %v5297_v56 = vpop.eup %5296 }
 0xace   :  { %5310 = vrcp.f32 %v1740_v53  ;;  %v1741_v34 = vadd.f32 1.0, %v5297_v56 }
 0xacf   :  { %v5299_v57 = vpop.eup %5298 }
 0xad0   :  { %5312 = vrcp.f32 %v1741_v34  ;;  %1772 = vrot.lane.b32.xlu1 %v5299_v57, %s5662_s16 }
 0xad1   :  { %v5301_v27 = vpop.eup %5300 }
 0xad2   :  { %1768 = vrot.lane.b32.xlu0 %v5301_v27, %s5662_s16  ;;  %v1709_v27 = vadd.f32 %v6251_v55, %v6251_v55 }
 0xad3   :  { %v5303_v22 = vpop.eup %5302 }
 0xad4   :  { %1766 = vrot.lane.b32.xlu1 %v5303_v22, %s5662_s16 }
 0xad5   :  { %v5305_v33 = vpop.eup %5304 }
 0xad6   :  { %1774 = vrot.lane.b32.xlu0 %v5305_v33, %s5662_s16 }
 0xad7   :  { %v5307_v9 = vpop.eup %5306 }
 0xad8   :  { %1770 = vrot.lane.b32.xlu1 %v5307_v9, %s5662_s16 }
 0xad9   :  { %v5309_v24 = vpop.eup %5308 }
 0xada   :  { %1776 = vrot.lane.b32.xlu0 %v5309_v24, %s5662_s16 }
 0xadb   :  { %v5311_v51 = vpop.eup %5310 }
 0xadc   :  { %1778 = vrot.lane.b32.xlu1 %v5311_v51, %s5662_s16 }
 0xadd   :  { %v5313_v61 = vpop.eup %5312 }
 0xade   :  { %1780 = vrot.lane.b32.xlu0 %v5313_v61, %s5662_s16 }
 0xb42   :  { %v1773_v13 = vpop.permute.xlu1 %1772 }
 0xb43   :  { %v1793_v26 = vmul.f32 %v1773_v13, %v1705_v31 }
 0xb44   :  { %v1769_v63 = vpop.permute.xlu0 %1768 }
 0xb45   :  { %v1791_v21 = vmul.f32 %v1769_v63, %v1703_v62  ;;  %v1801_v22 = vsub.f32 %v1793_v26, %v6228_v25 }
 0xb46   :  { %v1767_v36 = vpop.permute.xlu1 %1766 }
 0xb47   :  { %v1790_v6 = vmul.f32 %v1767_v36, %v1702_v44  ;;  %v1799_v17 = vsub.f32 %v1791_v21, %v6233_v59 }
 0xb48   :  { %v1775_v10 = vpop.permute.xlu0 %1774 }
 0xb49   :  { %v1798_v28 = vsub.f32 %v1790_v6, %v6230_v58  ;;  %v1794_v30 = vmul.f32 %v1775_v10, %v1706_v7  ;;  %v1815_v53 = vrot.slane %v1799_v17, 2 }
 0xb4a   :  { %v1771_v60 = vpop.permute.xlu1 %1770 }
 0xb4b   :  { %v1792_v32 = vmul.f32 %v1771_v60, %v1704_v47  ;;  %v1814_v39 = vrot.slane %v1798_v28, 3  ;;  %v1802_v43 = vsub.f32 %v1794_v30, %v6239_v38 }
 0xb4c   :  { %v1777_v15 = vpop.permute.xlu0 %1776 }
 0xb4d   :  { %v1800_v58 = vsub.f32 %v1792_v32, %v6235_v18  ;;  %v1795_v5 = vmul.f32 %v1777_v15, %v1707_v54  ;;  %v1816_v38 = vsel %vm608_vm2, %v1815_v53, %v1814_v39  ;;  %v1820_v33 = vrot.slane %v1802_v43, 7 }
 0xb4e   :  { %v1779_v56 = vpop.permute.xlu1 %1778 }
 0xb4f   :  { %v1817_v34 = vrot.slane %v1800_v58, 1  ;;  %v1803_v59 = vsub.f32 %v1795_v5, %v6243_v4  ;;  %v1796_v57 = vmul.f32 %v1779_v56, %v1708_v8 }
 0xb50   :  { %v1781_v9 = vpop.permute.xlu0 %1780 }
 0xb51   :  { %v1818_v18 = vsel %vm611_vm3, %v1817_v34, %v1816_v38  ;;  %v1822_v24 = vrot.slane %v1803_v59, 6  ;;  %v1804_v51 = vsub.f32 %v1796_v57, %v6247_v48  ;;  %v1797_v61 = vmul.f32 %v1781_v9, %v1709_v27 }
 0xb52   :  { %v1819_v13 = vsel %vm614_vm4, %v1801_v22, %v1818_v18 }
 0xb53   :  { %v1824_v62 = vrot.slane %v1804_v51, 5  ;;  %v1805_v4 = vsub.f32 %v1797_v61, %v6251_v55  ;;  %v1821_v63 = vsel %vm617_vm5, %v1820_v33, %v1819_v13 }
 0xb54   :  { %v1823_v44 = vsel %vm620_vm6, %v1822_v24, %v1821_v63 }
 0xb55   :  { %v1826_v25 = vrot.slane %v1805_v4, 4  ;;  %v1825_v21 = vsel %vm623_vm7, %v1824_v62, %v1823_v44 }
 0xb57   :  { %v6355_v36 = vsel %vm626_vm8, %v1826_v25, %v1825_v21 }
 0xb58   :  { %1828 = vrot.lane.b32.xlu1 %v6355_v36, %s5667_s17 }
 0xbca   :  { %v1829_v48 = vpop.permute.xlu1 %1828 }
 0xbcb   :  { %4961 = vmatmul.mubr.msk.f32.vlgmr.msra.gmra.mxu0 %vm245_vm9, %v1829_v48 }
 0xbcc   :  { %4971 = vmatpush3.msra.mxu0 %v6061_v2  ;;  %4974 = vmatprep.mubr.msk.f32.mxu0 %vm5664_vm0, %v5663_v0 }
 0xbcd   :  { %4972 = vmatprep.subr.mxu0 %v5663_v0 }
 0xbce   :  { %4973 = vmatpush3.msra.mxu0 %v6070_v42 }
 0xc8b   :  { %v1898_v55 = vpop.f32.mrf.mxu0 }
 0xc8c   :  { %v1903_v6 = vrot.slane %v1898_v55, 4  ;;  %v1904_v7 = vrot.slane %v1898_v55, 5  ;;  %v1905_v10 = vrot.slane %v1898_v55, 6  ;;  %v1906_v28 = vrot.slane %v1898_v55, 7 }
 0xc8d   :  { %v1907_v30 = vrot.slane %v1898_v55, 1  ;;  %v1908_v47 = vrot.slane %v1898_v55, 2  ;;  %v1909_v31 = vrot.slane %v1898_v55, 3  ;;  %v1922_v17 = vadd.f32 %v1898_v55, %v5779_v40  ;;  %v4962_v60 = vpop.f32.mrf.mxu0 }
 0xc8e   :  { %v1918_v2 = vadd.f32 %v1903_v6, %v5766_v19  ;;  %v1919_v32 = vadd.f32 %v1904_v7, %v5764_v14  ;;  %v1920_v54 = vadd.f32 %v1905_v10, %v5773_v29  ;;  %v1921_v26 = vadd.f32 %v1906_v28, %v5769_v23 }
 0xc8f   :  { %v1923_v42 = vadd.f32 %v1907_v30, %v5776_v35  ;;  %v1924_v39 = vadd.f32 %v1908_v47, %v5785_v50  ;;  %v4726_v43 = vmul.f32 -1.442695, %v1922_v17  ;;  %v1925_v15 = vadd.f32 %v1909_v31, %v5782_v45 }
 0xc90   :  { %v4722_v58 = vmul.f32 -1.442695, %v1918_v2  ;;  %v4723_v5 = vmul.f32 -1.442695, %v1919_v32  ;;  %v4724_v8 = vmul.f32 -1.442695, %v1920_v54 }
 0xc91   :  { %v4725_v53 = vmul.f32 -1.442695, %v1921_v26  ;;  %5314 = vpow2.f32 %v4726_v43  ;;  %v4727_v56 = vmul.f32 -1.442695, %v1923_v42  ;;  %v4728_v34 = vmul.f32 -1.442695, %v1924_v39 }
 0xc92   :  { %5316 = vpow2.f32 %v4722_v58  ;;  %v4729_v59 = vmul.f32 -1.442695, %v1925_v15 }
 0xc93   :  { %5318 = vpow2.f32 %v4723_v5 }
 0xc94   :  { %5320 = vpow2.f32 %v4724_v8 }
 0xc95   :  { %5322 = vpow2.f32 %v4725_v53 }
 0xc96   :  { %5324 = vpow2.f32 %v4727_v56 }
 0xc97   :  { %5326 = vpow2.f32 %v4728_v34 }
 0xc98   :  { %5328 = vpow2.f32 %v4729_v59 }
 0xc9e   :  { %v5315_v57 = vpop.eup %5314 }
 0xc9f   :  { %v5317_v27 = vpop.eup %5316  ;;  %v1954_v22 = vadd.f32 1.0, %v5315_v57 }
 0xca0   :  { %v5319_v38 = vpop.eup %5318  ;;  %v1950_v33 = vadd.f32 1.0, %v5317_v27 }
 0xca1   :  { %v5321_v9 = vpop.eup %5320  ;;  %v1951_v18 = vadd.f32 1.0, %v5319_v38  ;;  %5330 = vrcp.f32 %v1954_v22 }
 0xca2   :  { %v5323_v24 = vpop.eup %5322  ;;  %v1952_v51 = vadd.f32 1.0, %v5321_v9  ;;  %5332 = vrcp.f32 %v1950_v33 }
 0xca3   :  { %v5325_v61 = vpop.eup %5324  ;;  %v1953_v13 = vadd.f32 1.0, %v5323_v24  ;;  %5334 = vrcp.f32 %v1951_v18 }
 0xca4   :  { %v5327_v62 = vpop.eup %5326  ;;  %v1955_v4 = vadd.f32 1.0, %v5325_v61  ;;  %5336 = vrcp.f32 %v1952_v51 }
 0xca5   :  { %v5329_v63 = vpop.eup %5328  ;;  %5338 = vrcp.f32 %v1953_v13  ;;  %v1956_v44 = vadd.f32 1.0, %v5327_v62 }
 0xca6   :  { %v1957_v25 = vadd.f32 1.0, %v5329_v63  ;;  %5340 = vrcp.f32 %v1955_v4  ;;  %v2002_v63 = vrot.slane %v6295_v1, 7 }
 0xca8   :  { %5342 = vrcp.f32 %v1957_v25 }
 0xca9   :  { %5344 = vrcp.f32 %v1956_v44  ;;  %v1998_v44 = vrot.slane %v6290_v12, 7 }
 0xcae   :  { %v6373_v21 = vpop.eup %5330 }
 0xcaf   :  { %v6375_v48 = vpop.eup %5332  ;;  %v1978_v55 = vmul.f32 4.0, %v6373_v21  ;;  %v2018_v25 = vmul.f32 %v6373_v21, %v2002_v63 }
 0xcb0   :  { %v6378_v6 = vpop.eup %5334  ;;  %v1974_v7 = vmul.f32 4.0, %v6375_v48 }
 0xcb1   :  { %v6381_v10 = vpop.eup %5336  ;;  %v4734_v28 = vadd.f32 -2.0, %v1978_v55  ;;  %v1975_v30 = vmul.f32 4.0, %v6378_v6 }
 0xcb2   :  { %v6384_v47 = vpop.eup %5338  ;;  %v4730_v31 = vadd.f32 -2.0, %v1974_v7  ;;  %v1976_v17 = vmul.f32 4.0, %v6381_v10  ;;  %v2014_v7 = vmul.f32 %v6375_v48, %v1998_v44 }
 0xcb3   :  { %v6387_v60 = vpop.eup %5340  ;;  %2038 = vrot.lane.b32.xlu1 %v4734_v28, %s5665_s0  ;;  %v4731_v2 = vadd.f32 -2.0, %v1975_v30  ;;  %v1977_v32 = vmul.f32 4.0, %v6384_v47  ;;  %v1999_v28 = vrot.slane %v6285_v49, 7 }
 0xcb4   :  { %2030 = vrot.lane.b32.xlu0 %v4730_v31, %s5665_s0  ;;  %v4732_v26 = vadd.f32 -2.0, %v1976_v17  ;;  %v1979_v42 = vmul.f32 4.0, %v6387_v60  ;;  %v2000_v17 = vrot.slane %v6300_v16, 7 }
 0xcb5   :  { %v6392_v54 = vpop.eup %5342  ;;  %v4733_v43 = vadd.f32 -2.0, %v1977_v32  ;;  %v2015_v1 = vmul.f32 %v6378_v6, %v1999_v28 }
 0xcb6   :  { %v6395_v39 = vpop.eup %5344  ;;  %v1981_v15 = vmul.f32 4.0, %v6392_v54  ;;  %v4735_v58 = vadd.f32 -2.0, %v1979_v42  ;;  %v2016_v42 = vmul.f32 %v6381_v10, %v2000_v17 }
 0xcb7   :  { %2032 = vrot.lane.b32.xlu1 %v4731_v2, %s5665_s0  ;;  %v1980_v5 = vmul.f32 4.0, %v6395_v39 }
 0xcb8   :  { %2034 = vrot.lane.b32.xlu0 %v4732_v26, %s5665_s0  ;;  %v4737_v8 = vadd.f32 -2.0, %v1981_v15 }
 0xcb9   :  { %v4736_v53 = vadd.f32 -2.0, %v1980_v5 }
 0xcbb   :  { %2036 = vrot.lane.b32.xlu1 %v4733_v43, %s5665_s0  ;;  %v2001_v43 = vrot.slane %v6280_v37, 7  ;;  %v2005_v37 = vrot.slane %v6313_v52, 7 }
 0xcbc   :  { %2040 = vrot.lane.b32.xlu0 %v4735_v58, %s5665_s0  ;;  %v2003_v58 = vrot.slane %v6305_v3, 7  ;;  %v2004_v3 = vrot.slane %v6309_v11, 7 }
 0xcbf   :  { %2044 = vrot.lane.b32.xlu1 %v4737_v8, %s5665_s0  ;;  %v2017_v8 = vmul.f32 %v6384_v47, %v2001_v43 }
 0xcc0   :  { %2042 = vrot.lane.b32.xlu0 %v4736_v53, %s5665_s0 }
 0xd25   :  { %v2039_v56 = vpop.permute.xlu1 %2038 }
 0xd26   :  { %v2058_v34 = vmul.f32 %v6373_v21, %v2039_v56  ;;  %v2031_v59 = vpop.permute.xlu0 %2030 }
 0xd27   :  { %v2054_v57 = vmul.f32 %v6375_v48, %v2031_v59 }
 0xd28   :  { %2078 = vrot.lane.b32.xlu1 %v2058_v34, %s5666_s15  ;;  %v2019_v34 = vmul.f32 %v6387_v60, %v2003_v58 }
 0xd29   :  { %v2033_v27 = vpop.permute.xlu1 %2032  ;;  %2070 = vrot.lane.b32.xlu0 %v2054_v57, %s5666_s15 }
 0xd2a   :  { %v2055_v22 = vmul.f32 %v6378_v6, %v2033_v27  ;;  %v2035_v38 = vpop.permute.xlu0 %2034 }
 0xd2b   :  { %v2056_v33 = vmul.f32 %v6381_v10, %v2035_v38  ;;  %v2021_v38 = vmul.f32 %v6392_v54, %v2005_v37 }
 0xd2c   :  { %2072 = vrot.lane.b32.xlu1 %v2055_v22, %s5666_s15 }
 0xd2d   :  { %v2037_v9 = vpop.permute.xlu1 %2036  ;;  %2074 = vrot.lane.b32.xlu0 %v2056_v33, %s5666_s15 }
 0xd2e   :  { %v2057_v18 = vmul.f32 %v6384_v47, %v2037_v9  ;;  %v2041_v24 = vpop.permute.xlu0 %2040 }
 0xd2f   :  { %v2059_v51 = vmul.f32 %v6387_v60, %v2041_v24 }
 0xd30   :  { %2076 = vrot.lane.b32.xlu1 %v2057_v18, %s5666_s15  ;;  %v2020_v18 = vmul.f32 %v6395_v39, %v2004_v3 }
 0xd31   :  { %v2045_v61 = vpop.permute.xlu1 %2044  ;;  %2080 = vrot.lane.b32.xlu0 %v2059_v51, %s5666_s15 }
 0xd32   :  { %v2061_v13 = vmul.f32 %v6392_v54, %v2045_v61  ;;  %v2043_v62 = vpop.permute.xlu0 %2042 }
 0xd33   :  { %v2060_v4 = vmul.f32 %v6395_v39, %v2043_v62 }
 0xd34   :  { %2084 = vrot.lane.b32.xlu1 %v2061_v13, %s5666_s15 }
 0xd35   :  { %2082 = vrot.lane.b32.xlu0 %v2060_v4, %s5666_s15 }
 0xd9a   :  { %v2079_v55 = vpop.permute.xlu1 %2078 }
 0xd9b   :  { %v6426_v30 = vadd.f32 %v2079_v55, %v2018_v25  ;;  %v2071_v31 = vpop.permute.xlu0 %2070 }
 0xd9c   :  { %v6429_v2 = vadd.f32 %v2071_v31, %v2014_v7 }
 0xd9d   :  { %v4742_v32 = vmul.f32 -1.442695, %v6426_v30 }
 0xd9e   :  { %v4738_v12 = vmul.f32 -1.442695, %v6429_v2  ;;  %v2073_v26 = vpop.permute.xlu1 %2072 }
 0xd9f   :  { %5346 = vpow2.f32 %v4742_v32  ;;  %v6436_v49 = vadd.f32 %v2073_v26, %v2015_v1  ;;  %v2075_v15 = vpop.permute.xlu0 %2074 }
 0xda0   :  { %5348 = vpow2.f32 %v4738_v12  ;;  %v6439_v16 = vadd.f32 %v2075_v15, %v2016_v42 }
 0xda1   :  { %v4739_v5 = vmul.f32 -1.442695, %v6436_v49 }
 0xda2   :  { %v4740_v53 = vmul.f32 -1.442695, %v6439_v16  ;;  %v2077_v56 = vpop.permute.xlu1 %2076 }
 0xda3   :  { %5350 = vpow2.f32 %v4739_v5  ;;  %v6446_v59 = vadd.f32 %v2077_v56, %v2017_v8  ;;  %v2081_v57 = vpop.permute.xlu0 %2080 }
 0xda4   :  { %5352 = vpow2.f32 %v4740_v53  ;;  %v6449_v27 = vadd.f32 %v2081_v57, %v2019_v34  ;;  %v2102_v57 = vadd.f32 %v6375_v48, %v6375_v48 }
 0xda5   :  { %v4741_v22 = vmul.f32 -1.442695, %v6446_v59 }
 0xda6   :  { %v4743_v33 = vmul.f32 -1.442695, %v6449_v27  ;;  %v2085_v9 = vpop.permute.xlu1 %2084 }
 0xda7   :  { %5354 = vpow2.f32 %v4741_v22  ;;  %v6455_v52 = vadd.f32 %v2085_v9, %v2021_v38  ;;  %v2083_v24 = vpop.permute.xlu0 %2082  ;;  %v2103_v38 = vadd.f32 %v6378_v6, %v6378_v6  ;;  %v2104_v9 = vadd.f32 %v6381_v10, %v6381_v10 }
 0xda8   :  { %5356 = vpow2.f32 %v4743_v33  ;;  %v6457_v51 = vadd.f32 %v2083_v24, %v2020_v18 }
 0xda9   :  { %v4745_v11 = vmul.f32 -1.442695, %v6455_v52 }
 0xdaa   :  { %v4744_v61 = vmul.f32 -1.442695, %v6457_v51 }
 0xdab   :  { %5358 = vpow2.f32 %v4745_v11 }
 0xdac   :  { %v5347_v13 = vpop.eup %5346  ;;  %5360 = vpow2.f32 %v4744_v61 }
 0xdad   :  { %v5349_v62 = vpop.eup %5348  ;;  %v2138_v4 = vadd.f32 1.0, %v5347_v13 }
 0xdae   :  { %v2134_v63 = vadd.f32 1.0, %v5349_v62  ;;  %v2105_v62 = vadd.f32 %v6384_v47, %v6384_v47 }
 0xdaf   :  { %5362 = vrcp.f32 %v2138_v4  ;;  %v2106_v4 = vadd.f32 %v6373_v21, %v6373_v21 }
 0xdb0   :  { %v5351_v44 = vpop.eup %5350  ;;  %5364 = vrcp.f32 %v2134_v63 }
 0xdb1   :  { %v5353_v25 = vpop.eup %5352  ;;  %v2135_v55 = vadd.f32 1.0, %v5351_v44 }
 0xdb2   :  { %v2136_v7 = vadd.f32 1.0, %v5353_v25  ;;  %v2107_v25 = vadd.f32 %v6387_v60, %v6387_v60 }
 0xdb3   :  { %5366 = vrcp.f32 %v2135_v55 }
 0xdb4   :  { %v5355_v28 = vpop.eup %5354  ;;  %5368 = vrcp.f32 %v2136_v7 }
 0xdb5   :  { %v5357_v31 = vpop.eup %5356  ;;  %v2137_v17 = vadd.f32 1.0, %v5355_v28 }
 0xdb6   :  { %v2139_v32 = vadd.f32 1.0, %v5357_v31 }
 0xdb7   :  { %5370 = vrcp.f32 %v2137_v17 }
 0xdb8   :  { %v5359_v1 = vpop.eup %5358  ;;  %5372 = vrcp.f32 %v2139_v32 }
 0xdb9   :  { %v5361_v12 = vpop.eup %5360  ;;  %v2141_v26 = vadd.f32 1.0, %v5359_v1 }
 0xdba   :  { %v2140_v42 = vadd.f32 1.0, %v5361_v12  ;;  %v2109_v12 = vadd.f32 %v6392_v54, %v6392_v54 }
 0xdbb   :  { %5374 = vrcp.f32 %v2141_v26 }
 0xdbc   :  { %v5363_v43 = vpop.eup %5362  ;;  %5376 = vrcp.f32 %v2140_v42 }
 0xdbd   :  { %v5365_v15 = vpop.eup %5364  ;;  %2174 = vrot.lane.b32.xlu1 %v5363_v43, %s5662_s16  ;;  %v2108_v43 = vadd.f32 %v6395_v39, %v6395_v39 }
 0xdbe   :  { %2166 = vrot.lane.b32.xlu0 %v5365_v15, %s5662_s16 }
 0xdc0   :  { %v5367_v58 = vpop.eup %5366 }
 0xdc1   :  { %v5369_v5 = vpop.eup %5368  ;;  %2168 = vrot.lane.b32.xlu1 %v5367_v58, %s5662_s16 }
 0xdc2   :  { %2170 = vrot.lane.b32.xlu0 %v5369_v5, %s5662_s16 }
 0xdc4   :  { %v5371_v8 = vpop.eup %5370 }
 0xdc5   :  { %v5373_v53 = vpop.eup %5372  ;;  %2172 = vrot.lane.b32.xlu1 %v5371_v8, %s5662_s16 }
 0xdc6   :  { %2176 = vrot.lane.b32.xlu0 %v5373_v53, %s5662_s16 }
 0xdc8   :  { %v5375_v56 = vpop.eup %5374 }
 0xdc9   :  { %v5377_v34 = vpop.eup %5376  ;;  %2180 = vrot.lane.b32.xlu1 %v5375_v56, %s5662_s16 }
 0xdca   :  { %2178 = vrot.lane.b32.xlu0 %v5377_v34, %s5662_s16 }
 0xe2f   :  { %v2175_v37 = vpop.permute.xlu1 %2174 }
 0xe30   :  { %v2167_v3 = vpop.permute.xlu0 %2166  ;;  %v2194_v31 = vmul.f32 %v2175_v37, %v2106_v4 }
 0xe31   :  { %v2190_v22 = vmul.f32 %v2167_v3, %v2102_v57 }
 0xe32   :  { %v2202_v8 = vsub.f32 %v2194_v31, %v6373_v21 }
 0xe33   :  { %v2169_v33 = vpop.permute.xlu1 %2168  ;;  %v2198_v18 = vsub.f32 %v2190_v22, %v6375_v48 }
 0xe34   :  { %v2191_v24 = vmul.f32 %v2169_v33, %v2103_v38  ;;  %v2171_v11 = vpop.permute.xlu0 %2170 }
 0xe35   :  { %v2192_v61 = vmul.f32 %v2171_v11, %v2104_v9  ;;  %v2214_v55 = vrot.slane %v2198_v18, 4 }
 0xe36   :  { %v2199_v13 = vsub.f32 %v2191_v24, %v6378_v6 }
 0xe37   :  { %v2200_v63 = vsub.f32 %v2192_v61, %v6381_v10  ;;  %v2173_v44 = vpop.permute.xlu1 %2172 }
 0xe38   :  { %v2215_v7 = vrot.slane %v2199_v13, 3  ;;  %v2193_v48 = vmul.f32 %v2173_v44, %v2105_v62  ;;  %v2177_v28 = vpop.permute.xlu0 %2176 }
 0xe39   :  { %v2217_v17 = vrot.slane %v2200_v63, 2  ;;  %v2195_v32 = vmul.f32 %v2177_v28, %v2107_v25 }
 0xe3a   :  { %v2216_v6 = vsel %vm608_vm2, %v2215_v7, %v2214_v55  ;;  %v2201_v1 = vsub.f32 %v2193_v48, %v6384_v47 }
 0xe3b   :  { %v2218_v10 = vsel %vm611_vm3, %v2217_v17, %v2216_v6  ;;  %v2203_v26 = vsub.f32 %v2195_v32, %v6387_v60  ;;  %v2181_v42 = vpop.permute.xlu1 %2180 }
 0xe3c   :  { %v2219_v15 = vrot.slane %v2201_v1, 1  ;;  %v2197_v58 = vmul.f32 %v2181_v42, %v2109_v12  ;;  %v2179_v5 = vpop.permute.xlu0 %2178 }
 0xe3d   :  { %v2196_v53 = vmul.f32 %v2179_v5, %v2108_v43  ;;  %v2222_v47 = vrot.slane %v2203_v26, 7 }
 0xe3e   :  { %v2220_v56 = vsel %vm614_vm4, %v2219_v15, %v2218_v10  ;;  %v2205_v34 = vsub.f32 %v2197_v58, %v6392_v54  ;;  %v5636_v54 = vld [vmem:[%s7067_s1 + $0x10] sm:$0xff] }
 0xe3f   :  { %v2204_v37 = vsub.f32 %v2196_v53, %v6395_v39  ;;  %v2221_v57 = vsel %vm617_vm5, %v2202_v8, %v2220_v56  ;;  %v5637_v39 = vld [vmem:[%s7067_s1 + $0x8] sm:$0xff] }
 0xe40   :  { %v2226_v3 = vrot.slane %v2205_v34, 5  ;;  %v2223_v22 = vsel %vm620_vm6, %v2222_v47, %v2221_v57 }
 0xe41   :  { %v2224_v60 = vrot.slane %v2204_v37, 6 }
 0xe43   :  { %v2225_v38 = vsel %vm623_vm7, %v2224_v60, %v2223_v22 }
 0xe44   :  { %v6500_v33 = vsel %vm626_vm8, %v2226_v3, %v2225_v38 }
 0xe45   :  { %2228 = vrot.lane.b32.xlu0 %v6500_v33, %s5667_s17 }
 0xeb7   :  { %v2229_v21 = vpop.permute.xlu0 %2228 }
 0xeb8   :  { %4968 = vmatmul.mubr.msk.f32.vlgmr.msra.gmra.mxu1 %vm245_vm9, %v2229_v21 }
 0xeb9   :  { %4978 = vmatpush3.msra.mxu1 %v5636_v54  ;;  %4981 = vmatprep.mubr.msk.f32.mxu1 %vm5664_vm0, %v5663_v0 }
 0xeba   :  { %4979 = vmatprep.subr.mxu1 %v5663_v0 }
 0xebb   :  { %4980 = vmatpush3.msra.mxu1 %v5637_v39 }
 0xf78   :  { %v2298_v9 = vpop.f32.mrf.mxu1 }
 0xf79   :  { %v2303_v18 = vrot.slane %v2298_v9, 3  ;;  %v2304_v24 = vrot.slane %v2298_v9, 4  ;;  %v2305_v11 = vrot.slane %v2298_v9, 5  ;;  %v2306_v61 = vrot.slane %v2298_v9, 6 }
 0xf7a   :  { %v2307_v13 = vrot.slane %v2298_v9, 7  ;;  %v2308_v62 = vrot.slane %v2298_v9, 1  ;;  %v2309_v4 = vrot.slane %v2298_v9, 2  ;;  %v2323_v63 = vadd.f32 %v2298_v9, %v5776_v35  ;;  %v4969_v44 = vpop.f32.mrf.mxu1 }
 0xf7b   :  { %v2318_v25 = vadd.f32 %v2303_v18, %v5766_v19  ;;  %v2319_v55 = vadd.f32 %v2304_v24, %v5764_v14  ;;  %v2320_v7 = vadd.f32 %v2305_v11, %v5773_v29  ;;  %v2321_v48 = vadd.f32 %v2306_v61, %v5769_v23 }
 0xf7c   :  { %v2322_v28 = vadd.f32 %v2307_v13, %v5779_v40  ;;  %v2324_v31 = vadd.f32 %v2308_v62, %v5785_v50  ;;  %v4752_v17 = vmul.f32 -1.442695, %v2323_v63  ;;  %v2325_v32 = vadd.f32 %v2309_v4, %v5782_v45 }
 0xf7d   :  { %v4747_v6 = vmul.f32 -1.442695, %v2318_v25  ;;  %v4748_v1 = vmul.f32 -1.442695, %v2319_v55  ;;  %v4749_v12 = vmul.f32 -1.442695, %v2320_v7 }
 0xf7e   :  { %v4750_v10 = vmul.f32 -1.442695, %v2321_v48  ;;  %5378 = vpow2.f32 %v4752_v17  ;;  %v4751_v26 = vmul.f32 -1.442695, %v2322_v28  ;;  %v4753_v42 = vmul.f32 -1.442695, %v2324_v31 }
 0xf7f   :  { %5380 = vpow2.f32 %v4747_v6  ;;  %v4754_v43 = vmul.f32 -1.442695, %v2325_v32 }
 0xf80   :  { %5382 = vpow2.f32 %v4748_v1 }
 0xf81   :  { %5384 = vpow2.f32 %v4749_v12 }
 0xf82   :  { %5386 = vpow2.f32 %v4750_v10 }
 0xf83   :  { %5388 = vpow2.f32 %v4751_v26 }
 0xf84   :  { %5390 = vpow2.f32 %v4753_v42 }
 0xf85   :  { %5392 = vpow2.f32 %v4754_v43 }
 0xf8b   :  { %v5379_v15 = vpop.eup %5378 }
 0xf8c   :  { %v5381_v58 = vpop.eup %5380  ;;  %v2355_v21 = vadd.f32 1.0, %v5379_v15 }
 0xf8d   :  { %v5383_v5 = vpop.eup %5382  ;;  %v2350_v8 = vadd.f32 1.0, %v5381_v58 }
 0xf8e   :  { %v5385_v53 = vpop.eup %5384  ;;  %v2351_v56 = vadd.f32 1.0, %v5383_v5 }
 0xf8f   :  { %v5387_v47 = vpop.eup %5386  ;;  %v2352_v34 = vadd.f32 1.0, %v5385_v53  ;;  %5394 = vrcp.f32 %v2350_v8 }
 0xf90   :  { %v5389_v37 = vpop.eup %5388  ;;  %v2353_v57 = vadd.f32 1.0, %v5387_v47  ;;  %5396 = vrcp.f32 %v2351_v56 }
 0xf91   :  { %v5391_v60 = vpop.eup %5390  ;;  %v2354_v3 = vadd.f32 1.0, %v5389_v37  ;;  %5398 = vrcp.f32 %v2352_v34 }
 0xf92   :  { %v5393_v22 = vpop.eup %5392  ;;  %v2356_v38 = vadd.f32 1.0, %v5391_v60  ;;  %5400 = vrcp.f32 %v2353_v57 }
 0xf93   :  { %5402 = vrcp.f32 %v2354_v3  ;;  %v2357_v54 = vadd.f32 1.0, %v5393_v22 }
 0xf94   :  { %5404 = vrcp.f32 %v2356_v38 }
 0xf95   :  { %5406 = vrcp.f32 %v2355_v21  ;;  %v2398_v21 = vrot.slane %v6429_v2, 7 }
 0xf96   :  { %5408 = vrcp.f32 %v2357_v54  ;;  %v2399_v54 = vrot.slane %v6436_v49, 7 }
 0xf9c   :  { %v6522_v39 = vpop.eup %5394 }
 0xf9d   :  { %v6524_v9 = vpop.eup %5396  ;;  %v2374_v18 = vmul.f32 4.0, %v6522_v39 }
 0xf9e   :  { %v6527_v24 = vpop.eup %5398  ;;  %v2375_v11 = vmul.f32 4.0, %v6524_v9 }
 0xf9f   :  { %v6530_v61 = vpop.eup %5400  ;;  %v4755_v13 = vadd.f32 -2.0, %v2374_v18  ;;  %v2376_v62 = vmul.f32 4.0, %v6527_v24  ;;  %v2414_v18 = vmul.f32 %v6522_v39, %v2398_v21 }
 0xfa0   :  { %v6533_v4 = vpop.eup %5402  ;;  %v4756_v63 = vadd.f32 -2.0, %v2375_v11  ;;  %v2377_v44 = vmul.f32 4.0, %v6530_v61  ;;  %v2415_v11 = vmul.f32 %v6524_v9, %v2399_v54 }
 0xfa1   :  { %v6536_v25 = vpop.eup %5404  ;;  %2430 = vrot.lane.b32.xlu1 %v4755_v13, %s5665_s0  ;;  %v4757_v55 = vadd.f32 -2.0, %v2376_v62  ;;  %v2378_v7 = vmul.f32 4.0, %v6533_v4  ;;  %v2400_v62 = vrot.slane %v6439_v16, 7 }
 0xfa2   :  { %2432 = vrot.lane.b32.xlu0 %v4756_v63, %s5665_s0  ;;  %v6541_v48 = vpop.eup %5406  ;;  %v4758_v28 = vadd.f32 -2.0, %v2377_v44  ;;  %v2380_v31 = vmul.f32 4.0, %v6536_v25 }
 0xfa3   :  { %v6544_v17 = vpop.eup %5408  ;;  %v4759_v32 = vadd.f32 -2.0, %v2378_v7  ;;  %v2379_v6 = vmul.f32 4.0, %v6541_v48  ;;  %v2416_v2 = vmul.f32 %v6527_v24, %v2400_v62 }
 0xfa4   :  { %v4761_v1 = vadd.f32 -2.0, %v2380_v31  ;;  %v2381_v12 = vmul.f32 4.0, %v6544_v17 }
 0xfa5   :  { %2434 = vrot.lane.b32.xlu1 %v4757_v55, %s5665_s0  ;;  %v4760_v10 = vadd.f32 -2.0, %v2379_v6  ;;  %v2401_v55 = vrot.slane %v6446_v59, 7  ;;  %v2402_v6 = vrot.slane %v6426_v30, 7  ;;  %v2403_v30 = vrot.slane %v6449_v27, 7 }
 0xfa6   :  { %2436 = vrot.lane.b32.xlu0 %v4758_v28, %s5665_s0  ;;  %v4762_v26 = vadd.f32 -2.0, %v2381_v12  ;;  %v2404_v12 = vrot.slane %v6457_v51, 7  ;;  %v2405_v51 = vrot.slane %v6455_v52, 7 }
 0xfa7   :  { %v2417_v31 = vmul.f32 %v6530_v61, %v2401_v55 }
 0xfa9   :  { %2438 = vrot.lane.b32.xlu1 %v4759_v32, %s5665_s0 }
 0xfaa   :  { %2442 = vrot.lane.b32.xlu0 %v4761_v1, %s5665_s0 }
 0xfad   :  { %2440 = vrot.lane.b32.xlu1 %v4760_v10, %s5665_s0 }
 0xfae   :  { %2444 = vrot.lane.b32.xlu0 %v4762_v26, %s5665_s0  ;;  %v2418_v26 = vmul.f32 %v6533_v4, %v2402_v6 }
0x1013   :  { %v2431_v42 = vpop.permute.xlu1 %2430 }
0x1014   :  { %v2433_v43 = vpop.permute.xlu0 %2432  ;;  %v2454_v15 = vmul.f32 %v6522_v39, %v2431_v42 }
0x1015   :  { %v2455_v58 = vmul.f32 %v6524_v9, %v2433_v43  ;;  %v2420_v43 = vmul.f32 %v6536_v25, %v2404_v12 }
0x1016   :  { %2470 = vrot.lane.b32.xlu1 %v2454_v15, %s5666_s15 }
0x1017   :  { %2472 = vrot.lane.b32.xlu0 %v2455_v58, %s5666_s15  ;;  %v2435_v5 = vpop.permute.xlu1 %2434 }
0x1018   :  { %v2437_v8 = vpop.permute.xlu0 %2436  ;;  %v2456_v53 = vmul.f32 %v6527_v24, %v2435_v5 }
0x1019   :  { %v2457_v56 = vmul.f32 %v6530_v61, %v2437_v8 }
0x101a   :  { %2474 = vrot.lane.b32.xlu1 %v2456_v53, %s5666_s15 }
0x101b   :  { %2476 = vrot.lane.b32.xlu0 %v2457_v56, %s5666_s15  ;;  %v2439_v47 = vpop.permute.xlu1 %2438  ;;  %v2419_v56 = vmul.f32 %v6541_v48, %v2403_v30 }
0x101c   :  { %v2443_v34 = vpop.permute.xlu0 %2442  ;;  %v2458_v37 = vmul.f32 %v6533_v4, %v2439_v47 }
0x101d   :  { %v2460_v57 = vmul.f32 %v6536_v25, %v2443_v34  ;;  %v2421_v34 = vmul.f32 %v6544_v17, %v2405_v51  ;;  %v2503_v51 = vadd.f32 %v6524_v9, %v6524_v9 }
0x101e   :  { %2478 = vrot.lane.b32.xlu1 %v2458_v37, %s5666_s15 }
0x101f   :  { %2482 = vrot.lane.b32.xlu0 %v2460_v57, %s5666_s15  ;;  %v2441_v60 = vpop.permute.xlu1 %2440 }
0x1020   :  { %v2445_v3 = vpop.permute.xlu0 %2444  ;;  %v2459_v22 = vmul.f32 %v6541_v48, %v2441_v60 }
0x1021   :  { %v2461_v38 = vmul.f32 %v6544_v17, %v2445_v3 }
0x1022   :  { %2480 = vrot.lane.b32.xlu1 %v2459_v22, %s5666_s15 }
0x1023   :  { %2484 = vrot.lane.b32.xlu0 %v2461_v38, %s5666_s15 }
0x1088   :  { %v2471_v13 = vpop.permute.xlu1 %2470 }
0x1089   :  { %v2473_v63 = vpop.permute.xlu0 %2472  ;;  %v6575_v44 = vadd.f32 %v2471_v13, %v2414_v18 }
0x108a   :  { %v6578_v7 = vadd.f32 %v2473_v63, %v2415_v11 }
0x108b   :  { %v4763_v28 = vmul.f32 -1.442695, %v6575_v44 }
0x108c   :  { %v4764_v49 = vmul.f32 -1.442695, %v6578_v7  ;;  %v2475_v32 = vpop.permute.xlu1 %2474 }
0x108d   :  { %5410 = vpow2.f32 %v4763_v28  ;;  %v2477_v16 = vpop.permute.xlu0 %2476  ;;  %v6585_v1 = vadd.f32 %v2475_v32, %v2416_v2 }
0x108e   :  { %5412 = vpow2.f32 %v4764_v49  ;;  %v6588_v59 = vadd.f32 %v2477_v16, %v2417_v31 }
0x108f   :  { %v4765_v10 = vmul.f32 -1.442695, %v6585_v1 }
0x1090   :  { %v4766_v42 = vmul.f32 -1.442695, %v6588_v59  ;;  %v2479_v15 = vpop.permute.xlu1 %2478 }
0x1091   :  { %5414 = vpow2.f32 %v4765_v10  ;;  %v2483_v58 = vpop.permute.xlu0 %2482  ;;  %v6595_v5 = vadd.f32 %v2479_v15, %v2418_v26 }
0x1092   :  { %5416 = vpow2.f32 %v4766_v42  ;;  %v6598_v8 = vadd.f32 %v2483_v58, %v2420_v43  ;;  %v2502_v58 = vadd.f32 %v6522_v39, %v6522_v39 }
0x1093   :  { %v4767_v53 = vmul.f32 -1.442695, %v6595_v5 }
0x1094   :  { %v4769_v47 = vmul.f32 -1.442695, %v6598_v8  ;;  %v2481_v37 = vpop.permute.xlu1 %2480 }
0x1095   :  { %5418 = vpow2.f32 %v4767_v53  ;;  %v2485_v27 = vpop.permute.xlu0 %2484  ;;  %v6604_v57 = vadd.f32 %v2481_v37, %v2419_v56 }
0x1096   :  { %5420 = vpow2.f32 %v4769_v47  ;;  %v6606_v60 = vadd.f32 %v2485_v27, %v2421_v34  ;;  %v2504_v27 = vadd.f32 %v6527_v24, %v6527_v24 }
0x1097   :  { %v4768_v52 = vmul.f32 -1.442695, %v6604_v57 }
0x1098   :  { %v4770_v3 = vmul.f32 -1.442695, %v6606_v60 }
0x1099   :  { %5422 = vpow2.f32 %v4768_v52 }
0x109a   :  { %v5411_v22 = vpop.eup %5410  ;;  %5424 = vpow2.f32 %v4770_v3  ;;  %v2505_v3 = vadd.f32 %v6530_v61, %v6530_v61 }
0x109b   :  { %v5413_v38 = vpop.eup %5412  ;;  %v2534_v21 = vadd.f32 1.0, %v5411_v22 }
0x109c   :  { %v2535_v54 = vadd.f32 1.0, %v5413_v38 }
0x109d   :  { %5426 = vrcp.f32 %v2534_v21 }
0x109e   :  { %v5415_v18 = vpop.eup %5414  ;;  %5428 = vrcp.f32 %v2535_v54 }
0x109f   :  { %v5417_v11 = vpop.eup %5416  ;;  %v2536_v13 = vadd.f32 1.0, %v5415_v18 }
0x10a0   :  { %v2537_v62 = vadd.f32 1.0, %v5417_v11 }
0x10a1   :  { %5430 = vrcp.f32 %v2536_v13 }
0x10a2   :  { %v5419_v63 = vpop.eup %5418  ;;  %5432 = vrcp.f32 %v2537_v62  ;;  %v2506_v62 = vadd.f32 %v6533_v4, %v6533_v4 }
0x10a3   :  { %v5421_v55 = vpop.eup %5420  ;;  %v2538_v28 = vadd.f32 1.0, %v5419_v63  ;;  %v2508_v63 = vadd.f32 %v6536_v25, %v6536_v25 }
0x10a4   :  { %v2540_v2 = vadd.f32 1.0, %v5421_v55 }
0x10a5   :  { %5434 = vrcp.f32 %v2538_v28 }
0x10a6   :  { %v5423_v49 = vpop.eup %5422  ;;  %5436 = vrcp.f32 %v2540_v2 }
0x10a7   :  { %v5425_v31 = vpop.eup %5424  ;;  %v2539_v32 = vadd.f32 1.0, %v5423_v49 }
0x10a8   :  { %v2541_v6 = vadd.f32 1.0, %v5425_v31 }
0x10a9   :  { %5438 = vrcp.f32 %v2539_v32 }
0x10aa   :  { %v5427_v16 = vpop.eup %5426  ;;  %5440 = vrcp.f32 %v2541_v6 }
0x10ab   :  { %v5429_v12 = vpop.eup %5428  ;;  %2566 = vrot.lane.b32.xlu1 %v5427_v16, %s5662_s16  ;;  %v2507_v16 = vadd.f32 %v6541_v48, %v6541_v48 }
0x10ac   :  { %2568 = vrot.lane.b32.xlu0 %v5429_v12, %s5662_s16  ;;  %v2509_v12 = vadd.f32 %v6544_v17, %v6544_v17 }
0x10ae   :  { %v5431_v10 = vpop.eup %5430 }
0x10af   :  { %v5433_v26 = vpop.eup %5432  ;;  %2570 = vrot.lane.b32.xlu1 %v5431_v10, %s5662_s16 }
0x10b0   :  { %2572 = vrot.lane.b32.xlu0 %v5433_v26, %s5662_s16 }
0x10b2   :  { %v5435_v42 = vpop.eup %5434 }
0x10b3   :  { %v5437_v43 = vpop.eup %5436  ;;  %2574 = vrot.lane.b32.xlu1 %v5435_v42, %s5662_s16 }
0x10b4   :  { %2578 = vrot.lane.b32.xlu0 %v5437_v43, %s5662_s16 }
0x10b6   :  { %v5439_v15 = vpop.eup %5438 }
0x10b7   :  { %v5441_v30 = vpop.eup %5440  ;;  %2576 = vrot.lane.b32.xlu1 %v5439_v15, %s5662_s16 }
0x10b8   :  { %2580 = vrot.lane.b32.xlu0 %v5441_v30, %s5662_s16 }
0x111d   :  { %v2567_v53 = vpop.permute.xlu1 %2566 }
0x111e   :  { %v2569_v56 = vpop.permute.xlu0 %2568  ;;  %v2590_v47 = vmul.f32 %v2567_v53, %v2502_v58 }
0x111f   :  { %v2591_v34 = vmul.f32 %v2569_v56, %v2503_v51 }
0x1120   :  { %v2598_v37 = vsub.f32 %v2590_v47, %v6522_v39 }
0x1121   :  { %v2599_v52 = vsub.f32 %v2591_v34, %v6524_v9  ;;  %v2571_v22 = vpop.permute.xlu1 %2570 }
0x1122   :  { %v2573_v38 = vpop.permute.xlu0 %2572  ;;  %v2592_v21 = vmul.f32 %v2571_v22, %v2504_v27  ;;  %v2614_v18 = vrot.slane %v2598_v37, 5 }
0x1123   :  { %v2615_v54 = vrot.slane %v2599_v52, 4  ;;  %v2593_v11 = vmul.f32 %v2573_v38, %v2505_v3 }
0x1124   :  { %v2600_v13 = vsub.f32 %v2592_v21, %v6527_v24 }
0x1125   :  { %v2601_v39 = vsub.f32 %v2593_v11, %v6530_v61  ;;  %v2575_v9 = vpop.permute.xlu1 %2574  ;;  %v2616_v49 = vsel %vm608_vm2, %v2615_v54, %v2614_v18 }
0x1126   :  { %v2617_v55 = vrot.slane %v2600_v13, 3  ;;  %v2579_v28 = vpop.permute.xlu0 %2578  ;;  %v2594_v2 = vmul.f32 %v2575_v9, %v2506_v62 }
0x1127   :  { %v2619_v31 = vrot.slane %v2601_v39, 2  ;;  %v2596_v32 = vmul.f32 %v2579_v28, %v2508_v63 }
0x1128   :  { %v2618_v6 = vsel %vm611_vm3, %v2617_v55, %v2616_v49  ;;  %v2602_v24 = vsub.f32 %v2594_v2, %v6533_v4 }
0x1129   :  { %v2604_v61 = vsub.f32 %v2596_v32, %v6536_v25  ;;  %v2577_v10 = vpop.permute.xlu1 %2576  ;;  %v2620_v15 = vsel %vm614_vm4, %v2619_v31, %v2618_v6 }
0x112a   :  { %v2621_v26 = vrot.slane %v2602_v24, 1  ;;  %v2581_v42 = vpop.permute.xlu0 %2580  ;;  %v2595_v43 = vmul.f32 %v2577_v10, %v2507_v16 }
0x112b   :  { %v2597_v30 = vmul.f32 %v2581_v42, %v2509_v12  ;;  %v2624_v4 = vrot.slane %v2604_v61, 7 }
0x112c   :  { %v2622_v58 = vsel %vm617_vm5, %v2621_v26, %v2620_v15  ;;  %v2603_v51 = vsub.f32 %v2595_v43, %v6541_v48 }
0x112d   :  { %v2605_v53 = vsub.f32 %v2597_v30, %v6544_v17 }
0x112e   :  { %v2623_v56 = vsel %vm620_vm6, %v2603_v51, %v2622_v58 }
0x112f   :  { %v2626_v25 = vrot.slane %v2605_v53, 6  ;;  %v2625_v47 = vsel %vm623_vm7, %v2624_v4, %v2623_v56 }
0x1131   :  { %v6649_v34 = vsel %vm626_vm8, %v2626_v25, %v2625_v47 }
0x1132   :  { %2628 = vrot.lane.b32.xlu1 %v6649_v34, %s5667_s17 }
0x11a4   :  { %v2629_v37 = vpop.permute.xlu1 %2628 }
0x11a5   :  { %4975 = vmatmul.mubr.msk.f32.vlgmr.msra.gmra.mxu0 %vm245_vm9, %v2629_v37 }
0x11a6   :  { %3546 = vmatprep.mubr.f32.mxu0 %v5663_v0 }
0x1265   :  { %v2698_v48 = vpop.f32.mrf.mxu0 }
0x1266   :  { %v2703_v27 = vrot.slane %v2698_v48, 2  ;;  %v2704_v52 = vrot.slane %v2698_v48, 3  ;;  %v2705_v17 = vrot.slane %v2698_v48, 4  ;;  %v2706_v3 = vrot.slane %v2698_v48, 5 }
0x1267   :  { %v2707_v22 = vrot.slane %v2698_v48, 6  ;;  %v2708_v38 = vrot.slane %v2698_v48, 7  ;;  %v2709_v21 = vrot.slane %v2698_v48, 1  ;;  %v2724_v54 = vadd.f32 %v2698_v48, %v5785_v50  ;;  %v4976_v18 = vpop.f32.mrf.mxu0 }
0x1268   :  { %v2718_v11 = vadd.f32 %v2703_v27, %v5766_v19  ;;  %v2719_v13 = vadd.f32 %v2704_v52, %v5764_v14  ;;  %v2720_v62 = vadd.f32 %v2705_v17, %v5773_v29  ;;  %v2721_v39 = vadd.f32 %v2706_v3, %v5769_v23 }
0x1269   :  { %v2722_v63 = vadd.f32 %v2707_v22, %v5779_v40  ;;  %v2723_v9 = vadd.f32 %v2708_v38, %v5776_v35  ;;  %v4778_v55 = vmul.f32 -1.442695, %v2724_v54  ;;  %v2725_v28 = vadd.f32 %v2709_v21, %v5782_v45 }
0x126a   :  { %v4772_v2 = vmul.f32 -1.442695, %v2718_v11  ;;  %v4773_v49 = vmul.f32 -1.442695, %v2719_v13  ;;  %v4774_v31 = vmul.f32 -1.442695, %v2720_v62 }
0x126b   :  { %v4775_v32 = vmul.f32 -1.442695, %v2721_v39  ;;  %5442 = vpow2.f32 %v4778_v55  ;;  %v4776_v6 = vmul.f32 -1.442695, %v2722_v63  ;;  %v4777_v24 = vmul.f32 -1.442695, %v2723_v9 }
0x126c   :  { %5444 = vpow2.f32 %v4772_v2  ;;  %v4779_v16 = vmul.f32 -1.442695, %v2725_v28 }
0x126d   :  { %5446 = vpow2.f32 %v4773_v49 }
0x126e   :  { %5448 = vpow2.f32 %v4774_v31 }
0x126f   :  { %5450 = vpow2.f32 %v4775_v32 }
0x1270   :  { %5452 = vpow2.f32 %v4776_v6 }
0x1271   :  { %5454 = vpow2.f32 %v4777_v24 }
0x1272   :  { %5456 = vpow2.f32 %v4779_v16 }
0x1278   :  { %v5443_v61 = vpop.eup %5442 }
0x1279   :  { %v5445_v12 = vpop.eup %5444  ;;  %v2756_v37 = vadd.f32 1.0, %v5443_v61 }
0x127a   :  { %v5447_v10 = vpop.eup %5446  ;;  %v2750_v26 = vadd.f32 1.0, %v5445_v12 }
0x127b   :  { %v5449_v42 = vpop.eup %5448  ;;  %v2751_v43 = vadd.f32 1.0, %v5447_v10 }
0x127c   :  { %v5451_v15 = vpop.eup %5450  ;;  %v2752_v30 = vadd.f32 1.0, %v5449_v42  ;;  %5458 = vrcp.f32 %v2750_v26 }
0x127d   :  { %v5453_v58 = vpop.eup %5452  ;;  %v2753_v51 = vadd.f32 1.0, %v5451_v15  ;;  %5460 = vrcp.f32 %v2751_v43 }
0x127e   :  { %v5455_v4 = vpop.eup %5454  ;;  %v2754_v53 = vadd.f32 1.0, %v5453_v58  ;;  %5462 = vrcp.f32 %v2752_v30 }
0x127f   :  { %v5457_v56 = vpop.eup %5456  ;;  %v2755_v25 = vadd.f32 1.0, %v5455_v4  ;;  %5464 = vrcp.f32 %v2753_v51 }
0x1280   :  { %v2757_v47 = vadd.f32 1.0, %v5457_v56  ;;  %5466 = vrcp.f32 %v2754_v53 }
0x1281   :  { %5468 = vrcp.f32 %v2755_v25 }
0x1282   :  { %5470 = vrcp.f32 %v2757_v47 }
0x1283   :  { %5472 = vrcp.f32 %v2756_v37  ;;  %v2798_v37 = vrot.slane %v6575_v44, 7 }
0x1289   :  { %v6663_v48 = vpop.eup %5458 }
0x128a   :  { %v6665_v27 = vpop.eup %5460  ;;  %v2774_v52 = vmul.f32 4.0, %v6663_v48 }
0x128b   :  { %v6668_v17 = vpop.eup %5462  ;;  %v2775_v3 = vmul.f32 4.0, %v6665_v27 }
0x128c   :  { %v6671_v22 = vpop.eup %5464  ;;  %v4780_v38 = vadd.f32 -2.0, %v2774_v52  ;;  %v2776_v21 = vmul.f32 4.0, %v6668_v17  ;;  %v2799_v52 = vrot.slane %v6578_v7, 7 }
0x128d   :  { %v6674_v54 = vpop.eup %5466  ;;  %v4781_v18 = vadd.f32 -2.0, %v2775_v3  ;;  %v2777_v11 = vmul.f32 4.0, %v6671_v22  ;;  %v2814_v3 = vmul.f32 %v6663_v48, %v2798_v37 }
0x128e   :  { %v6677_v13 = vpop.eup %5468  ;;  %2830 = vrot.lane.b32.xlu0 %v4780_v38, %s5665_s0  ;;  %v4782_v62 = vadd.f32 -2.0, %v2776_v21  ;;  %v2778_v39 = vmul.f32 4.0, %v6674_v54  ;;  %v2815_v38 = vmul.f32 %v6665_v27, %v2799_v52 }
0x128f   :  { %2832 = vrot.lane.b32.xlu1 %v4781_v18, %s5665_s0  ;;  %v6682_v63 = vpop.eup %5470  ;;  %v4783_v9 = vadd.f32 -2.0, %v2777_v11  ;;  %v2779_v55 = vmul.f32 4.0, %v6677_v13  ;;  %v2800_v18 = vrot.slane %v6585_v1, 7 }
0x1290   :  { %v6685_v28 = vpop.eup %5472  ;;  %v4784_v2 = vadd.f32 -2.0, %v2778_v39  ;;  %v2781_v49 = vmul.f32 4.0, %v6682_v63  ;;  %v2801_v39 = vrot.slane %v6588_v59, 7 }
0x1291   :  { %v4785_v31 = vadd.f32 -2.0, %v2779_v55  ;;  %v2780_v32 = vmul.f32 4.0, %v6685_v28  ;;  %v2816_v44 = vmul.f32 %v6668_v17, %v2800_v18 }
0x1292   :  { %2834 = vrot.lane.b32.xlu0 %v4782_v62, %s5665_s0  ;;  %v4787_v6 = vadd.f32 -2.0, %v2781_v49 }
0x1293   :  { %2836 = vrot.lane.b32.xlu1 %v4783_v9, %s5665_s0  ;;  %v4786_v24 = vadd.f32 -2.0, %v2780_v32 }
0x1296   :  { %2838 = vrot.lane.b32.xlu0 %v4784_v2, %s5665_s0  ;;  %v2817_v2 = vmul.f32 %v6671_v22, %v2801_v39 }
0x1297   :  { %2840 = vrot.lane.b32.xlu1 %v4785_v31, %s5665_s0  ;;  %v2802_v31 = vrot.slane %v6595_v5, 7  ;;  %v2805_v5 = vrot.slane %v6606_v60, 7 }
0x129a   :  { %2844 = vrot.lane.b32.xlu0 %v4787_v6, %s5665_s0  ;;  %v2803_v6 = vrot.slane %v6604_v57, 7  ;;  %v2804_v57 = vrot.slane %v6598_v8, 7 }
0x129b   :  { %2842 = vrot.lane.b32.xlu1 %v4786_v24, %s5665_s0 }
0x1300   :  { %v2831_v16 = vpop.permute.xlu0 %2830 }
0x1301   :  { %v2833_v61 = vpop.permute.xlu1 %2832  ;;  %v2854_v12 = vmul.f32 %v6663_v48, %v2831_v16  ;;  %v2818_v16 = vmul.f32 %v6674_v54, %v2802_v31 }
0x1302   :  { %v2855_v10 = vmul.f32 %v6665_v27, %v2833_v61 }
0x1303   :  { %2870 = vrot.lane.b32.xlu0 %v2854_v12, %s5666_s15  ;;  %v2819_v12 = vmul.f32 %v6677_v13, %v2803_v6 }
0x1304   :  { %2872 = vrot.lane.b32.xlu1 %v2855_v10, %s5666_s15  ;;  %v2835_v26 = vpop.permute.xlu0 %2834 }
0x1305   :  { %v2837_v42 = vpop.permute.xlu1 %2836  ;;  %v2856_v43 = vmul.f32 %v6668_v17, %v2835_v26 }
0x1306   :  { %v2857_v15 = vmul.f32 %v6671_v22, %v2837_v42 }
0x1307   :  { %2874 = vrot.lane.b32.xlu0 %v2856_v43, %s5666_s15 }
0x1308   :  { %2876 = vrot.lane.b32.xlu1 %v2857_v15, %s5666_s15  ;;  %v2839_v30 = vpop.permute.xlu0 %2838 }
0x1309   :  { %v2841_v58 = vpop.permute.xlu1 %2840  ;;  %v2858_v51 = vmul.f32 %v6674_v54, %v2839_v30  ;;  %v2821_v30 = vmul.f32 %v6682_v63, %v2805_v5 }
0x130a   :  { %v2859_v4 = vmul.f32 %v6677_v13, %v2841_v58 }
0x130b   :  { %2878 = vrot.lane.b32.xlu0 %v2858_v51, %s5666_s15  ;;  %v2820_v51 = vmul.f32 %v6685_v28, %v2804_v57  ;;  %v2902_v57 = vadd.f32 %v6663_v48, %v6663_v48 }
0x130c   :  { %2880 = vrot.lane.b32.xlu1 %v2859_v4, %s5666_s15  ;;  %v2845_v53 = vpop.permute.xlu0 %2844 }
0x130d   :  { %v2843_v56 = vpop.permute.xlu1 %2842  ;;  %v2861_v25 = vmul.f32 %v6682_v63, %v2845_v53 }
0x130e   :  { %v2860_v47 = vmul.f32 %v6685_v28, %v2843_v56 }
0x130f   :  { %2884 = vrot.lane.b32.xlu0 %v2861_v25, %s5666_s15 }
0x1310   :  { %2882 = vrot.lane.b32.xlu1 %v2860_v47, %s5666_s15 }
0x1375   :  { %v2871_v21 = vpop.permute.xlu0 %2870 }
0x1376   :  { %v2873_v11 = vpop.permute.xlu1 %2872  ;;  %v6716_v62 = vadd.f32 %v2871_v21, %v2814_v3 }
0x1377   :  { %v6719_v9 = vadd.f32 %v2873_v11, %v2815_v38 }
0x1378   :  { %v4788_v55 = vmul.f32 -1.442695, %v6716_v62 }
0x1379   :  { %v4789_v7 = vmul.f32 -1.442695, %v6719_v9  ;;  %v2875_v49 = vpop.permute.xlu0 %2874 }
0x137a   :  { %5474 = vpow2.f32 %v4788_v55  ;;  %v2877_v1 = vpop.permute.xlu1 %2876  ;;  %v6726_v32 = vadd.f32 %v2875_v49, %v2816_v44 }
0x137b   :  { %5476 = vpow2.f32 %v4789_v7  ;;  %v6729_v59 = vadd.f32 %v2877_v1, %v2817_v2 }
0x137c   :  { %v4790_v24 = vmul.f32 -1.442695, %v6726_v32 }
0x137d   :  { %v4791_v61 = vmul.f32 -1.442695, %v6729_v59  ;;  %v2879_v10 = vpop.permute.xlu0 %2878 }
0x137e   :  { %5478 = vpow2.f32 %v4790_v24  ;;  %v2881_v26 = vpop.permute.xlu1 %2880  ;;  %v6736_v42 = vadd.f32 %v2879_v10, %v2818_v16 }
0x137f   :  { %5480 = vpow2.f32 %v4791_v61  ;;  %v6739_v43 = vadd.f32 %v2881_v26, %v2819_v12 }
0x1380   :  { %v4792_v15 = vmul.f32 -1.442695, %v6736_v42 }
0x1381   :  { %v4793_v58 = vmul.f32 -1.442695, %v6739_v43  ;;  %v2885_v4 = vpop.permute.xlu0 %2884 }
0x1382   :  { %5482 = vpow2.f32 %v4792_v15  ;;  %v2883_v60 = vpop.permute.xlu1 %2882  ;;  %v6745_v53 = vadd.f32 %v2885_v4, %v2821_v30  ;;  %v2903_v15 = vadd.f32 %v6665_v27, %v6665_v27 }
0x1383   :  { %5484 = vpow2.f32 %v4793_v58  ;;  %v6747_v56 = vadd.f32 %v2883_v60, %v2820_v51 }
0x1384   :  { %v4795_v8 = vmul.f32 -1.442695, %v6745_v53 }
0x1385   :  { %v4794_v25 = vmul.f32 -1.442695, %v6747_v56 }
0x1386   :  { %5486 = vpow2.f32 %v4795_v8  ;;  %v2904_v8 = vadd.f32 %v6668_v17, %v6668_v17 }
0x1387   :  { %v5475_v47 = vpop.eup %5474  ;;  %5488 = vpow2.f32 %v4794_v25 }
0x1388   :  { %v5477_v37 = vpop.eup %5476  ;;  %v2934_v52 = vadd.f32 1.0, %v5475_v47  ;;  %v2905_v47 = vadd.f32 %v6671_v22, %v6671_v22 }
0x1389   :  { %v2935_v3 = vadd.f32 1.0, %v5477_v37 }
0x138a   :  { %5490 = vrcp.f32 %v2934_v52 }
0x138b   :  { %v5479_v38 = vpop.eup %5478  ;;  %5492 = vrcp.f32 %v2935_v3 }
0x138c   :  { %v5481_v21 = vpop.eup %5480  ;;  %v2936_v18 = vadd.f32 1.0, %v5479_v38 }
0x138d   :  { %v2937_v11 = vadd.f32 1.0, %v5481_v21 }
0x138e   :  { %5494 = vrcp.f32 %v2936_v18 }
0x138f   :  { %v5483_v39 = vpop.eup %5482  ;;  %5496 = vrcp.f32 %v2937_v11 }
0x1390   :  { %v5485_v55 = vpop.eup %5484  ;;  %v2938_v44 = vadd.f32 1.0, %v5483_v39  ;;  %v2906_v39 = vadd.f32 %v6674_v54, %v6674_v54 }
0x1391   :  { %v2939_v7 = vadd.f32 1.0, %v5485_v55  ;;  %v2907_v55 = vadd.f32 %v6677_v13, %v6677_v13 }
0x1392   :  { %5498 = vrcp.f32 %v2938_v44 }
0x1393   :  { %v5487_v2 = vpop.eup %5486  ;;  %5500 = vrcp.f32 %v2939_v7 }
0x1394   :  { %v5489_v49 = vpop.eup %5488  ;;  %v2941_v31 = vadd.f32 1.0, %v5487_v2 }
0x1395   :  { %v2940_v1 = vadd.f32 1.0, %v5489_v49 }
0x1396   :  { %5502 = vrcp.f32 %v2941_v31 }
0x1397   :  { %v5491_v6 = vpop.eup %5490  ;;  %5504 = vrcp.f32 %v2940_v1 }
0x1398   :  { %v5493_v24 = vpop.eup %5492  ;;  %2966 = vrot.lane.b32.xlu0 %v5491_v6, %s5662_s16 }
0x1399   :  { %2968 = vrot.lane.b32.xlu1 %v5493_v24, %s5662_s16  ;;  %v2909_v24 = vadd.f32 %v6682_v63, %v6682_v63 }
0x139b   :  { %v5495_v16 = vpop.eup %5494 }
0x139c   :  { %v5497_v61 = vpop.eup %5496  ;;  %2970 = vrot.lane.b32.xlu0 %v5495_v16, %s5662_s16  ;;  %v2908_v16 = vadd.f32 %v6685_v28, %v6685_v28 }
0x139d   :  { %2972 = vrot.lane.b32.xlu1 %v5497_v61, %s5662_s16 }
0x139f   :  { %v5499_v12 = vpop.eup %5498 }
0x13a0   :  { %v5501_v10 = vpop.eup %5500  ;;  %2974 = vrot.lane.b32.xlu0 %v5499_v12, %s5662_s16 }
0x13a1   :  { %2976 = vrot.lane.b32.xlu1 %v5501_v10, %s5662_s16 }
0x13a3   :  { %v5503_v5 = vpop.eup %5502 }
0x13a4   :  { %v5505_v26 = vpop.eup %5504  ;;  %2980 = vrot.lane.b32.xlu0 %v5503_v5, %s5662_s16 }
0x13a5   :  { %2978 = vrot.lane.b32.xlu1 %v5505_v26, %s5662_s16 }
0x140a   :  { %v2967_v30 = vpop.permute.xlu0 %2966 }
0x140b   :  { %v2969_v58 = vpop.permute.xlu1 %2968  ;;  %v2990_v51 = vmul.f32 %v2967_v30, %v2902_v57 }
0x140c   :  { %v2991_v4 = vmul.f32 %v2969_v58, %v2903_v15 }
0x140d   :  { %v2998_v60 = vsub.f32 %v2990_v51, %v6663_v48 }
0x140e   :  { %v2999_v25 = vsub.f32 %v2991_v4, %v6665_v27  ;;  %v2971_v37 = vpop.permute.xlu0 %2970 }
0x140f   :  { %v2973_v52 = vpop.permute.xlu1 %2972  ;;  %v2992_v3 = vmul.f32 %v2971_v37, %v2904_v8  ;;  %v3014_v21 = vrot.slane %v2998_v60, 6 }
0x1410   :  { %v3015_v38 = vrot.slane %v2999_v25, 5  ;;  %v2993_v18 = vmul.f32 %v2973_v52, %v2905_v47 }
0x1411   :  { %v3000_v11 = vsub.f32 %v2992_v3, %v6668_v17 }
0x1412   :  { %v3001_v48 = vsub.f32 %v2993_v18, %v6671_v22  ;;  %v2975_v27 = vpop.permute.xlu0 %2974  ;;  %v3016_v49 = vsel %vm608_vm2, %v3015_v38, %v3014_v21 }
0x1413   :  { %v3017_v44 = vrot.slane %v3000_v11, 4  ;;  %v2977_v7 = vpop.permute.xlu1 %2976  ;;  %v2994_v2 = vmul.f32 %v2975_v27, %v2906_v39 }
0x1414   :  { %v3019_v31 = vrot.slane %v3001_v48, 3  ;;  %v2995_v1 = vmul.f32 %v2977_v7, %v2907_v55 }
0x1415   :  { %v3018_v6 = vsel %vm611_vm3, %v3017_v44, %v3016_v49  ;;  %v3002_v17 = vsub.f32 %v2994_v2, %v6674_v54 }
0x1416   :  { %v3003_v22 = vsub.f32 %v2995_v1, %v6677_v13  ;;  %v2981_v61 = vpop.permute.xlu0 %2980  ;;  %v3020_v57 = vsel %vm614_vm4, %v3019_v31, %v3018_v6 }
0x1417   :  { %v3021_v12 = vrot.slane %v3002_v17, 2  ;;  %v2979_v10 = vpop.permute.xlu1 %2978  ;;  %v2997_v5 = vmul.f32 %v2981_v61, %v2909_v24 }
0x1418   :  { %v3023_v26 = vrot.slane %v3003_v22, 1  ;;  %v2996_v15 = vmul.f32 %v2979_v10, %v2908_v16 }
0x1419   :  { %v3022_v30 = vsel %vm617_vm5, %v3021_v12, %v3020_v57  ;;  %v3005_v54 = vsub.f32 %v2997_v5, %v6682_v63 }
0x141a   :  { %v3004_v58 = vsub.f32 %v2996_v15, %v6685_v28  ;;  %v3024_v51 = vsel %vm620_vm6, %v3023_v26, %v3022_v30 }
0x141b   :  { %v3026_v13 = vrot.slane %v3005_v54, 7 }
0x141c   :  { %v3025_v4 = vsel %vm623_vm7, %v3004_v58, %v3024_v51 }
0x141d   :  { %v6790_v60 = vsel %vm626_vm8, %v3026_v13, %v3025_v4 }
0x141e   :  { %3028 = vrot.lane.b32.xlu0 %v6790_v60, %s5667_s17 }
0x1490   :  { %v3029_v8 = vpop.permute.xlu0 %3028 }
0x1491   :  { %4982 = vmatmul.mubr.msk.f32.vlgmr.msra.gmra.mxu1 %vm245_vm9, %v3029_v8 }
0x1492   :  { %3617 = vmatprep.mubr.f32.mxu1 %v5663_v0 }
0x1551   :  { %v3098_v25 = vpop.f32.mrf.mxu1 }
0x1552   :  { %v3103_v63 = vrot.slane %v3098_v25, 1  ;;  %v3104_v47 = vrot.slane %v3098_v25, 2  ;;  %v3105_v28 = vrot.slane %v3098_v25, 3  ;;  %v3106_v37 = vrot.slane %v3098_v25, 4 }
0x1553   :  { %v3107_v52 = vrot.slane %v3098_v25, 5  ;;  %v3108_v3 = vrot.slane %v3098_v25, 6  ;;  %v3109_v38 = vrot.slane %v3098_v25, 7  ;;  %v3125_v21 = vadd.f32 %v3098_v25, %v5782_v45  ;;  %v4983_v18 = vpop.f32.mrf.mxu1 }
0x1554   :  { %v3118_v11 = vadd.f32 %v3103_v63, %v5766_v19  ;;  %v3119_v39 = vadd.f32 %v3104_v47, %v5764_v14  ;;  %v3120_v48 = vadd.f32 %v3105_v28, %v5773_v29  ;;  %v3121_v55 = vadd.f32 %v3106_v37, %v5769_v23 }
0x1555   :  { %v3122_v27 = vadd.f32 %v3107_v52, %v5779_v40  ;;  %v3123_v44 = vadd.f32 %v3108_v3, %v5776_v35  ;;  %v4804_v7 = vmul.f32 -1.442695, %v3125_v21  ;;  %v3124_v2 = vadd.f32 %v3109_v38, %v5785_v50 }
0x1556   :  { %v4797_v49 = vmul.f32 -1.442695, %v3118_v11  ;;  %v4798_v31 = vmul.f32 -1.442695, %v3119_v39  ;;  %v4799_v1 = vmul.f32 -1.442695, %v3120_v48 }
0x1557   :  { %v4800_v45 = vmul.f32 -1.442695, %v3121_v55  ;;  %5506 = vpow2.f32 %v4804_v7  ;;  %v4801_v19 = vmul.f32 -1.442695, %v3122_v27  ;;  %v4802_v14 = vmul.f32 -1.442695, %v3123_v44 }
0x1558   :  { %5508 = vpow2.f32 %v4797_v49  ;;  %v4803_v29 = vmul.f32 -1.442695, %v3124_v2 }
0x1559   :  { %5510 = vpow2.f32 %v4798_v31 }
0x155a   :  { %5512 = vpow2.f32 %v4799_v1 }
0x155b   :  { %5514 = vpow2.f32 %v4800_v45 }
0x155c   :  { %5516 = vpow2.f32 %v4801_v19 }
0x155d   :  { %5518 = vpow2.f32 %v4802_v14 }
0x155e   :  { %5520 = vpow2.f32 %v4803_v29 }
0x1564   :  { %v5507_v23 = vpop.eup %5506 }
0x1565   :  { %v5509_v35 = vpop.eup %5508  ;;  %v3157_v15 = vadd.f32 1.0, %v5507_v23 }
0x1566   :  { %v5511_v40 = vpop.eup %5510  ;;  %v3150_v6 = vadd.f32 1.0, %v5509_v35 }
0x1567   :  { %v5513_v50 = vpop.eup %5512  ;;  %v3151_v17 = vadd.f32 1.0, %v5511_v40 }
0x1568   :  { %v5515_v24 = vpop.eup %5514  ;;  %v3152_v22 = vadd.f32 1.0, %v5513_v50  ;;  %5522 = vrcp.f32 %v3150_v6 }
0x1569   :  { %v5517_v16 = vpop.eup %5516  ;;  %v3153_v61 = vadd.f32 1.0, %v5515_v24  ;;  %5524 = vrcp.f32 %v3151_v17 }
0x156a   :  { %v5519_v12 = vpop.eup %5518  ;;  %v3154_v10 = vadd.f32 1.0, %v5517_v16  ;;  %5526 = vrcp.f32 %v3152_v22  ;;  %v3198_v16 = vrot.slane %v6716_v62, 7 }
0x156b   :  { %v5521_v5 = vpop.eup %5520  ;;  %v3155_v26 = vadd.f32 1.0, %v5519_v12  ;;  %5528 = vrcp.f32 %v3153_v61  ;;  %v3199_v61 = vrot.slane %v6719_v9, 7  ;;  %v3202_v9 = vrot.slane %v6736_v42, 7 }
0x156c   :  { %v3156_v57 = vadd.f32 1.0, %v5521_v5  ;;  %5530 = vrcp.f32 %v3154_v10  ;;  %v3205_v42 = vrot.slane %v6745_v53, 7 }
0x156d   :  { %5532 = vrcp.f32 %v3155_v26  ;;  %v3200_v26 = vrot.slane %v6726_v32, 7 }
0x156e   :  { %5534 = vrcp.f32 %v3156_v57 }
0x156f   :  { %5536 = vrcp.f32 %v3157_v15 }
0x1575   :  { %v6804_v30 = vpop.eup %5522 }
0x1576   :  { %v6806_v54 = vpop.eup %5524  ;;  %v3174_v58 = vmul.f32 4.0, %v6804_v30  ;;  %v3214_v12 = vmul.f32 %v6804_v30, %v3198_v16 }
0x1577   :  { %v6809_v51 = vpop.eup %5526  ;;  %v3175_v13 = vmul.f32 4.0, %v6806_v54  ;;  %v3215_v10 = vmul.f32 %v6806_v54, %v3199_v61 }
0x1578   :  { %v6812_v4 = vpop.eup %5528  ;;  %v4805_v8 = vadd.f32 -2.0, %v3174_v58  ;;  %v3176_v25 = vmul.f32 4.0, %v6809_v51  ;;  %v3201_v58 = vrot.slane %v6729_v59, 7 }
0x1579   :  { %v6815_v63 = vpop.eup %5530  ;;  %v4806_v47 = vadd.f32 -2.0, %v3175_v13  ;;  %v3177_v28 = vmul.f32 4.0, %v6812_v4 }
0x157a   :  { %v6818_v37 = vpop.eup %5532  ;;  %3230 = vrot.lane.b32.xlu1 %v4805_v8, %s5665_s0  ;;  %v4807_v52 = vadd.f32 -2.0, %v3176_v25  ;;  %v3178_v3 = vmul.f32 4.0, %v6815_v63  ;;  %v3216_v25 = vmul.f32 %v6809_v51, %v3200_v26  ;;  %v3217_v62 = vmul.f32 %v6812_v4, %v3201_v58 }
0x157b   :  { %3232 = vrot.lane.b32.xlu0 %v4806_v47, %s5665_s0  ;;  %v6823_v38 = vpop.eup %5534  ;;  %v4808_v21 = vadd.f32 -2.0, %v3177_v28  ;;  %v3179_v18 = vmul.f32 4.0, %v6818_v37  ;;  %v3218_v59 = vmul.f32 %v6815_v63, %v3202_v9  ;;  %v98_v9 = vld [vmem:[#allocation2 + $0x1e8] sm:$0xff] }
0x157c   :  { %v6826_v11 = vpop.eup %5536  ;;  %v4809_v39 = vadd.f32 -2.0, %v3178_v3  ;;  %v3180_v48 = vmul.f32 4.0, %v6823_v38  ;;  %3482 = vmatprep.subr.mxu0 %v98_v9  ;;  %v51_v9 = vld [vmem:[#allocation2 + $0x70] sm:$0xff] }
0x157d   :  { %v4810_v55 = vadd.f32 -2.0, %v3179_v18  ;;  %v3181_v27 = vmul.f32 4.0, %v6826_v11 }
0x157e   :  { %3234 = vrot.lane.b32.xlu1 %v4807_v52, %s5665_s0  ;;  %v4811_v44 = vadd.f32 -2.0, %v3180_v48 }
0x157f   :  { %3236 = vrot.lane.b32.xlu0 %v4808_v21, %s5665_s0  ;;  %v4812_v7 = vadd.f32 -2.0, %v3181_v27  ;;  %v3203_v21 = vrot.slane %v6739_v43, 7  ;;  %v3204_v27 = vrot.slane %v6747_v56, 7 }
0x1581   :  { %v3219_v48 = vmul.f32 %v6818_v37, %v3203_v21  ;;  %v3220_v43 = vmul.f32 %v6823_v38, %v3204_v27  ;;  %v89_v27 = vld [vmem:[#allocation2 + $0x1a0] sm:$0xff] }
0x1582   :  { %3238 = vrot.lane.b32.xlu1 %v4809_v39, %s5665_s0 }
0x1583   :  { %3240 = vrot.lane.b32.xlu0 %v4810_v55, %s5665_s0 }
0x1586   :  { %3242 = vrot.lane.b32.xlu1 %v4811_v44, %s5665_s0 }
0x1587   :  { %3244 = vrot.lane.b32.xlu0 %v4812_v7, %s5665_s0 }
0x15ec   :  { %v3231_v2 = vpop.permute.xlu1 %3230 }
0x15ed   :  { %v3233_v49 = vpop.permute.xlu0 %3232  ;;  %v3254_v31 = vmul.f32 %v6804_v30, %v3231_v2 }
0x15ee   :  { %v3255_v1 = vmul.f32 %v6806_v54, %v3233_v49 }
0x15ef   :  { %3270 = vrot.lane.b32.xlu1 %v3254_v31, %s5666_s15 }
0x15f0   :  { %3272 = vrot.lane.b32.xlu0 %v3255_v1, %s5666_s15  ;;  %v3235_v45 = vpop.permute.xlu1 %3234  ;;  %v3221_v1 = vmul.f32 %v6826_v11, %v3205_v42  ;;  %v91_v42 = vld [vmem:[#allocation2 + $0x1b0] sm:$0xff] }
0x15f1   :  { %v3237_v19 = vpop.permute.xlu0 %3236  ;;  %v3256_v14 = vmul.f32 %v6809_v51, %v3235_v45 }
0x15f2   :  { %v3257_v29 = vmul.f32 %v6812_v4, %v3237_v19 }
0x15f3   :  { %3274 = vrot.lane.b32.xlu1 %v3256_v14, %s5666_s15 }
0x15f4   :  { %3276 = vrot.lane.b32.xlu0 %v3257_v29, %s5666_s15  ;;  %v3239_v23 = vpop.permute.xlu1 %3238 }
0x15f5   :  { %v3241_v35 = vpop.permute.xlu0 %3240  ;;  %v3258_v40 = vmul.f32 %v6815_v63, %v3239_v23 }
0x15f6   :  { %v3259_v6 = vmul.f32 %v6818_v37, %v3241_v35 }
0x15f7   :  { %3278 = vrot.lane.b32.xlu1 %v3258_v40, %s5666_s15 }
0x15f8   :  { %3280 = vrot.lane.b32.xlu0 %v3259_v6, %s5666_s15  ;;  %v3243_v50 = vpop.permute.xlu1 %3242 }
0x15f9   :  { %v3245_v17 = vpop.permute.xlu0 %3244  ;;  %v3260_v24 = vmul.f32 %v6823_v38, %v3243_v50 }
0x15fa   :  { %v3261_v22 = vmul.f32 %v6826_v11, %v3245_v17 }
0x15fb   :  { %3282 = vrot.lane.b32.xlu1 %v3260_v24, %s5666_s15 }
0x15fc   :  { %3284 = vrot.lane.b32.xlu0 %v3261_v22, %s5666_s15 }
0x1661   :  { %v3271_v5 = vpop.permute.xlu1 %3270 }
0x1662   :  { %v3273_v57 = vpop.permute.xlu0 %3272  ;;  %v3294_v15 = vadd.f32 %v3271_v5, %v3214_v12 }
0x1663   :  { %v3295_v13 = vadd.f32 %v3273_v57, %v3215_v10 }
0x1664   :  { %v4813_v8 = vmul.f32 -1.442695, %v3294_v15 }
0x1665   :  { %v4814_v47 = vmul.f32 -1.442695, %v3295_v13  ;;  %v3275_v28 = vpop.permute.xlu1 %3274 }
0x1666   :  { %5538 = vpow2.f32 %v4813_v8  ;;  %v3277_v52 = vpop.permute.xlu0 %3276  ;;  %v3296_v3 = vadd.f32 %v3275_v28, %v3216_v25 }
0x1667   :  { %5540 = vpow2.f32 %v4814_v47  ;;  %v3297_v32 = vadd.f32 %v3277_v52, %v3217_v62  ;;  %v97_v52 = vld [vmem:[#allocation2 + $0x1e0] sm:$0xff] }
0x1668   :  { %v4815_v18 = vmul.f32 -1.442695, %v3296_v3  ;;  %v100_v3 = vld [vmem:[#allocation2 + $0x1f8] sm:$0xff]  ;;  %3483 = vmatpush1.msra.mxu0 %v97_v52  ;;  %v45_v52 = vld [vmem:[#allocation2 + $0x40] sm:$0xff] }
0x1669   :  { %v4816_v39 = vmul.f32 -1.442695, %v3297_v32  ;;  %v3279_v55 = vpop.permute.xlu1 %3278  ;;  %v94_v32 = vld [vmem:[#allocation2 + $0x1c8] sm:$0xff]  ;;  %3553 = vmatprep.subr.mxu1 %v100_v3  ;;  %v48_v3 = vld [vmem:[#allocation2 + $0x58] sm:$0xff] }
0x166a   :  { %5542 = vpow2.f32 %v4815_v18  ;;  %v3281_v44 = vpop.permute.xlu0 %3280  ;;  %v3298_v7 = vadd.f32 %v3279_v55, %v3218_v59  ;;  %v99_v18 = vld [vmem:[#allocation2 + $0x1f0] sm:$0xff]  ;;  %v93_v59 = vld [vmem:[#allocation2 + $0x1c0] sm:$0xff]  ;;  %3484 = vmatprep.subr.mxu0 %v94_v32 }
0x166b   :  { %5544 = vpow2.f32 %v4816_v39  ;;  %v3299_v2 = vadd.f32 %v3281_v44, %v3219_v48  ;;  %v96_v39 = vld [vmem:[#allocation2 + $0x1d8] sm:$0xff]  ;;  %v90_v48 = vld [vmem:[#allocation2 + $0x1a8] sm:$0xff]  ;;  %3554 = vmatpush1.msra.mxu1 %v99_v18  ;;  %3485 = vmatpush1.msra.mxu0 %v93_v59  ;;  %v95_v55 = vld [vmem:[#allocation2 + $0x1d0] sm:$0xff] }
0x166c   :  { %v4817_v49 = vmul.f32 -1.442695, %v3298_v7  ;;  %3555 = vmatprep.subr.mxu1 %v96_v39  ;;  %v92_v44 = vld [vmem:[#allocation2 + $0x1b8] sm:$0xff]  ;;  %v86_v7 = vld [vmem:[#allocation2 + $0x188] sm:$0xff]  ;;  %3486 = vmatprep.subr.mxu0 %v90_v48  ;;  %v47_v32 = vld [vmem:[#allocation2 + $0x50] sm:$0xff] }
0x166d   :  { %v4818_v31 = vmul.f32 -1.442695, %v3299_v2  ;;  %v3283_v45 = vpop.permute.xlu1 %3282  ;;  %3556 = vmatpush1.msra.mxu1 %v95_v55  ;;  %3487 = vmatpush1.msra.mxu0 %v89_v27  ;;  %v85_v2 = vld [vmem:[#allocation2 + $0x180] sm:$0xff]  ;;  %v44_v59 = vld [vmem:[#allocation2 + $0x38] sm:$0xff]  ;;  %v38_v39 = vld [vmem:[#allocation2 + $0x8] sm:$0xff] }
0x166e   :  { %5546 = vpow2.f32 %v4817_v49  ;;  %v3285_v19 = vpop.permute.xlu0 %3284  ;;  %v3300_v14 = vadd.f32 %v3283_v45, %v3220_v43  ;;  %3557 = vmatprep.subr.mxu1 %v92_v44  ;;  %3488 = vmatprep.subr.mxu0 %v86_v7  ;;  %v88_v49 = vld [vmem:[#allocation2 + $0x198] sm:$0xff]  ;;  %v82_v43 = vld [vmem:[#allocation2 + $0x168] sm:$0xff]  ;;  %v83_v45 = vld [vmem:[#allocation2 + $0x170] sm:$0xff]  ;;  %v3302_v44 = vadd.f32 %v6804_v30, %v6804_v30  ;;  %v3303_v7 = vadd.f32 %v6806_v54, %v6806_v54 }
0x166f   :  { %5548 = vpow2.f32 %v4818_v31  ;;  %v3301_v29 = vadd.f32 %v3285_v19, %v3221_v1  ;;  %3558 = vmatpush1.msra.mxu1 %v91_v42  ;;  %v81_v31 = vld [vmem:[#allocation2 + $0x160] sm:$0xff]  ;;  %3489 = vmatpush1.msra.mxu0 %v85_v2  ;;  %v78_v1 = vld [vmem:[#allocation2 + $0x148] sm:$0xff]  ;;  %v43_v48 = vld [vmem:[#allocation2 + $0x30] sm:$0xff] }
0x1670   :  { %v4819_v56 = vmul.f32 -1.442695, %v3300_v14  ;;  %3559 = vmatprep.subr.mxu1 %v88_v49  ;;  %3490 = vmatprep.subr.mxu0 %v82_v43  ;;  %v77_v19 = vld [vmem:[#allocation2 + $0x140] sm:$0xff]  ;;  %v80_v14 = vld [vmem:[#allocation2 + $0x158] sm:$0xff] }
0x1671   :  { %v4820_v23 = vmul.f32 -1.442695, %v3301_v29  ;;  %3491 = vmatpush1.msra.mxu0 %v81_v31  ;;  %v79_v29 = vld [vmem:[#allocation2 + $0x150] sm:$0xff]  ;;  %v41_v18 = vld [vmem:[#allocation2 + $0x20] sm:$0xff]  ;;  %v40_v27 = vld [vmem:[#allocation2 + $0x18] sm:$0xff]  ;;  %v3304_v31 = vadd.f32 %v6809_v51, %v6809_v51 }
0x1672   :  { %5550 = vpow2.f32 %v4819_v56  ;;  %3492 = vmatprep.subr.mxu0 %v78_v1  ;;  %v73_v56 = vld [vmem:[#allocation2 + $0x120] sm:$0xff]  ;;  %v3305_v1 = vadd.f32 %v6812_v4, %v6812_v4 }
0x1673   :  { %v5539_v35 = vpop.eup %5538  ;;  %5552 = vpow2.f32 %v4820_v23  ;;  %3493 = vmatpush1.msra.mxu0 %v77_v19  ;;  %v70_v23 = vld [vmem:[#allocation2 + $0x108] sm:$0xff]  ;;  %v37_v55 = vld [vmem:[#allocation2] sm:$0xff] }
0x1674   :  { %v5541_v53 = vpop.eup %5540  ;;  %v3334_v40 = vadd.f32 1.0, %v5539_v35  ;;  %v75_v35 = vld [vmem:[#allocation2 + $0x130] sm:$0xff] }
0x1675   :  { %v3335_v6 = vadd.f32 1.0, %v5541_v53  ;;  %v69_v53 = vld [vmem:[#allocation2 + $0x100] sm:$0xff] }
0x1676   :  { %5554 = vrcp.f32 %v3334_v40  ;;  %v72_v40 = vld [vmem:[#allocation2 + $0x118] sm:$0xff] }
0x1677   :  { %v5543_v50 = vpop.eup %5542  ;;  %5556 = vrcp.f32 %v3335_v6  ;;  %v66_v6 = vld [vmem:[#allocation2 + $0xe8] sm:$0xff] }
0x1678   :  { %v5545_v17 = vpop.eup %5544  ;;  %v3336_v24 = vadd.f32 1.0, %v5543_v50  ;;  %v71_v50 = vld [vmem:[#allocation2 + $0x110] sm:$0xff] }
0x1679   :  { %v3337_v22 = vadd.f32 1.0, %v5545_v17  ;;  %v68_v17 = vld [vmem:[#allocation2 + $0xf8] sm:$0xff] }
0x167a   :  { %5558 = vrcp.f32 %v3336_v24  ;;  %v62_v24 = vld [vmem:[#allocation2 + $0xc8] sm:$0xff] }
0x167b   :  { %v5547_v16 = vpop.eup %5546  ;;  %5560 = vrcp.f32 %v3337_v22  ;;  %v67_v22 = vld [vmem:[#allocation2 + $0xf0] sm:$0xff] }
0x167c   :  { %v5549_v61 = vpop.eup %5548  ;;  %v3338_v12 = vadd.f32 1.0, %v5547_v16  ;;  %v61_v16 = vld [vmem:[#allocation2 + $0xc0] sm:$0xff] }
0x167d   :  { %v3339_v10 = vadd.f32 1.0, %v5549_v61  ;;  %v64_v61 = vld [vmem:[#allocation2 + $0xd8] sm:$0xff] }
0x167e   :  { %5562 = vrcp.f32 %v3338_v12  ;;  %v58_v12 = vld [vmem:[#allocation2 + $0xa8] sm:$0xff] }
0x167f   :  { %v5551_v5 = vpop.eup %5550  ;;  %5564 = vrcp.f32 %v3339_v10  ;;  %v63_v10 = vld [vmem:[#allocation2 + $0xd0] sm:$0xff] }
0x1680   :  { %v5553_v26 = vpop.eup %5552  ;;  %v3340_v57 = vadd.f32 1.0, %v5551_v5  ;;  %v57_v5 = vld [vmem:[#allocation2 + $0xa0] sm:$0xff] }
0x1681   :  { %v3341_v15 = vadd.f32 1.0, %v5553_v26  ;;  %v60_v26 = vld [vmem:[#allocation2 + $0xb8] sm:$0xff] }
0x1682   :  { %5566 = vrcp.f32 %v3340_v57  ;;  %v54_v57 = vld [vmem:[#allocation2 + $0x88] sm:$0xff] }
0x1683   :  { %v5555_v58 = vpop.eup %5554  ;;  %5568 = vrcp.f32 %v3341_v15  ;;  %v59_v15 = vld [vmem:[#allocation2 + $0xb0] sm:$0xff] }
0x1684   :  { %v5557_v13 = vpop.eup %5556  ;;  %3366 = vrot.lane.b32.xlu1 %v5555_v58, %s5662_s16  ;;  %v53_v58 = vld [vmem:[#allocation2 + $0x80] sm:$0xff] }
0x1685   :  { %3368 = vrot.lane.b32.xlu0 %v5557_v13, %s5662_s16  ;;  %v56_v13 = vld [vmem:[#allocation2 + $0x98] sm:$0xff] }
0x1687   :  { %v5559_v8 = vpop.eup %5558 }
0x1688   :  { %v5561_v25 = vpop.eup %5560  ;;  %3370 = vrot.lane.b32.xlu1 %v5559_v8, %s5662_s16  ;;  %v50_v8 = vld [vmem:[#allocation2 + $0x68] sm:$0xff] }
0x1689   :  { %3372 = vrot.lane.b32.xlu0 %v5561_v25, %s5662_s16  ;;  %v55_v25 = vld [vmem:[#allocation2 + $0x90] sm:$0xff] }
0x168b   :  { %v5563_v47 = vpop.eup %5562 }
0x168c   :  { %v5565_v62 = vpop.eup %5564  ;;  %3374 = vrot.lane.b32.xlu1 %v5563_v47, %s5662_s16  ;;  %v49_v47 = vld [vmem:[#allocation2 + $0x60] sm:$0xff] }
0x168d   :  { %3376 = vrot.lane.b32.xlu0 %v5565_v62, %s5662_s16  ;;  %v52_v62 = vld [vmem:[#allocation2 + $0x78] sm:$0xff] }
0x168f   :  { %v5567_v28 = vpop.eup %5566 }
0x1690   :  { %v5569_v21 = vpop.eup %5568  ;;  %3378 = vrot.lane.b32.xlu1 %v5567_v28, %s5662_s16  ;;  %v46_v28 = vld [vmem:[#allocation2 + $0x48] sm:$0xff] }
0x1691   :  { %3380 = vrot.lane.b32.xlu0 %v5569_v21, %s5662_s16  ;;  %v42_v21 = vld [vmem:[#allocation2 + $0x28] sm:$0xff] }
0x1694   :  { %3407 = vrot.lane.b32.xlu1 %v6053_v46, %s5665_s0  ;;  %v87_v46 = vld [vmem:[#allocation2 + $0x190] sm:$0xff] }
0x1695   :  { %3410 = vrot.lane.b32.xlu0 %v6209_v41, %s5668_s25  ;;  %v84_v41 = vld [vmem:[#allocation2 + $0x178] sm:$0xff]  ;;  %3560 = vmatpush1.msra.mxu1 %v87_v46 }
0x1696   :  { %3561 = vmatprep.subr.mxu1 %v84_v41 }
0x1697   :  { %3562 = vmatpush1.msra.mxu1 %v83_v45 }
0x1698   :  { %3414 = vrot.lane.b32.xlu1 %v6500_v33, %s5666_s15  ;;  %v74_v33 = vld [vmem:[#allocation2 + $0x128] sm:$0xff]  ;;  %3563 = vmatprep.subr.mxu1 %v80_v14 }
0x1699   :  { %3417 = vrot.lane.b32.xlu0 %v6649_v34, %s5662_s16  ;;  %v76_v34 = vld [vmem:[#allocation2 + $0x138] sm:$0xff]  ;;  %3494 = vmatprep.subr.mxu0 %v74_v33 }
0x169a   :  { %3564 = vmatpush1.msra.mxu1 %v79_v29  ;;  %3495 = vmatpush1.msra.mxu0 %v73_v56 }
0x169b   :  { %3565 = vmatprep.subr.mxu1 %v76_v34  ;;  %3496 = vmatprep.subr.mxu0 %v70_v23  ;;  %v3306_v23 = vadd.f32 %v6815_v63, %v6815_v63 }
0x169c   :  { %3420 = vrot.lane.b32.xlu1 %v6790_v60, %s5669_s26  ;;  %3566 = vmatpush1.msra.mxu1 %v75_v35  ;;  %v65_v60 = vld [vmem:[#allocation2 + $0xe0] sm:$0xff]  ;;  %v3307_v35 = vadd.f32 %v6818_v37, %v6818_v37 }
0x169d   :  { %3497 = vmatpush1.msra.mxu0 %v69_v53  ;;  %3567 = vmatprep.subr.mxu1 %v72_v40  ;;  %v39_v53 = vld [vmem:[#allocation2 + $0x10] sm:$0xff] }
0x169e   :  { %3498 = vmatprep.subr.mxu0 %v66_v6  ;;  %3568 = vmatpush1.msra.mxu1 %v71_v50 }
0x169f   :  { %3499 = vmatpush1.msra.mxu0 %v65_v60  ;;  %3569 = vmatprep.subr.mxu1 %v68_v17 }
0x16a0   :  { %3500 = vmatprep.subr.mxu0 %v62_v24  ;;  %3570 = vmatpush1.msra.mxu1 %v67_v22 }
0x16a1   :  { %3501 = vmatpush1.msra.mxu0 %v61_v16  ;;  %3571 = vmatprep.subr.mxu1 %v64_v61  ;;  %v3309_v61 = vadd.f32 %v6826_v11, %v6826_v11 }
0x16a2   :  { %3502 = vmatprep.subr.mxu0 %v58_v12  ;;  %3572 = vmatpush1.msra.mxu1 %v63_v10 }
0x16a3   :  { %3503 = vmatpush1.msra.mxu0 %v57_v5  ;;  %3573 = vmatprep.subr.mxu1 %v60_v26 }
0x16a4   :  { %3504 = vmatprep.subr.mxu0 %v54_v57  ;;  %3574 = vmatpush1.msra.mxu1 %v59_v15 }
0x16a5   :  { %3505 = vmatpush1.msra.mxu0 %v53_v58  ;;  %3575 = vmatprep.subr.mxu1 %v56_v13 }
0x16a6   :  { %3506 = vmatprep.subr.mxu0 %v50_v8  ;;  %3576 = vmatpush1.msra.mxu1 %v55_v25 }
0x16a7   :  { %3507 = vmatpush1.msra.mxu0 %v49_v47  ;;  %3577 = vmatprep.subr.mxu1 %v52_v62 }
0x16a8   :  { %3508 = vmatprep.subr.mxu0 %v46_v28  ;;  %3578 = vmatpush1.msra.mxu1 %v51_v9 }
0x16a9   :  { %3509 = vmatpush1.msra.mxu0 %v45_v52  ;;  %3579 = vmatprep.subr.mxu1 %v48_v3 }
0x16aa   :  { %3510 = vmatprep.subr.mxu0 %v42_v21  ;;  %3580 = vmatpush1.msra.mxu1 %v47_v32 }
0x16ab   :  { %3511 = vmatpush1.msra.mxu0 %v41_v18  ;;  %3581 = vmatprep.subr.mxu1 %v44_v59 }
0x16ac   :  { %3512 = vmatprep.subr.mxu0 %v38_v39  ;;  %3582 = vmatpush1.msra.mxu1 %v43_v48 }
0x16ad   :  { %3513 = vmatpush1.msra.mxu0 %v37_v55  ;;  %3583 = vmatprep.subr.mxu1 %v40_v27  ;;  %v6924_v55 = vld [vmem:[%s7067_s1 + $0x21] sm:$0xff]  ;;  %v3462_v27 = vlaneseq }
0x16ae   :  { %4984 = vmatprep.subr.mxu0 %v5663_v0  ;;  %3584 = vmatpush1.msra.mxu1 %v39_v53 }
0x16af   :  { %4991 = vmatprep.subr.mxu1 %v5663_v0 }
0x16f6   :  { %v3367_v42 = vpop.permute.xlu1 %3366 }
0x16f7   :  { %v3369_v2 = vpop.permute.xlu0 %3368  ;;  %v3390_v49 = vmul.f32 %v3367_v42, %v3302_v44  ;;  %v6950_v44 = vshrl.u32 %v3462_v27, 7  ;;  %v6953_v42 = vld [vmem:[#allocation2 + $0x200] ss:$8 sm:$0xf] }
0x16f8   :  { %v3391_v43 = vmul.f32 %v3369_v2, %v3303_v7 }
0x16f9   :  { %v3398_v46 = vsub.f32 %v3390_v49, %v6804_v30  ;;  %v3464_v7 = vsub.s32 0, %v6950_v44 }
0x16fa   :  { %v3399_v41 = vsub.f32 %v3391_v43, %v6806_v54  ;;  %v3371_v45 = vpop.permute.xlu1 %3370 }
0x16fb   :  { %v3373_v19 = vpop.permute.xlu0 %3372  ;;  %v3392_v14 = vmul.f32 %v3371_v45, %v3304_v31  ;;  %v3431_v29 = vrot.slane %v3398_v46, 7  ;;  %v3465_v2 = vrot.slane %v6953_v42, %v3464_v7 }
0x16fc   :  { %v3432_v33 = vrot.slane %v3399_v41, 6  ;;  %v3393_v56 = vmul.f32 %v3373_v19, %v3305_v1 }
0x16fd   :  { %v3400_v34 = vsub.f32 %v3392_v14, %v6809_v51 }
0x16fe   :  { %v3401_v30 = vsub.f32 %v3393_v56, %v6812_v4  ;;  %v3375_v54 = vpop.permute.xlu1 %3374  ;;  %v3433_v60 = vsel %vm608_vm2, %v3432_v33, %v3431_v29  ;;  %v3308_v4 = vadd.f32 %v6823_v38, %v6823_v38 }
0x16ff   :  { %v3434_v40 = vrot.slane %v3400_v34, 5  ;;  %v3377_v6 = vpop.permute.xlu0 %3376  ;;  %v3394_v50 = vmul.f32 %v3375_v54, %v3306_v23 }
0x1700   :  { %v3436_v17 = vrot.slane %v3401_v30, 4  ;;  %v3395_v24 = vmul.f32 %v3377_v6, %v3307_v35 }
0x1701   :  { %v3435_v51 = vsel %vm611_vm3, %v3434_v40, %v3433_v60  ;;  %v3402_v22 = vsub.f32 %v3394_v50, %v6815_v63 }
0x1702   :  { %v3403_v16 = vsub.f32 %v3395_v24, %v6818_v37  ;;  %v3379_v12 = vpop.permute.xlu1 %3378  ;;  %v3437_v15 = vsel %vm614_vm4, %v3436_v17, %v3435_v51 }
0x1703   :  { %v3438_v10 = vrot.slane %v3402_v22, 3  ;;  %v3381_v5 = vpop.permute.xlu0 %3380  ;;  %v3396_v26 = vmul.f32 %v3379_v12, %v3308_v4 }
0x1704   :  { %v3440_v57 = vrot.slane %v3403_v16, 2  ;;  %v3397_v58 = vmul.f32 %v3381_v5, %v3309_v61 }
0x1705   :  { %v3439_v13 = vsel %vm617_vm5, %v3438_v10, %v3437_v15  ;;  %v3404_v63 = vsub.f32 %v3396_v26, %v6823_v38 }
0x1706   :  { %v3405_v25 = vsub.f32 %v3397_v58, %v6826_v11  ;;  %v3441_v37 = vsel %vm620_vm6, %v3440_v57, %v3439_v13  ;;  %v3408_v28 = vpop.permute.xlu1 %3407 }
0x1707   :  { %v3442_v8 = vrot.slane %v3404_v63, 1  ;;  %v3411_v9 = vpop.permute.xlu0 %3410  ;;  %v3448_v52 = vsel %vm245_vm9, %v5908_v20, %v3408_v28 }
0x1708   :  { %v3450_v3 = vsel %vm3449_vm10, %v3448_v52, %v3411_v9 }
0x1709   :  { %v3443_v47 = vsel %vm623_vm7, %v3442_v8, %v3441_v37  ;;  %v3452_v11 = vsel %vm3451_vm11, %v3450_v3, %v6355_v36  ;;  %v6929_v36 = vld [vmem:[%s7067_s1 + $0x19] sm:$0xff] }
0x170a   :  { %v3444_v62 = vsel %vm626_vm8, %v3405_v25, %v3443_v47  ;;  %v3415_v38 = vpop.permute.xlu1 %3414 }
0x170b   :  { %3445 = vrot.lane.b32.xlu0 %v3444_v62, %s5670_s27  ;;  %v3418_v21 = vpop.permute.xlu0 %3417  ;;  %v3454_v32 = vsel %vm3453_vm12, %v3452_v11, %v3415_v38 }
0x170c   :  { %v3456_v59 = vsel %vm3455_vm13, %v3454_v32, %v3418_v21 }
0x170e   :  { %v3421_v18 = vpop.permute.xlu1 %3420 }
0x170f   :  { %v3458_v39 = vsel %vm3457_vm14, %v3456_v59, %v3421_v18 }
0x177d   :  { %v3446_v48 = vpop.permute.xlu0 %3445 }
0x177e   :  { %v3460_v20 = vsel %vm3459_vm15, %v3458_v39, %v3446_v48  ;;  %v3468_v39 = vsub.s32 1, %v6950_v44 }
0x177f   :  { %3547 = vmatmul.mubr.f32.vlgmr.msra.gmra.mxu0 %v3460_v20  ;;  %3618 = vmatmul.mubr.f32.vlgmr.msra.gmra.mxu1 %v3460_v20 }
0x1780   :  { %4985 = vmatpush3.msra.mxu0 %v6924_v55  ;;  %4988 = vmatprep.mubr.msk.f32.mxu0 %vm5664_vm0, %v5663_v0  ;;  %v3469_v48 = vrot.slane %v6953_v42, %v3468_v39 }
0x1781   :  { %4986 = vmatprep.subr.mxu0 %v5663_v0  ;;  %4992 = vmatpush3.msra.mxu1 %v6924_v55 }
0x1782   :  { %4987 = vmatpush3.msra.mxu0 %v6929_v36  ;;  %4993 = vmatprep.subr.mxu1 %v5663_v0 }
0x1783   :  { %4989 = vmatmul.mubr.f32.vlgmr.msra.gmra.mxu0 %v5663_v0  ;;  %4994 = vmatpush3.msra.mxu1 %v6929_v36 }
0x1784   :  { %4995 = vmatprep.mubr.msk.f32.mxu1 %vm5664_vm0, %v5663_v0  ;;  %4998 = vmatprep.subr.mxu0 %v5663_v0 }
0x1785   :  { %4999 = vmatpush3.msra.mxu0 %v6924_v55  ;;  %5002 = vmatprep.mubr.msk.f32.mxu0 %vm5664_vm0, %v5663_v0 }
0x1786   :  { %5000 = vmatprep.subr.mxu0 %v5663_v0  ;;  %5005 = vmatprep.subr.mxu1 %v5663_v0 }
0x1787   :  { %5001 = vmatpush3.msra.mxu0 %v6929_v36 }
0x1788   :  { %5012 = vmatprep.subr.mxu0 %v5663_v0 }
0x183f   :  { %v3548_v49 = vpop.f32.mrf.mxu0  ;;  %v6969_v4 = vpop.f32.mrf.mxu1 }
0x1840   :  { %v3549_v46 = vadd.f32 %v3548_v49, %v3465_v2 }
0x1841   :  { %v6956_v43 = vpop.f32.mrf.mxu0  ;;  %v6971_v16 = vpop.f32.mrf.mxu1 }
0x1842   :  { %v3551_v20 = vadd.f32 %v6956_v43, %v3469_v48 }
0x1843   :  { %v3690_v31 = vpop.f32.mrf.mxu0 }
0x1844   :  { %v3694_v41 = vadd.f32 %v3690_v31, %v3549_v46 }
0x1845   :  { %v4990_v1 = vpop.f32.mrf.mxu0 }
0x1846   :  { %v4821_v45 = vmul.f32 -1.442695, %v3694_v41 }
0x1848   :  { %5570 = vpow2.f32 %v4821_v45 }
0x1855   :  { %v5571_v19 = vpop.eup %5570 }
0x1856   :  { %v3698_v14 = vadd.f32 1.0, %v5571_v19 }
0x1858   :  { %5572 = vrcp.f32 %v3698_v14 }
0x1865   :  { %v5573_v33 = vpop.eup %5572 }
0x1866   :  { %v3701_v29 = vmul.f32 4.0, %v5573_v33  ;;  %v3703_v30 = vmul.f32 0.0, %v5573_v33  ;;  %v3714_v60 = vadd.f32 %v5573_v33, %v5573_v33 }
0x1868   :  { %v4822_v56 = vadd.f32 -2.0, %v3701_v29 }
0x186a   :  { %3705 = vrot.lane.b32.xlu1 %v4822_v56, %s5665_s0 }
0x18dc   :  { %v3706_v34 = vpop.permute.xlu1 %3705 }
0x18dd   :  { %v3708_v23 = vmul.f32 %v5573_v33, %v3706_v34 }
0x18df   :  { %3710 = vrot.lane.b32.xlu0 %v3708_v23, %s5666_s15 }
0x1951   :  { %v3711_v35 = vpop.permute.xlu0 %3710 }
0x1952   :  { %v3713_v54 = vadd.f32 %v3711_v35, %v3703_v30 }
0x1954   :  { %v4823_v53 = vmul.f32 -1.442695, %v3713_v54 }
0x1956   :  { %5574 = vpow2.f32 %v4823_v53 }
0x1963   :  { %v5575_v40 = vpop.eup %5574 }
0x1964   :  { %v3718_v6 = vadd.f32 1.0, %v5575_v40 }
0x1966   :  { %5576 = vrcp.f32 %v3718_v6 }
0x1973   :  { %v5577_v50 = vpop.eup %5576 }
0x1974   :  { %3722 = vrot.lane.b32.xlu1 %v5577_v50, %s5662_s16 }
0x19e6   :  { %v3723_v17 = vpop.permute.xlu1 %3722 }
0x19e7   :  { %v3725_v24 = vmul.f32 %v3723_v17, %v3714_v60 }
0x19e9   :  { %v3726_v51 = vsub.f32 %v3725_v24, %v5573_v33 }
0x19eb   :  { %3728 = vrot.lane.b32.xlu0 %v3726_v51, %s5667_s17 }
0x1a5d   :  { %v3729_v22 = vpop.permute.xlu0 %3728 }
0x1a5e   :  { %4996 = vmatmul.mubr.msk.f32.vlgmr.msra.gmra.mxu1 %vm245_vm9, %v3729_v22 }
0x1a5f   :  { %5006 = vmatpush3.msra.mxu1 %v6924_v55  ;;  %5009 = vmatprep.mubr.msk.f32.mxu1 %vm5664_vm0, %v5663_v0 }
0x1a60   :  { %5007 = vmatprep.subr.mxu1 %v5663_v0 }
0x1a61   :  { %5008 = vmatpush3.msra.mxu1 %v6929_v36 }
0x1a62   :  { %5019 = vmatprep.subr.mxu1 %v5663_v0 }
0x1b1e   :  { %v3798_v61 = vpop.f32.mrf.mxu1 }
0x1b1f   :  { %3803 = vrot.lane.b32.xlu1 %v3798_v61, %s5670_s27 }
0x1b20   :  { %v4997_v12 = vpop.f32.mrf.mxu1 }
0x1b23   :  { %3816 = vrot.lane.b32.xlu1 %v3713_v54, %s5670_s27 }
0x1b91   :  { %v3804_v10 = vpop.permute.xlu1 %3803 }
0x1b92   :  { %v3806_v5 = vadd.f32 %v3804_v10, %v3549_v46 }
0x1b94   :  { %v4825_v26 = vmul.f32 -1.442695, %v3806_v5 }
0x1b95   :  { %v3817_v37 = vpop.permute.xlu1 %3816 }
0x1b96   :  { %5578 = vpow2.f32 %v4825_v26 }
0x1ba3   :  { %v5579_v57 = vpop.eup %5578 }
0x1ba4   :  { %v3810_v15 = vadd.f32 1.0, %v5579_v57 }
0x1ba6   :  { %5580 = vrcp.f32 %v3810_v15 }
0x1bb3   :  { %v5581_v58 = vpop.eup %5580 }
0x1bb4   :  { %v3813_v13 = vmul.f32 4.0, %v5581_v58  ;;  %v3819_v47 = vmul.f32 %v5581_v58, %v3817_v37  ;;  %v3830_v11 = vadd.f32 %v5581_v58, %v5581_v58 }
0x1bb6   :  { %v4826_v63 = vadd.f32 -2.0, %v3813_v13 }
0x1bb8   :  { %3821 = vrot.lane.b32.xlu0 %v4826_v63, %s5665_s0 }
0x1c2a   :  { %v3822_v8 = vpop.permute.xlu0 %3821 }
0x1c2b   :  { %v3824_v25 = vmul.f32 %v5581_v58, %v3822_v8 }
0x1c2d   :  { %3826 = vrot.lane.b32.xlu0 %v3824_v25, %s5666_s15 }
0x1c9f   :  { %v3827_v62 = vpop.permute.xlu0 %3826 }
0x1ca0   :  { %v3829_v28 = vadd.f32 %v3827_v62, %v3819_v47 }
0x1ca2   :  { %v4827_v9 = vmul.f32 -1.442695, %v3829_v28 }
0x1ca4   :  { %5582 = vpow2.f32 %v4827_v9 }
0x1cb1   :  { %v5583_v52 = vpop.eup %5582 }
0x1cb2   :  { %v3834_v3 = vadd.f32 1.0, %v5583_v52 }
0x1cb4   :  { %5584 = vrcp.f32 %v3834_v3 }
0x1cc1   :  { %v5585_v38 = vpop.eup %5584 }
0x1cc2   :  { %3838 = vrot.lane.b32.xlu1 %v5585_v38, %s5662_s16 }
0x1d34   :  { %v3839_v21 = vpop.permute.xlu1 %3838 }
0x1d35   :  { %v3841_v32 = vmul.f32 %v3839_v21, %v3830_v11  ;;  %v3472_v11 = vsub.s32 2, %v6950_v44 }
0x1d37   :  { %v3842_v18 = vsub.f32 %v3841_v32, %v5581_v58  ;;  %v3473_v21 = vrot.slane %v6953_v42, %v3472_v11 }
0x1d39   :  { %3844 = vrot.lane.b32.xlu0 %v3842_v18, %s5666_s15  ;;  %v3620_v32 = vadd.f32 %v6969_v4, %v3473_v21 }
0x1d3d   :  { %3928 = vrot.lane.b32.xlu0 %v3829_v28, %s5670_s27 }
0x1dab   :  { %v3845_v59 = vpop.permute.xlu0 %3844 }
0x1dac   :  { %5003 = vmatmul.mubr.msk.f32.vlgmr.msra.gmra.mxu0 %vm245_vm9, %v3845_v59 }
0x1dad   :  { %5013 = vmatpush3.msra.mxu0 %v6924_v55  ;;  %5016 = vmatprep.mubr.msk.f32.mxu0 %vm5664_vm0, %v5663_v0 }
0x1dae   :  { %5014 = vmatprep.subr.mxu0 %v5663_v0 }
0x1daf   :  { %5015 = vmatpush3.msra.mxu0 %v6929_v36  ;;  %v3929_v33 = vpop.permute.xlu0 %3928 }
0x1db0   :  { %5026 = vmatprep.subr.mxu0 %v5663_v0 }
0x1e6c   :  { %v3914_v27 = vpop.f32.mrf.mxu0 }
0x1e6d   :  { %v3918_v7 = vadd.f32 %v3914_v27, %v3551_v20 }
0x1e6e   :  { %v5004_v2 = vpop.f32.mrf.mxu0 }
0x1e6f   :  { %v4829_v49 = vmul.f32 -1.442695, %v3918_v7 }
0x1e71   :  { %5586 = vpow2.f32 %v4829_v49 }
0x1e7e   :  { %v5587_v46 = vpop.eup %5586 }
0x1e7f   :  { %v3922_v31 = vadd.f32 1.0, %v5587_v46 }
0x1e81   :  { %5588 = vrcp.f32 %v3922_v31 }
0x1e8e   :  { %v5589_v41 = vpop.eup %5588 }
0x1e8f   :  { %v3925_v1 = vmul.f32 4.0, %v5589_v41  ;;  %v3931_v29 = vmul.f32 %v5589_v41, %v3929_v33  ;;  %v3942_v54 = vadd.f32 %v5589_v41, %v5589_v41 }
0x1e91   :  { %v4830_v45 = vadd.f32 -2.0, %v3925_v1 }
0x1e93   :  { %3933 = vrot.lane.b32.xlu1 %v4830_v45, %s5665_s0 }
0x1f05   :  { %v3934_v19 = vpop.permute.xlu1 %3933 }
0x1f06   :  { %v3936_v14 = vmul.f32 %v5589_v41, %v3934_v19 }
0x1f08   :  { %3938 = vrot.lane.b32.xlu1 %v3936_v14, %s5666_s15 }
0x1f7a   :  { %v3939_v43 = vpop.permute.xlu1 %3938 }
0x1f7b   :  { %v3941_v56 = vadd.f32 %v3939_v43, %v3931_v29 }
0x1f7d   :  { %v4831_v34 = vmul.f32 -1.442695, %v3941_v56 }
0x1f7f   :  { %5590 = vpow2.f32 %v4831_v34 }
0x1f8c   :  { %v5591_v23 = vpop.eup %5590 }
0x1f8d   :  { %v3946_v30 = vadd.f32 1.0, %v5591_v23 }
0x1f8f   :  { %5592 = vrcp.f32 %v3946_v30 }
0x1f9c   :  { %v5593_v35 = vpop.eup %5592 }
0x1f9d   :  { %3950 = vrot.lane.b32.xlu0 %v5593_v35, %s5662_s16 }
0x200f   :  { %v3951_v53 = vpop.permute.xlu0 %3950 }
0x2010   :  { %v3953_v40 = vmul.f32 %v3951_v53, %v3942_v54 }
0x2012   :  { %v3954_v6 = vsub.f32 %v3953_v40, %v5589_v41 }
0x2014   :  { %3956 = vrot.lane.b32.xlu1 %v3954_v6, %s5667_s17 }
0x2086   :  { %v3957_v50 = vpop.permute.xlu1 %3956 }
0x2087   :  { %5010 = vmatmul.mubr.msk.f32.vlgmr.msra.gmra.mxu1 %vm245_vm9, %v3957_v50 }
0x2088   :  { %5020 = vmatpush3.msra.mxu1 %v6924_v55  ;;  %5023 = vmatprep.mubr.msk.f32.mxu1 %vm5664_vm0, %v5663_v0 }
0x2089   :  { %5021 = vmatprep.subr.mxu1 %v5663_v0 }
0x208a   :  { %5022 = vmatpush3.msra.mxu1 %v6929_v36 }
0x208b   :  { %5033 = vmatprep.subr.mxu1 %v5663_v0 }
0x2147   :  { %v4026_v60 = vpop.f32.mrf.mxu1 }
0x2148   :  { %4031 = vrot.lane.b32.xlu0 %v4026_v60, %s5670_s27 }
0x2149   :  { %v5011_v17 = vpop.f32.mrf.mxu1 }
0x214c   :  { %4044 = vrot.lane.b32.xlu0 %v3941_v56, %s5670_s27 }
0x21ba   :  { %v4032_v24 = vpop.permute.xlu0 %4031 }
0x21bb   :  { %v4034_v51 = vadd.f32 %v4032_v24, %v3551_v20 }
0x21bd   :  { %v4833_v22 = vmul.f32 -1.442695, %v4034_v51 }
0x21be   :  { %v4045_v58 = vpop.permute.xlu0 %4044 }
0x21bf   :  { %5594 = vpow2.f32 %v4833_v22 }
0x21cc   :  { %v5595_v61 = vpop.eup %5594 }
0x21cd   :  { %v4038_v12 = vadd.f32 1.0, %v5595_v61 }
0x21cf   :  { %5596 = vrcp.f32 %v4038_v12 }
0x21dc   :  { %v5597_v10 = vpop.eup %5596 }
0x21dd   :  { %v4041_v5 = vmul.f32 4.0, %v5597_v10  ;;  %v4047_v13 = vmul.f32 %v5597_v10, %v4045_v58  ;;  %v4058_v28 = vadd.f32 %v5597_v10, %v5597_v10 }
0x21df   :  { %v4834_v26 = vadd.f32 -2.0, %v4041_v5 }
0x21e1   :  { %4049 = vrot.lane.b32.xlu1 %v4834_v26, %s5665_s0 }
0x2253   :  { %v4050_v57 = vpop.permute.xlu1 %4049 }
0x2254   :  { %v4052_v15 = vmul.f32 %v5597_v10, %v4050_v57 }
0x2256   :  { %4054 = vrot.lane.b32.xlu1 %v4052_v15, %s5666_s15 }
0x22c8   :  { %v4055_v63 = vpop.permute.xlu1 %4054 }
0x22c9   :  { %v4057_v8 = vadd.f32 %v4055_v63, %v4047_v13 }
0x22cb   :  { %v4835_v25 = vmul.f32 -1.442695, %v4057_v8 }
0x22cd   :  { %5598 = vpow2.f32 %v4835_v25 }
0x22da   :  { %v5599_v37 = vpop.eup %5598 }
0x22db   :  { %v4062_v47 = vadd.f32 1.0, %v5599_v37  ;;  %v3476_v37 = vsub.s32 3, %v6950_v44 }
0x22dd   :  { %5600 = vrcp.f32 %v4062_v47  ;;  %v3477_v47 = vrot.slane %v6953_v42, %v3476_v37 }
0x22ea   :  { %v5601_v62 = vpop.eup %5600 }
0x22eb   :  { %4066 = vrot.lane.b32.xlu0 %v5601_v62, %s5662_s16  ;;  %v3622_v62 = vadd.f32 %v6971_v16, %v3477_v47 }
0x235d   :  { %v4067_v9 = vpop.permute.xlu0 %4066 }
0x235e   :  { %v4069_v52 = vmul.f32 %v4067_v9, %v4058_v28 }
0x2360   :  { %v4070_v3 = vsub.f32 %v4069_v52, %v5597_v10 }
0x2362   :  { %4072 = vrot.lane.b32.xlu1 %v4070_v3, %s5666_s15 }
0x2366   :  { %4156 = vrot.lane.b32.xlu1 %v4057_v8, %s5670_s27 }
0x23d4   :  { %v4073_v38 = vpop.permute.xlu1 %4072 }
0x23d5   :  { %5017 = vmatmul.mubr.msk.f32.vlgmr.msra.gmra.mxu0 %vm245_vm9, %v4073_v38 }
0x23d6   :  { %5027 = vmatpush3.msra.mxu0 %v6924_v55  ;;  %5030 = vmatprep.mubr.msk.f32.mxu0 %vm5664_vm0, %v5663_v0 }
0x23d7   :  { %5028 = vmatprep.subr.mxu0 %v5663_v0 }
0x23d8   :  { %5029 = vmatpush3.msra.mxu0 %v6929_v36  ;;  %v4157_v41 = vpop.permute.xlu1 %4156 }
0x23d9   :  { %5040 = vmatprep.subr.mxu0 %v5663_v0 }
0x2495   :  { %v4142_v18 = vpop.f32.mrf.mxu0 }
0x2496   :  { %v4146_v59 = vadd.f32 %v4142_v18, %v3620_v32 }
0x2497   :  { %v5018_v39 = vpop.f32.mrf.mxu0 }
0x2498   :  { %v4837_v48 = vmul.f32 -1.442695, %v4146_v59 }
0x249a   :  { %5602 = vpow2.f32 %v4837_v48 }
0x24a7   :  { %v5603_v20 = vpop.eup %5602 }
0x24a8   :  { %v4150_v27 = vadd.f32 1.0, %v5603_v20 }
0x24aa   :  { %5604 = vrcp.f32 %v4150_v27 }
0x24b7   :  { %v5605_v7 = vpop.eup %5604 }
0x24b8   :  { %v4153_v2 = vmul.f32 4.0, %v5605_v7  ;;  %v4159_v1 = vmul.f32 %v5605_v7, %v4157_v41  ;;  %v4170_v43 = vadd.f32 %v5605_v7, %v5605_v7 }
0x24ba   :  { %v4838_v49 = vadd.f32 -2.0, %v4153_v2 }
0x24bc   :  { %4161 = vrot.lane.b32.xlu0 %v4838_v49, %s5665_s0 }
0x252e   :  { %v4162_v46 = vpop.permute.xlu0 %4161 }
0x252f   :  { %v4164_v31 = vmul.f32 %v5605_v7, %v4162_v46 }
0x2531   :  { %4166 = vrot.lane.b32.xlu0 %v4164_v31, %s5666_s15 }
0x25a3   :  { %v4167_v4 = vpop.permute.xlu0 %4166 }
0x25a4   :  { %v4169_v45 = vadd.f32 %v4167_v4, %v4159_v1 }
0x25a6   :  { %v4839_v19 = vmul.f32 -1.442695, %v4169_v45 }
0x25a8   :  { %5606 = vpow2.f32 %v4839_v19 }
0x25b5   :  { %v5607_v14 = vpop.eup %5606 }
0x25b6   :  { %v4174_v33 = vadd.f32 1.0, %v5607_v14 }
0x25b8   :  { %5608 = vrcp.f32 %v4174_v33 }
0x25c5   :  { %v5609_v29 = vpop.eup %5608 }
0x25c6   :  { %4178 = vrot.lane.b32.xlu1 %v5609_v29, %s5662_s16 }
0x2638   :  { %v4179_v56 = vpop.permute.xlu1 %4178 }
0x2639   :  { %v4181_v34 = vmul.f32 %v4179_v56, %v4170_v43 }
0x263b   :  { %v4182_v23 = vsub.f32 %v4181_v34, %v5605_v7 }
0x263d   :  { %4184 = vrot.lane.b32.xlu0 %v4182_v23, %s5667_s17 }
0x26af   :  { %v4185_v30 = vpop.permute.xlu0 %4184 }
0x26b0   :  { %5024 = vmatmul.mubr.msk.f32.vlgmr.msra.gmra.mxu1 %vm245_vm9, %v4185_v30 }
0x26b1   :  { %5034 = vmatpush3.msra.mxu1 %v6924_v55  ;;  %5037 = vmatprep.mubr.msk.f32.mxu1 %vm5664_vm0, %v5663_v0 }
0x26b2   :  { %5035 = vmatprep.subr.mxu1 %v5663_v0 }
0x26b3   :  { %5036 = vmatpush3.msra.mxu1 %v6929_v36 }
0x2770   :  { %v4254_v35 = vpop.f32.mrf.mxu1 }
0x2771   :  { %4259 = vrot.lane.b32.xlu1 %v4254_v35, %s5670_s27 }
0x2772   :  { %v5025_v54 = vpop.f32.mrf.mxu1 }
0x2775   :  { %4272 = vrot.lane.b32.xlu1 %v4169_v45, %s5670_s27 }
0x27e3   :  { %v4260_v53 = vpop.permute.xlu1 %4259 }
0x27e4   :  { %v4262_v40 = vadd.f32 %v4260_v53, %v3620_v32 }
0x27e6   :  { %v4841_v6 = vmul.f32 -1.442695, %v4262_v40 }
0x27e7   :  { %v4273_v22 = vpop.permute.xlu1 %4272 }
0x27e8   :  { %5610 = vpow2.f32 %v4841_v6 }
0x27f5   :  { %v5611_v50 = vpop.eup %5610 }
0x27f6   :  { %v4266_v60 = vadd.f32 1.0, %v5611_v50 }
0x27f8   :  { %5612 = vrcp.f32 %v4266_v60 }
0x2805   :  { %v5613_v55 = vpop.eup %5612 }
0x2806   :  { %v4269_v17 = vmul.f32 4.0, %v5613_v55  ;;  %v4275_v61 = vmul.f32 %v5613_v55, %v4273_v22  ;;  %v4286_v58 = vadd.f32 %v5613_v55, %v5613_v55 }
0x2808   :  { %v4842_v24 = vadd.f32 -2.0, %v4269_v17  ;;  %v35_v17 = vld [vmem:[%s7067_s1 + $0x31] sm:$0xff] }
0x280a   :  { %4277 = vrot.lane.b32.xlu0 %v4842_v24, %s5665_s0  ;;  %v34_v24 = vld [vmem:[%s7067_s1 + $0x29] sm:$0xff] }
0x287c   :  { %v4278_v51 = vpop.permute.xlu0 %4277 }
0x287d   :  { %v4280_v36 = vmul.f32 %v5613_v55, %v4278_v51 }
0x287f   :  { %4282 = vrot.lane.b32.xlu0 %v4280_v36, %s5666_s15 }
0x28f1   :  { %v4283_v12 = vpop.permute.xlu0 %4282 }
0x28f2   :  { %v4285_v10 = vadd.f32 %v4283_v12, %v4275_v61 }
0x28f4   :  { %v4843_v5 = vmul.f32 -1.442695, %v4285_v10 }
0x28f6   :  { %5614 = vpow2.f32 %v4843_v5  ;;  %v4852_v5 = vld [vmem:[%s7067_s1 + $0x39] ss:$0 sm:$0xff] }
0x2903   :  { %v5615_v26 = vpop.eup %5614 }
0x2904   :  { %v4290_v57 = vadd.f32 1.0, %v5615_v26 }
0x2906   :  { %5616 = vrcp.f32 %v4290_v57 }
0x2913   :  { %v5617_v15 = vpop.eup %5616 }
0x2914   :  { %4294 = vrot.lane.b32.xlu1 %v5617_v15, %s5662_s16 }
0x2986   :  { %v4295_v13 = vpop.permute.xlu1 %4294 }
0x2987   :  { %v4297_v63 = vmul.f32 %v4295_v13, %v4286_v58 }
0x2989   :  { %v4298_v8 = vsub.f32 %v4297_v63, %v5613_v55 }
0x298b   :  { %4300 = vrot.lane.b32.xlu0 %v4298_v8, %s5666_s15 }
0x298f   :  { %4384 = vrot.lane.b32.xlu0 %v4285_v10, %s5670_s27 }
0x29fd   :  { %v4301_v25 = vpop.permute.xlu0 %4300 }
0x29fe   :  { %5031 = vmatmul.mubr.msk.f32.vlgmr.msra.gmra.mxu0 %vm245_vm9, %v4301_v25 }
0x29ff   :  { %5044 = vmatprep.mubr.msk.f32.mxu0 %vm5664_vm0, %v5663_v0  ;;  %5041 = vmatpush3.msra.mxu0 %v35_v17  ;;  %vm4606_vm0 = vcmask 7168  }
0x2a00   :  { %5042 = vmatprep.subr.mxu0 %v5663_v0 }
0x2a01   :  { %v4385_v44 = vpop.permute.xlu0 %4384  ;;  %5043 = vmatpush3.msra.mxu0 %v34_v24 }
0x2abe   :  { %v4370_v28 = vpop.f32.mrf.mxu0 }
0x2abf   :  { %v4374_v9 = vadd.f32 %v4370_v28, %v3622_v62 }
0x2ac0   :  { %v5032_v52 = vpop.f32.mrf.mxu0 }
0x2ac1   :  { %v4845_v3 = vmul.f32 -1.442695, %v4374_v9 }
0x2ac3   :  { %5618 = vpow2.f32 %v4845_v3 }
0x2ad0   :  { %v5619_v38 = vpop.eup %5618 }
0x2ad1   :  { %v4378_v11 = vadd.f32 1.0, %v5619_v38 }
0x2ad3   :  { %5620 = vrcp.f32 %v4378_v11 }
0x2ae0   :  { %v5621_v21 = vpop.eup %5620 }
0x2ae1   :  { %v4381_v32 = vmul.f32 4.0, %v5621_v21  ;;  %v4387_v42 = vmul.f32 %v5621_v21, %v4385_v44  ;;  %v4398_v49 = vadd.f32 %v5621_v21, %v5621_v21 }
0x2ae3   :  { %v4846_v18 = vadd.f32 -2.0, %v4381_v32 }
0x2ae5   :  { %4389 = vrot.lane.b32.xlu1 %v4846_v18, %s5665_s0 }
0x2b57   :  { %v4390_v59 = vpop.permute.xlu1 %4389 }
0x2b58   :  { %v4392_v39 = vmul.f32 %v5621_v21, %v4390_v59 }
0x2b5a   :  { %4394 = vrot.lane.b32.xlu1 %v4392_v39, %s5666_s15 }
0x2bcc   :  { %v4395_v16 = vpop.permute.xlu1 %4394 }
0x2bcd   :  { %v4397_v48 = vadd.f32 %v4395_v16, %v4387_v42 }
0x2bcf   :  { %v4847_v20 = vmul.f32 -1.442695, %v4397_v48 }
0x2bd1   :  { %5622 = vpow2.f32 %v4847_v20 }
0x2bde   :  { %v5623_v27 = vpop.eup %5622 }
0x2bdf   :  { %v4402_v7 = vadd.f32 1.0, %v5623_v27 }
0x2be1   :  { %5624 = vrcp.f32 %v4402_v7 }
0x2bee   :  { %v5625_v2 = vpop.eup %5624 }
0x2bef   :  { %4406 = vrot.lane.b32.xlu0 %v5625_v2, %s5662_s16 }
0x2c61   :  { %v4407_v46 = vpop.permute.xlu0 %4406 }
0x2c62   :  { %v4409_v31 = vmul.f32 %v4407_v46, %v4398_v49 }
0x2c64   :  { %v4410_v41 = vsub.f32 %v4409_v31, %v5621_v21 }
0x2c66   :  { %4412 = vrot.lane.b32.xlu1 %v4410_v41, %s5667_s17 }
0x2cd8   :  { %v4413_v1 = vpop.permute.xlu1 %4412 }
0x2cd9   :  { %5038 = vmatmul.mubr.msk.f32.vlgmr.msra.gmra.mxu1 %vm245_vm9, %v4413_v1 }
0x2d99   :  { %v4482_v4 = vpop.f32.mrf.mxu1 }
0x2d9a   :  { %4487 = vrot.lane.b32.xlu0 %v4482_v4, %s5670_s27 }
0x2d9b   :  { %v5039_v45 = vpop.f32.mrf.mxu1 }
0x2d9e   :  { %4500 = vrot.lane.b32.xlu0 %v4397_v48, %s5670_s27 }
0x2e0c   :  { %v4488_v19 = vpop.permute.xlu0 %4487 }
0x2e0d   :  { %v4490_v14 = vadd.f32 %v4488_v19, %v3622_v62 }
0x2e0f   :  { %v4849_v33 = vmul.f32 -1.442695, %v4490_v14 }
0x2e10   :  { %v4501_v54 = vpop.permute.xlu0 %4500 }
0x2e11   :  { %5626 = vpow2.f32 %v4849_v33 }
0x2e1e   :  { %v5627_v29 = vpop.eup %5626 }
0x2e1f   :  { %v4494_v43 = vadd.f32 1.0, %v5627_v29 }
0x2e21   :  { %5628 = vrcp.f32 %v4494_v43 }
0x2e2e   :  { %v5629_v56 = vpop.eup %5628 }
0x2e2f   :  { %v4497_v34 = vmul.f32 4.0, %v5629_v56  ;;  %v4503_v53 = vmul.f32 %v5629_v56, %v4501_v54  ;;  %v4514_v36 = vadd.f32 %v5629_v56, %v5629_v56 }
0x2e31   :  { %v4850_v23 = vadd.f32 -2.0, %v4497_v34 }
0x2e33   :  { %4505 = vrot.lane.b32.xlu1 %v4850_v23, %s5665_s0 }
0x2ea5   :  { %v4506_v30 = vpop.permute.xlu1 %4505 }
0x2ea6   :  { %v4508_v35 = vmul.f32 %v5629_v56, %v4506_v30 }
0x2ea8   :  { %4510 = vrot.lane.b32.xlu1 %v4508_v35, %s5666_s15 }
0x2f1a   :  { %v4511_v40 = vpop.permute.xlu1 %4510 }
0x2f1b   :  { %v4513_v6 = vadd.f32 %v4511_v40, %v4503_v53 }
0x2f1d   :  { %v4851_v50 = vmul.f32 -1.442695, %v4513_v6 }
0x2f1f   :  { %5630 = vpow2.f32 %v4851_v50 }
0x2f2c   :  { %v5631_v60 = vpop.eup %5630 }
0x2f2d   :  { %v4518_v55 = vadd.f32 1.0, %v5631_v60 }
0x2f2f   :  { %5632 = vrcp.f32 %v4518_v55 }
0x2f3c   :  { %v5633_v51 = vpop.eup %5632 }
0x2f3d   :  { %4522 = vrot.lane.b32.xlu0 %v5633_v51, %s5662_s16 }
0x2faf   :  { %v4523_v22 = vpop.permute.xlu0 %4522 }
0x2fb0   :  { %v4525_v61 = vmul.f32 %v4523_v22, %v4514_v36 }
0x2fb2   :  { %v4526_v12 = vsub.f32 %v4525_v61, %v5629_v56 }
0x2fb4   :  { %4532 = vrot.lane.b32.xlu1 %v4526_v12, %s5666_s15 }
0x3026   :  { %v4533_v10 = vpop.permute.xlu1 %4532 }
0x3027   :  { %5045 = vmatmul.mubr.msk.f32.vlgmr.msra.gmra.mxu0 %vm245_vm9, %v4533_v10 }
0x30e7   :  { %v4602_v26 = vpop.f32.mrf.mxu0 }
0x30e8   :  { %v4603_v0 = vadd.f32 %v4852_v5, %v4602_v26 }
0x30e9   :  { %v5046_v57 = vpop.f32.mrf.mxu0 }
0x30ea   :  { %4607 = vst.msk [vmem:[%s7069_s3] sm:$0xff] %vm4606_vm0, %v4603_v0 }
0x30eb   :  { %4612 = vsyncpa [#allocation3], 1 }

</bundles_post_ra>
